<compile_context>
chip_gen: v7x
topology: tpu7x:2x2x1
jax: 0.10.0
libtpu: 0.0.40
codegen_flags: <defaults>
</compile_context>

<pallas_src>
import functools

import jax
import jax.numpy as jnp
from jax import lax
from jax.experimental import pallas as pl
from jax.experimental.pallas import tpu as pltpu


def _ce_kernel(logits_ref, targets_ref, out_ref, *, inv_n):
    i = pl.program_id(0)

    @pl.when(i == 0)
    def _():
        out_ref[...] = jnp.zeros_like(out_ref)

    logits = logits_ref[...].astype(jnp.float32)     # (TN, C), cast after DMA
    targets = targets_ref[...]                       # (TN, 1) int32 (-1 = pad)

    # Numerically-stable logsumexp; reuse the shifted values for the pick too.
    m = jnp.max(logits, axis=-1, keepdims=True)                   # (TN, 1)
    shifted = logits - m                                          # (TN, C)
    sumexp = jnp.sum(jnp.exp(shifted), axis=-1, keepdims=True)    # (TN, 1)

    # Gather logit at the target class via a one-hot mask (no dynamic gather).
    class_ids = lax.broadcasted_iota(jnp.int32, shifted.shape, 1)
    picked_shifted = jnp.sum(
        jnp.where(class_ids == targets, shifted, jnp.zeros_like(shifted)),
        axis=-1, keepdims=True)                                   # (TN, 1)

    valid = (targets >= 0).astype(jnp.float32)        # padded rows contribute 0
    losses = (jnp.log(sumexp) - picked_shifted) * valid            # (TN, 1)

    # Running sum accumulated in the resident (1,1) output block.
    out_ref[...] += jnp.sum(losses).reshape(1, 1)

    @pl.when(i == pl.num_programs(0) - 1)
    def _():
        out_ref[...] = out_ref[...] * jnp.float32(inv_n)


def ce_loss(y_pred, y_true, row_tile=None):
    """Pallas equivalent of nn.CrossEntropyLoss()(y_pred, y_true)."""
    n, c = y_pred.shape
    bytes_per = jnp.dtype(y_pred.dtype).itemsize

    if row_tile is None:
        # ~4 MiB per logits buffer (2 pipelined buffers ~ 8 MiB), multiple of 8
        # sublanes, capped at 1024 rows.
        tn = (4 * 1024 * 1024) // max(1, c * bytes_per)
        tn = max(8, min(1024, (tn // 8) * 8))
    else:
        tn = max(8, (int(row_tile) // 8) * 8)

    n_pad = ((n + tn - 1) // tn) * tn
    tn = min(tn, n_pad)

    logits = y_pred                                   # native dtype on the wire
    targets = y_true.astype(jnp.int32).reshape(n, 1)
    if n_pad != n:
        logits = jnp.pad(logits, ((0, n_pad - n), (0, 0)))
        targets = jnp.pad(targets, ((0, n_pad - n), (0, 0)), constant_values=-1)

    grid = (n_pad // tn,)

    footprint = 2 * (tn * c * bytes_per + tn * 4) + 4096
    vmem_limit = int(min(96 * 1024 * 1024, max(2 * footprint, 16 * 1024 * 1024)))

    out = pl.pallas_call(
        functools.partial(_ce_kernel, inv_n=1.0 / n),
        out_shape=jax.ShapeDtypeStruct((1, 1), jnp.float32),
        grid=grid,
        in_specs=[
            pl.BlockSpec((tn, c), lambda i: (i, 0)),
            pl.BlockSpec((tn, 1), lambda i: (i, 0)),
        ],
        out_specs=pl.BlockSpec((1, 1), lambda i: (0, 0)),
        compiler_params=pltpu.CompilerParams(
            dimension_semantics=("arbitrary",),
            vmem_limit_bytes=vmem_limit,
        ),
        cost_estimate=pl.CostEstimate(
            flops=5 * n * c,
            transcendentals=n * c,
            bytes_accessed=n * c * bytes_per + n * 4 + 4,
        ),
    )(logits, targets)
    return out[0, 0]


def _ce_loss_ref(y_pred, y_true):
    # Pure-JAX reference for validation.
    logp = jax.nn.log_softmax(y_pred.astype(jnp.float32), axis=-1)
    nll = -jnp.take_along_axis(logp, y_true.astype(jnp.int32)[:, None], axis=-1)
    return jnp.mean(nll)


if __name__ == "__main__":
    key = jax.random.PRNGKey(0)
    k1, k2, k3, k4 = jax.random.split(key, 4)

    # Case 1: small single-tile case (matches the module's (batch, classes)).
    N, C = 8, 32
    y_pred = jax.random.normal(k1, (N, C), dtype=jnp.float32)
    y_true = jax.random.randint(k2, (N,), 0, C, dtype=jnp.int32)

    loss = ce_loss(y_pred, y_true)
    jax.block_until_ready(loss)
    ref = _ce_loss_ref(y_pred, y_true)
    assert jnp.allclose(loss, ref, atol=1e-5, rtol=1e-5), (loss, ref)

    # Case 2: non-multiple batch + forced small row tile to exercise the
    # multi-tile accumulation / last-tile masking path.
    N2, C2 = 20, 48
    y_pred2 = jax.random.normal(k3, (N2, C2), dtype=jnp.float32)
    y_true2 = jax.random.randint(k4, (N2,), 0, C2, dtype=jnp.int32)

    loss2 = ce_loss(y_pred2, y_true2, row_tile=8)
    jax.block_until_ready(loss2)
    ref2 = _ce_loss_ref(y_pred2, y_true2)
    assert jnp.allclose(loss2, ref2, atol=1e-5, rtol=1e-5), (loss2, ref2)

    print("KERNEL_OK")
</pallas_src>

<mosaic_0001>
module attributes {stable_mosaic.version = 11 : i64} {
  func.func @_ce_kernel(%arg0: i32, %arg1: memref<1024x32xf32, #tpu.memory_space<vmem>>, %arg2: memref<1024x1xi32, #tpu.memory_space<vmem>>, %arg3: memref<1x1xf32, #tpu.memory_space<vmem>>) attributes {dimension_semantics = [#tpu.dimension_semantics<arbitrary>], iteration_bounds = array<i64: 1>, scalar_prefetch = 0 : i64, scratch_operands = 0 : i64, tpu.core_type = #tpu.core_type<tc>, window_params = [{transform_indices = @transform_0, window_bounds = array<i64: 1024, 32>}, {transform_indices = @transform_1, window_bounds = array<i64: 1024, 1>}, {pipeline_mode = #tpu.pipeline_mode<synchronous>, transform_indices = @transform_2, window_bounds = array<i64: 1, 1>}]} {
    %c0_i32 = arith.constant 0 : i32
    %0 = arith.cmpi eq, %arg0, %c0_i32 : i32
    %1 = arith.extui %0 : i1 to i32
    %c0_i32_0 = arith.constant 0 : i32
    %2 = arith.cmpi ne, %1, %c0_i32_0 : i32
    scf.if %2 {
      %cst_15 = arith.constant 0.000000e+00 : f32
      %37 = vector.broadcast %cst_15 : f32 to vector<1x1xf32>
      %c0_16 = arith.constant 0 : index
      %c0_17 = arith.constant 0 : index
      %38 = vector.load %arg3[%c0_16, %c0_17] : memref<1x1xf32, #tpu.memory_space<vmem>>, vector<1x1xf32>
      tpu.vector_store %arg3[%c0_16, %c0_17], %37 {strides = array<i32>} : memref<1x1xf32, #tpu.memory_space<vmem>>, vector<1x1xf32>,
    } else {
    }
    %c0 = arith.constant 0 : index
    %c0_1 = arith.constant 0 : index
    %3 = vector.load %arg1[%c0, %c0_1] : memref<1024x32xf32, #tpu.memory_space<vmem>>, vector<1024x32xf32>
    %c0_2 = arith.constant 0 : index
    %c0_3 = arith.constant 0 : index
    %4 = vector.load %arg2[%c0_2, %c0_3] : memref<1024x1xi32, #tpu.memory_space<vmem>>, vector<1024x1xi32>
    %cst = arith.constant dense<0xFF800000> : vector<1024xf32>
    %5 = vector.multi_reduction <maximumf>, %3, %cst [1] : vector<1024x32xf32> to vector<1024xf32>
    %6 = vector.shape_cast %5 : vector<1024xf32> to vector<1024x1xf32>
    %7 = vector.broadcast %6 : vector<1024x1xf32> to vector<1024x32xf32>
    %8 = arith.subf %3, %7 : vector<1024x32xf32>
    %9 = math.exp %8 : vector<1024x32xf32>
    %cst_4 = arith.constant dense<0.000000e+00> : vector<1024xf32>
    %10 = vector.multi_reduction <add>, %9, %cst_4 [1] : vector<1024x32xf32> to vector<1024xf32>
    %11 = vector.shape_cast %10 : vector<1024xf32> to vector<1024x1xf32>
    %12 = tpu.iota {dimensions = array<i32: 1>} : vector<1024x32xi32>
    %13 = vector.broadcast %4 : vector<1024x1xi32> to vector<1024x32xi32>
    %14 = arith.cmpi eq, %12, %13 : vector<1024x32xi32>
    %cst_5 = arith.constant 0.000000e+00 : f32
    %15 = vector.broadcast %cst_5 : f32 to vector<1024x32xf32>
    %16 = arith.select %14, %8, %15 : vector<1024x32xi1>, vector<1024x32xf32>
    %cst_6 = arith.constant dense<0.000000e+00> : vector<1024xf32>
    %17 = vector.multi_reduction <add>, %16, %cst_6 [1] : vector<1024x32xf32> to vector<1024xf32>
    %18 = vector.shape_cast %17 : vector<1024xf32> to vector<1024x1xf32>
    %c0_i32_7 = arith.constant 0 : i32
    %19 = vector.broadcast %c0_i32_7 : i32 to vector<1024x1xi32>
    %20 = arith.cmpi sge, %4, %19 : vector<1024x1xi32>
    %21 = arith.extui %20 : vector<1024x1xi1> to vector<1024x1xi32>
    %22 = arith.sitofp %21 : vector<1024x1xi32> to vector<1024x1xf32>
    %23 = math.log %11 : vector<1024x1xf32>
    %24 = arith.subf %23, %18 : vector<1024x1xf32>
    %25 = arith.mulf %24, %22 : vector<1024x1xf32>
    %c0_8 = arith.constant 0 : index
    %c0_9 = arith.constant 0 : index
    %26 = vector.load %arg3[%c0_8, %c0_9] : memref<1x1xf32, #tpu.memory_space<vmem>>, vector<1x1xf32>
    %27 = vector.shape_cast %25 : vector<1024x1xf32> to vector<1x1024x1xf32>
    %cst_10 = arith.constant dense<0.000000e+00> : vector<1xf32>
    %28 = vector.multi_reduction <add>, %27, %cst_10 [1, 2] : vector<1x1024x1xf32> to vector<1xf32>
    %29 = vector.shape_cast %28 : vector<1xf32> to vector<1x1x1xf32>
    %30 = vector.extract %29[0, 0, 0] : f32 from vector<1x1x1xf32>
    %31 = vector.broadcast %30 : f32 to vector<1x1xf32>
    %32 = arith.addf %26, %31 : vector<1x1xf32>
    %c0_11 = arith.constant 0 : index
    %c0_12 = arith.constant 0 : index
    %33 = vector.load %arg3[%c0_11, %c0_12] : memref<1x1xf32, #tpu.memory_space<vmem>>, vector<1x1xf32>
    tpu.vector_store %arg3[%c0_11, %c0_12], %32 {strides = array<i32>} : memref<1x1xf32, #tpu.memory_space<vmem>>, vector<1x1xf32>,
    %c0_i32_13 = arith.constant 0 : i32
    %34 = arith.cmpi eq, %arg0, %c0_i32_13 : i32
    %35 = arith.extui %34 : i1 to i32
    %c0_i32_14 = arith.constant 0 : i32
    %36 = arith.cmpi ne, %35, %c0_i32_14 : i32
    scf.if %36 {
      %c0_15 = arith.constant 0 : index
      %c0_16 = arith.constant 0 : index
      %37 = vector.load %arg3[%c0_15, %c0_16] : memref<1x1xf32, #tpu.memory_space<vmem>>, vector<1x1xf32>
      %cst_17 = arith.constant 1.250000e-01 : f32
      %38 = vector.broadcast %cst_17 : f32 to vector<1x1xf32>
      %39 = arith.mulf %37, %38 : vector<1x1xf32>
      %c0_18 = arith.constant 0 : index
      %c0_19 = arith.constant 0 : index
      %40 = vector.load %arg3[%c0_18, %c0_19] : memref<1x1xf32, #tpu.memory_space<vmem>>, vector<1x1xf32>
      tpu.vector_store %arg3[%c0_18, %c0_19], %39 {strides = array<i32>} : memref<1x1xf32, #tpu.memory_space<vmem>>, vector<1x1xf32>,
    } else {
    }
    return
  }
  func.func @transform_0(%arg0: i32) -> (i32, i32) {
    %c0_i32 = arith.constant 0 : i32
    %c0_i32_0 = arith.constant 0 : i32
    return %arg0, %c0_i32 : i32, i32
  }
  func.func @transform_1(%arg0: i32) -> (i32, i32) {
    %c0_i32 = arith.constant 0 : i32
    %c0_i32_0 = arith.constant 0 : i32
    return %arg0, %c0_i32 : i32, i32
  }
  func.func @transform_2(%arg0: i32) -> (i32, i32) {
    %c0_i32 = arith.constant 0 : i32
    %c0_i32_0 = arith.constant 0 : i32
    %c0_i32_1 = arith.constant 0 : i32
    return %c0_i32, %c0_i32_0 : i32, i32
  }
}

</mosaic_0001>

<bundles_post_ra>
// kernel: tpu_custom_call.1
= control target key start
LH: loop header
LB: loop body
LE: loop exit
PB: predicated region body
PF: predicated region fallthrough
CT: control target
= control target key end

     0   :  { %vm274_vm0 = vcmask 261120   ;;  %s8509_s0 = inlined_call_operand.vmem [shape: f32[1024,32], index: 0, kind: input, shape index: {}]   ;;  %s8510_s1 = inlined_call_operand.vmem [shape: s32[1024,1], index: 1, kind: input, shape index: {}]   ;;  %s8511_s2 = inlined_call_operand.hbm [shape: f32[1,1], index: 2, kind: output, shape index: {}]  }
   0x1   :  { %v4549_v0 = vld [vmem:[%s8509_s0 + $0x10] sm:$0xff]  ;;  %v4554_v1 = vld [vmem:[%s8509_s0] sm:$0xff]  ;;  %v4559_v2 = vld [vmem:[%s8509_s0 + $0x18] sm:$0xff] }
   0x2   :  { %v281_v3 = vsel %vm274_vm0, %v4549_v0, -inf  ;;  %v275_v4 = vsel %vm274_vm0, %v4554_v1, -inf  ;;  %v4568_v5 = vld [vmem:[%s8509_s0 + $0x8] sm:$0xff]  ;;  %v284_v6 = vsel %vm274_vm0, %v4559_v2, -inf  ;;  %v4582_v9 = vld [vmem:[%s8509_s0 + $0x20] sm:$0xff]  ;;  %v4591_v12 = vld [vmem:[%s8509_s0 + $0x38] sm:$0xff] }
   0x3   :  { %282 = vmax.xlane.f32.xlu1 %v281_v3  ;;  %276 = vmax.xlane.f32.xlu0 %v275_v4  ;;  %v278_v7 = vsel %vm274_vm0, %v4568_v5, -inf  ;;  %v4577_v8 = vld [vmem:[%s8509_s0 + $0x28] sm:$0xff]  ;;  %v287_v11 = vsel %vm274_vm0, %v4582_v9, -inf  ;;  %v4596_v13 = vld [vmem:[%s8509_s0 + $0x30] sm:$0xff]  ;;  %v296_v14 = vsel %vm274_vm0, %v4591_v12, -inf  ;;  %v4610_v17 = vld [vmem:[%s8509_s0 + $0x40] sm:$0xff] }
   0x4   :  { %v290_v10 = vsel %vm274_vm0, %v4577_v8, -inf  ;;  %v293_v15 = vsel %vm274_vm0, %v4596_v13, -inf  ;;  %v4605_v16 = vld [vmem:[%s8509_s0 + $0x48] sm:$0xff]  ;;  %v299_v19 = vsel %vm274_vm0, %v4610_v17, -inf  ;;  %v4619_v20 = vld [vmem:[%s8509_s0 + $0x58] sm:$0xff]  ;;  %v4624_v21 = vld [vmem:[%s8509_s0 + $0x50] sm:$0xff] }
   0x5   :  { %v302_v18 = vsel %vm274_vm0, %v4605_v16, -inf  ;;  %v308_v22 = vsel %vm274_vm0, %v4619_v20, -inf  ;;  %v305_v23 = vsel %vm274_vm0, %v4624_v21, -inf  ;;  %v4633_v24 = vld [vmem:[%s8509_s0 + $0x68] sm:$0xff]  ;;  %v4638_v25 = vld [vmem:[%s8509_s0 + $0x60] sm:$0xff]  ;;  %v4647_v28 = vld [vmem:[%s8509_s0 + $0x78] sm:$0xff] }
   0x6   :  { %v314_v26 = vsel %vm274_vm0, %v4633_v24, -inf  ;;  %v311_v27 = vsel %vm274_vm0, %v4638_v25, -inf  ;;  %v4652_v29 = vld [vmem:[%s8509_s0 + $0x70] sm:$0xff] }
   0x7   :  { %285 = vmax.xlane.f32.xlu1 %v284_v6  ;;  %279 = vmax.xlane.f32.xlu0 %v278_v7 }
   0xb   :  { %291 = vmax.xlane.f32.xlu1 %v290_v10  ;;  %288 = vmax.xlane.f32.xlu0 %v287_v11 }
   0xf   :  { %297 = vmax.xlane.f32.xlu1 %v296_v14  ;;  %294 = vmax.xlane.f32.xlu0 %v293_v15 }
  0x13   :  { %303 = vmax.xlane.f32.xlu1 %v302_v18  ;;  %300 = vmax.xlane.f32.xlu0 %v299_v19 }
  0x17   :  { %309 = vmax.xlane.f32.xlu1 %v308_v22  ;;  %306 = vmax.xlane.f32.xlu0 %v305_v23 }
  0x1b   :  { %315 = vmax.xlane.f32.xlu1 %v314_v26  ;;  %312 = vmax.xlane.f32.xlu0 %v311_v27 }
  0x1c   :  { %7 = vsyncpa [#allocation3], 0  ;;  %v320_v30 = vsel %vm274_vm0, %v4647_v28, -inf  ;;  %v317_v31 = vsel %vm274_vm0, %v4652_v29, -inf  ;;  %v4661_v32 = vld [vmem:[%s8509_s0 + $0x88] sm:$0xff]  ;;  %v4666_v33 = vld [vmem:[%s8509_s0 + $0x80] sm:$0xff] }
  0x1d   :  { %v326_v34 = vsel %vm274_vm0, %v4661_v32, -inf  ;;  %v323_v35 = vsel %vm274_vm0, %v4666_v33, -inf  ;;  %v4675_v36 = vld [vmem:[%s8509_s0 + $0x98] sm:$0xff]  ;;  %v4680_v37 = vld [vmem:[%s8509_s0 + $0x90] sm:$0xff]  ;;  %v4689_v40 = vld [vmem:[%s8509_s0 + $0xa8] sm:$0xff]  ;;  %s4530_s16 = smov [#allocation2]  }
  0x1e   :  { %v332_v38 = vsel %vm274_vm0, %v4675_v36, -inf  ;;  %v329_v39 = vsel %vm274_vm0, %v4680_v37, -inf  ;;  %v4694_v41 = vld [vmem:[%s8509_s0 + $0xa0] sm:$0xff]  ;;  %v338_v42 = vsel %vm274_vm0, %v4689_v40, -inf  ;;  %v4703_v44 = vld [vmem:[%s8509_s0 + $0xb8] sm:$0xff]  ;;  %v4708_v45 = vld [vmem:[%s8509_s0 + $0xb0] sm:$0xff] }
  0x1f   :  { %321 = vmax.xlane.f32.xlu1 %v320_v30  ;;  %318 = vmax.xlane.f32.xlu0 %v317_v31  ;;  %v335_v43 = vsel %vm274_vm0, %v4694_v41, -inf  ;;  %v344_v46 = vsel %vm274_vm0, %v4703_v44, -inf  ;;  %v341_v47 = vsel %vm274_vm0, %v4708_v45, -inf  ;;  %v4717_v48 = vld [vmem:[%s8509_s0 + $0xc8] sm:$0xff]  ;;  %v4722_v49 = vld [vmem:[%s8509_s0 + $0xc0] sm:$0xff]  ;;  %v4731_v52 = vld [vmem:[%s8509_s0 + $0xd8] sm:$0xff] }
  0x20   :  { %v350_v50 = vsel %vm274_vm0, %v4717_v48, -inf  ;;  %v347_v51 = vsel %vm274_vm0, %v4722_v49, -inf  ;;  %v4736_v53 = vld [vmem:[%s8509_s0 + $0xd0] sm:$0xff]  ;;  %v356_v54 = vsel %vm274_vm0, %v4731_v52, -inf  ;;  %v47_v56 = vld [vmem:[%s8509_s0 + $0xe8] sm:$0xff]  ;;  %v46_v57 = vld [vmem:[%s8509_s0 + $0xe0] sm:$0xff] }
  0x21   :  { %8638 = vst [vmem:[#allocation5_spill] sm:$0xff] %v4736_v53  ;;  %v353_v55 = vsel %vm274_vm0, %v4736_v53, -inf  ;;  %v362_v58 = vsel %vm274_vm0, %v47_v56, -inf  ;;  %v359_v59 = vsel %vm274_vm0, %v46_v57, -inf  ;;  %v49_v60 = vld [vmem:[%s8509_s0 + $0xf8] sm:$0xff]  ;;  %v48_v61 = vld [vmem:[%s8509_s0 + $0xf0] sm:$0xff] }
  0x22   :  { %v368_v62 = vsel %vm274_vm0, %v49_v60, -inf  ;;  %v365_v63 = vsel %vm274_vm0, %v48_v61, -inf  ;;  %v51_v3 = vld [vmem:[%s8509_s0 + $0x108] sm:$0xff]  ;;  %v50_v4 = vld [vmem:[%s8509_s0 + $0x100] sm:$0xff]  ;;  %v53_v10 = vld [vmem:[%s8509_s0 + $0x118] sm:$0xff] }
  0x23   :  { %327 = vmax.xlane.f32.xlu1 %v326_v34  ;;  %324 = vmax.xlane.f32.xlu0 %v323_v35  ;;  %v374_v6 = vsel %vm274_vm0, %v51_v3, -inf  ;;  %v371_v7 = vsel %vm274_vm0, %v50_v4, -inf  ;;  %v52_v11 = vld [vmem:[%s8509_s0 + $0x110] sm:$0xff]  ;;  %v380_v14 = vsel %vm274_vm0, %v53_v10, -inf  ;;  %v55_v18 = vld [vmem:[%s8509_s0 + $0x128] sm:$0xff]  ;;  %v54_v19 = vld [vmem:[%s8509_s0 + $0x120] sm:$0xff] }
  0x24   :  { %v377_v15 = vsel %vm274_vm0, %v52_v11, -inf  ;;  %v386_v22 = vsel %vm274_vm0, %v55_v18, -inf  ;;  %v383_v23 = vsel %vm274_vm0, %v54_v19, -inf  ;;  %v57_v26 = vld [vmem:[%s8509_s0 + $0x138] sm:$0xff]  ;;  %v56_v27 = vld [vmem:[%s8509_s0 + $0x130] sm:$0xff]  ;;  %v59_v34 = vld [vmem:[%s8509_s0 + $0x148] sm:$0xff] }
  0x25   :  { %v392_v30 = vsel %vm274_vm0, %v57_v26, -inf  ;;  %v389_v31 = vsel %vm274_vm0, %v56_v27, -inf  ;;  %v58_v35 = vld [vmem:[%s8509_s0 + $0x140] sm:$0xff]  ;;  %v65_v56 = vld [vmem:[%s8509_s0 + $0x178] sm:$0xff]  ;;  %v64_v57 = vld [vmem:[%s8509_s0 + $0x170] sm:$0xff] }
  0x26   :  { %v67_v60 = vld [vmem:[%s8509_s0 + $0x188] sm:$0xff]  ;;  %v66_v61 = vld [vmem:[%s8509_s0 + $0x180] sm:$0xff]  ;;  %v69_v3 = vld [vmem:[%s8509_s0 + $0x198] sm:$0xff] }
  0x27   :  { %333 = vmax.xlane.f32.xlu1 %v332_v38  ;;  %330 = vmax.xlane.f32.xlu0 %v329_v39  ;;  %v398_v38 = vsel %vm274_vm0, %v59_v34, -inf  ;;  %v395_v39 = vsel %vm274_vm0, %v58_v35, -inf  ;;  %v68_v4 = vld [vmem:[%s8509_s0 + $0x190] sm:$0xff]  ;;  %v71_v10 = vld [vmem:[%s8509_s0 + $0x1a8] sm:$0xff]  ;;  %v70_v11 = vld [vmem:[%s8509_s0 + $0x1a0] sm:$0xff] }
  0x28   :  { %v73_v18 = vld [vmem:[%s8509_s0 + $0x1b8] sm:$0xff]  ;;  %v72_v19 = vld [vmem:[%s8509_s0 + $0x1b0] sm:$0xff]  ;;  %v75_v26 = vld [vmem:[%s8509_s0 + $0x1c8] sm:$0xff] }
  0x29   :  { %v74_v27 = vld [vmem:[%s8509_s0 + $0x1c0] sm:$0xff]  ;;  %v77_v34 = vld [vmem:[%s8509_s0 + $0x1d8] sm:$0xff]  ;;  %v76_v35 = vld [vmem:[%s8509_s0 + $0x1d0] sm:$0xff] }
  0x2b   :  { %339 = vmax.xlane.f32.xlu1 %v338_v42  ;;  %336 = vmax.xlane.f32.xlu0 %v335_v43  ;;  %v61_v42 = vld [vmem:[%s8509_s0 + $0x158] sm:$0xff]  ;;  %v60_v43 = vld [vmem:[%s8509_s0 + $0x150] sm:$0xff] }
  0x2f   :  { %345 = vmax.xlane.f32.xlu1 %v344_v46  ;;  %342 = vmax.xlane.f32.xlu0 %v341_v47  ;;  %v404_v46 = vsel %vm274_vm0, %v61_v42, -inf  ;;  %v401_v47 = vsel %vm274_vm0, %v60_v43, -inf  ;;  %v79_v42 = vld [vmem:[%s8509_s0 + $0x1e8] sm:$0xff]  ;;  %v78_v43 = vld [vmem:[%s8509_s0 + $0x1e0] sm:$0xff] }
  0x33   :  { %351 = vmax.xlane.f32.xlu1 %v350_v50  ;;  %348 = vmax.xlane.f32.xlu0 %v347_v51  ;;  %v63_v50 = vld [vmem:[%s8509_s0 + $0x168] sm:$0xff]  ;;  %v62_v51 = vld [vmem:[%s8509_s0 + $0x160] sm:$0xff] }
  0x37   :  { %357 = vmax.xlane.f32.xlu1 %v356_v54  ;;  %354 = vmax.xlane.f32.xlu0 %v353_v55  ;;  %v410_v54 = vsel %vm274_vm0, %v63_v50, -inf  ;;  %v407_v55 = vsel %vm274_vm0, %v62_v51, -inf  ;;  %v81_v50 = vld [vmem:[%s8509_s0 + $0x1f8] sm:$0xff]  ;;  %v80_v51 = vld [vmem:[%s8509_s0 + $0x1f0] sm:$0xff] }
  0x3b   :  { %363 = vmax.xlane.f32.xlu1 %v362_v58  ;;  %360 = vmax.xlane.f32.xlu0 %v359_v59  ;;  %v416_v58 = vsel %vm274_vm0, %v65_v56, -inf  ;;  %v413_v59 = vsel %vm274_vm0, %v64_v57, -inf  ;;  %v83_v56 = vld [vmem:[%s8509_s0 + $0x208] sm:$0xff]  ;;  %v82_v57 = vld [vmem:[%s8509_s0 + $0x200] sm:$0xff] }
  0x3f   :  { %369 = vmax.xlane.f32.xlu1 %v368_v62  ;;  %366 = vmax.xlane.f32.xlu0 %v365_v63  ;;  %v422_v62 = vsel %vm274_vm0, %v67_v60, -inf  ;;  %v419_v63 = vsel %vm274_vm0, %v66_v61, -inf  ;;  %v85_v60 = vld [vmem:[%s8509_s0 + $0x218] sm:$0xff]  ;;  %v84_v61 = vld [vmem:[%s8509_s0 + $0x210] sm:$0xff] }
  0x43   :  { %375 = vmax.xlane.f32.xlu1 %v374_v6  ;;  %372 = vmax.xlane.f32.xlu0 %v371_v7  ;;  %v428_v6 = vsel %vm274_vm0, %v69_v3, -inf  ;;  %v425_v7 = vsel %vm274_vm0, %v68_v4, -inf  ;;  %v87_v3 = vld [vmem:[%s8509_s0 + $0x228] sm:$0xff]  ;;  %v86_v4 = vld [vmem:[%s8509_s0 + $0x220] sm:$0xff] }
  0x47   :  { %381 = vmax.xlane.f32.xlu1 %v380_v14  ;;  %378 = vmax.xlane.f32.xlu0 %v377_v15  ;;  %v434_v14 = vsel %vm274_vm0, %v71_v10, -inf  ;;  %v431_v15 = vsel %vm274_vm0, %v70_v11, -inf  ;;  %v89_v10 = vld [vmem:[%s8509_s0 + $0x238] sm:$0xff]  ;;  %v88_v11 = vld [vmem:[%s8509_s0 + $0x230] sm:$0xff] }
  0x4b   :  { %387 = vmax.xlane.f32.xlu1 %v386_v22  ;;  %384 = vmax.xlane.f32.xlu0 %v383_v23  ;;  %v440_v22 = vsel %vm274_vm0, %v73_v18, -inf  ;;  %v437_v23 = vsel %vm274_vm0, %v72_v19, -inf  ;;  %v91_v18 = vld [vmem:[%s8509_s0 + $0x248] sm:$0xff]  ;;  %v90_v19 = vld [vmem:[%s8509_s0 + $0x240] sm:$0xff] }
  0x4f   :  { %393 = vmax.xlane.f32.xlu1 %v392_v30  ;;  %390 = vmax.xlane.f32.xlu0 %v389_v31  ;;  %v446_v30 = vsel %vm274_vm0, %v75_v26, -inf  ;;  %v443_v31 = vsel %vm274_vm0, %v74_v27, -inf  ;;  %v494_v26 = vsel %vm274_vm0, %v91_v18, -inf  ;;  %v491_v27 = vsel %vm274_vm0, %v90_v19, -inf  ;;  %v103_v18 = vld [vmem:[%s8509_s0 + $0x2a8] sm:$0xff]  ;;  %v102_v19 = vld [vmem:[%s8509_s0 + $0x2a0] sm:$0xff] }
  0x53   :  { %399 = vmax.xlane.f32.xlu1 %v398_v38  ;;  %396 = vmax.xlane.f32.xlu0 %v395_v39  ;;  %v452_v38 = vsel %vm274_vm0, %v77_v34, -inf  ;;  %v449_v39 = vsel %vm274_vm0, %v76_v35, -inf }
  0x57   :  { %405 = vmax.xlane.f32.xlu1 %v404_v46  ;;  %402 = vmax.xlane.f32.xlu0 %v401_v47  ;;  %v458_v46 = vsel %vm274_vm0, %v79_v42, -inf  ;;  %v455_v47 = vsel %vm274_vm0, %v78_v43, -inf  ;;  %v95_v42 = vld [vmem:[%s8509_s0 + $0x268] sm:$0xff]  ;;  %v94_v43 = vld [vmem:[%s8509_s0 + $0x260] sm:$0xff] }
  0x5b   :  { %411 = vmax.xlane.f32.xlu1 %v410_v54  ;;  %408 = vmax.xlane.f32.xlu0 %v407_v55  ;;  %v464_v54 = vsel %vm274_vm0, %v81_v50, -inf  ;;  %v461_v55 = vsel %vm274_vm0, %v80_v51, -inf  ;;  %v506_v50 = vsel %vm274_vm0, %v95_v42, -inf  ;;  %v503_v51 = vsel %vm274_vm0, %v94_v43, -inf }
  0x5f   :  { %417 = vmax.xlane.f32.xlu1 %v416_v58  ;;  %414 = vmax.xlane.f32.xlu0 %v413_v59  ;;  %v470_v58 = vsel %vm274_vm0, %v83_v56, -inf  ;;  %v467_v59 = vsel %vm274_vm0, %v82_v57, -inf }
  0x63   :  { %423 = vmax.xlane.f32.xlu1 %v422_v62  ;;  %420 = vmax.xlane.f32.xlu0 %v419_v63  ;;  %v476_v62 = vsel %vm274_vm0, %v85_v60, -inf  ;;  %v473_v63 = vsel %vm274_vm0, %v84_v61, -inf  ;;  %v99_v60 = vld [vmem:[%s8509_s0 + $0x288] sm:$0xff]  ;;  %v98_v61 = vld [vmem:[%s8509_s0 + $0x280] sm:$0xff] }
  0x67   :  { %429 = vmax.xlane.f32.xlu1 %v428_v6  ;;  %426 = vmax.xlane.f32.xlu0 %v425_v7  ;;  %v482_v6 = vsel %vm274_vm0, %v87_v3, -inf  ;;  %v479_v7 = vsel %vm274_vm0, %v86_v4, -inf  ;;  %v518_v3 = vsel %vm274_vm0, %v99_v60, -inf  ;;  %v515_v4 = vsel %vm274_vm0, %v98_v61, -inf }
  0x6b   :  { %435 = vmax.xlane.f32.xlu1 %v434_v14  ;;  %432 = vmax.xlane.f32.xlu0 %v431_v15  ;;  %v488_v14 = vsel %vm274_vm0, %v89_v10, -inf  ;;  %v485_v15 = vsel %vm274_vm0, %v88_v11, -inf }
  0x6f   :  { %441 = vmax.xlane.f32.xlu1 %v440_v22  ;;  %438 = vmax.xlane.f32.xlu0 %v437_v23 }
  0x73   :  { %447 = vmax.xlane.f32.xlu1 %v446_v30  ;;  %444 = vmax.xlane.f32.xlu0 %v443_v31  ;;  %v93_v30 = vld [vmem:[%s8509_s0 + $0x258] sm:$0xff]  ;;  %v92_v31 = vld [vmem:[%s8509_s0 + $0x250] sm:$0xff] }
  0x77   :  { %453 = vmax.xlane.f32.xlu1 %v452_v38  ;;  %450 = vmax.xlane.f32.xlu0 %v449_v39  ;;  %v500_v38 = vsel %vm274_vm0, %v93_v30, -inf  ;;  %v497_v39 = vsel %vm274_vm0, %v92_v31, -inf  ;;  %v530_v30 = vsel %vm274_vm0, %v103_v18, -inf  ;;  %v527_v31 = vsel %vm274_vm0, %v102_v19, -inf  ;;  %v111_v18 = vld [vmem:[%s8509_s0 + $0x2e8] sm:$0xff]  ;;  %v110_v19 = vld [vmem:[%s8509_s0 + $0x2e0] sm:$0xff] }
  0x7b   :  { %459 = vmax.xlane.f32.xlu1 %v458_v46  ;;  %456 = vmax.xlane.f32.xlu0 %v455_v47 }
  0x7f   :  { %465 = vmax.xlane.f32.xlu1 %v464_v54  ;;  %462 = vmax.xlane.f32.xlu0 %v461_v55  ;;  %v97_v54 = vld [vmem:[%s8509_s0 + $0x278] sm:$0xff]  ;;  %v96_v55 = vld [vmem:[%s8509_s0 + $0x270] sm:$0xff] }
  0x83   :  { %471 = vmax.xlane.f32.xlu1 %v470_v58  ;;  %468 = vmax.xlane.f32.xlu0 %v467_v59  ;;  %v512_v58 = vsel %vm274_vm0, %v97_v54, -inf  ;;  %v509_v59 = vsel %vm274_vm0, %v96_v55, -inf  ;;  %v107_v54 = vld [vmem:[%s8509_s0 + $0x2c8] sm:$0xff]  ;;  %v106_v55 = vld [vmem:[%s8509_s0 + $0x2c0] sm:$0xff] }
  0x84   :  { %v542_v60 = vsel %vm274_vm0, %v107_v54, -inf  ;;  %v539_v61 = vsel %vm274_vm0, %v106_v55, -inf }
  0x87   :  { %477 = vmax.xlane.f32.xlu1 %v476_v62  ;;  %474 = vmax.xlane.f32.xlu0 %v473_v63 }
  0x8b   :  { %483 = vmax.xlane.f32.xlu1 %v482_v6  ;;  %480 = vmax.xlane.f32.xlu0 %v479_v7  ;;  %v101_v6 = vld [vmem:[%s8509_s0 + $0x298] sm:$0xff]  ;;  %v100_v7 = vld [vmem:[%s8509_s0 + $0x290] sm:$0xff] }
  0x8f   :  { %489 = vmax.xlane.f32.xlu1 %v488_v14  ;;  %486 = vmax.xlane.f32.xlu0 %v485_v15  ;;  %v524_v14 = vsel %vm274_vm0, %v101_v6, -inf  ;;  %v521_v15 = vsel %vm274_vm0, %v100_v7, -inf }
  0x90   :  { %v4924_v22 = vpop.xlane.xlu1 %282  ;;  %v4926_v23 = vpop.xlane.xlu0 %276 }
  0x93   :  { %495 = vmax.xlane.f32.xlu1 %v494_v26  ;;  %492 = vmax.xlane.f32.xlu0 %v491_v27 }
  0x94   :  { %v4936_v34 = vpop.xlane.xlu1 %285  ;;  %v4938_v35 = vpop.xlane.xlu0 %279 }
  0x97   :  { %501 = vmax.xlane.f32.xlu1 %v500_v38  ;;  %498 = vmax.xlane.f32.xlu0 %v497_v39  ;;  %v105_v38 = vld [vmem:[%s8509_s0 + $0x2b8] sm:$0xff]  ;;  %v104_v39 = vld [vmem:[%s8509_s0 + $0x2b0] sm:$0xff] }
  0x98   :  { %v4948_v46 = vpop.xlane.xlu1 %291  ;;  %v4950_v47 = vpop.xlane.xlu0 %288 }
  0x9b   :  { %507 = vmax.xlane.f32.xlu1 %v506_v50  ;;  %504 = vmax.xlane.f32.xlu0 %v503_v51  ;;  %v536_v50 = vsel %vm274_vm0, %v105_v38, -inf  ;;  %v533_v51 = vsel %vm274_vm0, %v104_v39, -inf  ;;  %v554_v38 = vsel %vm274_vm0, %v111_v18, -inf  ;;  %v551_v39 = vsel %vm274_vm0, %v110_v19, -inf }
  0x9c   :  { %v4960_v56 = vpop.xlane.xlu1 %297  ;;  %v4962_v57 = vpop.xlane.xlu0 %294 }
  0x9f   :  { %513 = vmax.xlane.f32.xlu1 %v512_v58  ;;  %510 = vmax.xlane.f32.xlu0 %v509_v59 }
  0xa0   :  { %v4972_v62 = vpop.xlane.xlu1 %303  ;;  %v4974_v63 = vpop.xlane.xlu0 %300 }
  0xa3   :  { %519 = vmax.xlane.f32.xlu1 %v518_v3  ;;  %516 = vmax.xlane.f32.xlu0 %v515_v4  ;;  %v109_v3 = vld [vmem:[%s8509_s0 + $0x2d8] sm:$0xff]  ;;  %v108_v4 = vld [vmem:[%s8509_s0 + $0x2d0] sm:$0xff] }
  0xa4   :  { %v4984_v10 = vpop.xlane.xlu1 %309  ;;  %v4986_v11 = vpop.xlane.xlu0 %306 }
  0xa7   :  { %525 = vmax.xlane.f32.xlu1 %v524_v14  ;;  %522 = vmax.xlane.f32.xlu0 %v521_v15  ;;  %v548_v14 = vsel %vm274_vm0, %v109_v3, -inf  ;;  %v545_v15 = vsel %vm274_vm0, %v108_v4, -inf  ;;  %v115_v3 = vld [vmem:[%s8509_s0 + $0x308] sm:$0xff]  ;;  %v114_v4 = vld [vmem:[%s8509_s0 + $0x300] sm:$0xff] }
  0xa8   :  { %v4996_v26 = vpop.xlane.xlu1 %315  ;;  %v4998_v27 = vpop.xlane.xlu0 %312  ;;  %v566_v18 = vsel %vm274_vm0, %v115_v3, -inf  ;;  %v563_v19 = vsel %vm274_vm0, %v114_v4, -inf  ;;  %v119_v3 = vld [vmem:[%s8509_s0 + $0x328] sm:$0xff]  ;;  %v118_v4 = vld [vmem:[%s8509_s0 + $0x320] sm:$0xff] }
  0xa9   :  { %v578_v53 = vsel %vm274_vm0, %v119_v3, -inf }
  0xab   :  { %531 = vmax.xlane.f32.xlu1 %v530_v30  ;;  %528 = vmax.xlane.f32.xlu0 %v527_v31 }
  0xac   :  { %v5008_v42 = vpop.xlane.xlu1 %321  ;;  %v5010_v43 = vpop.xlane.xlu0 %318 }
  0xaf   :  { %537 = vmax.xlane.f32.xlu1 %v536_v50  ;;  %534 = vmax.xlane.f32.xlu0 %v533_v51  ;;  %v113_v50 = vld [vmem:[%s8509_s0 + $0x2f8] sm:$0xff]  ;;  %v112_v51 = vld [vmem:[%s8509_s0 + $0x2f0] sm:$0xff] }
  0xb0   :  { %v5020_v58 = vpop.xlane.xlu1 %327  ;;  %v5022_v59 = vpop.xlane.xlu0 %324 }
  0xb3   :  { %543 = vmax.xlane.f32.xlu1 %v542_v60  ;;  %540 = vmax.xlane.f32.xlu0 %v539_v61  ;;  %v560_v60 = vsel %vm274_vm0, %v113_v50, -inf  ;;  %v557_v61 = vsel %vm274_vm0, %v112_v51, -inf }
  0xb4   :  { %v5032_v6 = vpop.xlane.xlu1 %333  ;;  %v5034_v7 = vpop.xlane.xlu0 %330 }
  0xb7   :  { %549 = vmax.xlane.f32.xlu1 %v548_v14  ;;  %546 = vmax.xlane.f32.xlu0 %v545_v15 }
  0xb8   :  { %v5044_v30 = vpop.xlane.xlu1 %339  ;;  %v5046_v31 = vpop.xlane.xlu0 %336 }
  0xbb   :  { %555 = vmax.xlane.f32.xlu1 %v554_v38  ;;  %552 = vmax.xlane.f32.xlu0 %v551_v39  ;;  %v117_v38 = vld [vmem:[%s8509_s0 + $0x318] sm:$0xff]  ;;  %v116_v39 = vld [vmem:[%s8509_s0 + $0x310] sm:$0xff] }
  0xbc   :  { %v5056_v54 = vpop.xlane.xlu1 %345  ;;  %v5058_v55 = vpop.xlane.xlu0 %342 }
  0xbf   :  { %561 = vmax.xlane.f32.xlu1 %v560_v60  ;;  %558 = vmax.xlane.f32.xlu0 %v557_v61  ;;  %v572_v60 = vsel %vm274_vm0, %v117_v38, -inf  ;;  %v569_v61 = vsel %vm274_vm0, %v116_v39, -inf  ;;  %v575_v38 = vsel %vm274_vm0, %v118_v4, -inf  ;;  %v121_v39 = vld [vmem:[%s8509_s0 + $0x338] sm:$0xff]  ;;  %v123_v4 = vld [vmem:[%s8509_s0 + $0x348] sm:$0xff] }
  0xc0   :  { %v5068_v14 = vpop.xlane.xlu1 %351  ;;  %v5070_v15 = vpop.xlane.xlu0 %348 }
  0xc3   :  { %567 = vmax.xlane.f32.xlu1 %v566_v18  ;;  %564 = vmax.xlane.f32.xlu0 %v563_v19 }
  0xc4   :  { %v5080_v50 = vpop.xlane.xlu1 %357  ;;  %v5082_v51 = vpop.xlane.xlu0 %354 }
  0xc5   :  { %8639 = vst [vmem:[#allocation6_spill] sm:$0xff] %v5082_v51  ;;  %v120_v51 = vld [vmem:[%s8509_s0 + $0x330] sm:$0xff] }
  0xc6   :  { %v581_v3 = vsel %vm274_vm0, %v120_v51, -inf  ;;  %v125_v51 = vld [vmem:[%s8509_s0 + $0x358] sm:$0xff] }
  0xc7   :  { %573 = vmax.xlane.f32.xlu1 %v572_v60  ;;  %570 = vmax.xlane.f32.xlu0 %v569_v61 }
  0xc8   :  { %v5092_v18 = vpop.xlane.xlu1 %363  ;;  %v5094_v19 = vpop.xlane.xlu0 %360 }
  0xc9   :  { %8640 = vst [vmem:[#allocation7_spill] sm:$0xff] %v5092_v18  ;;  %8641 = vst [vmem:[#allocation8_spill] sm:$0xff] %v5094_v19  ;;  %v584_v19 = vsel %vm274_vm0, %v121_v39, -inf  ;;  %v122_v18 = vld [vmem:[%s8509_s0 + $0x340] sm:$0xff] }
  0xca   :  { %v587_v39 = vsel %vm274_vm0, %v122_v18, -inf  ;;  %v127_v18 = vld [vmem:[%s8509_s0 + $0x368] sm:$0xff] }
  0xcb   :  { %579 = vmax.xlane.f32.xlu1 %v578_v53  ;;  %576 = vmax.xlane.f32.xlu0 %v575_v38 }
  0xcc   :  { %v5104_v60 = vpop.xlane.xlu1 %369  ;;  %v5106_v61 = vpop.xlane.xlu0 %366 }
  0xcd   :  { %8642 = vst [vmem:[#allocation9_spill] sm:$0xff] %v5104_v60  ;;  %8643 = vst [vmem:[#allocation10_spill] sm:$0xff] %v5106_v61  ;;  %v590_v61 = vsel %vm274_vm0, %v123_v4, -inf  ;;  %v124_v60 = vld [vmem:[%s8509_s0 + $0x350] sm:$0xff] }
  0xce   :  { %v593_v4 = vsel %vm274_vm0, %v124_v60, -inf  ;;  %v129_v60 = vld [vmem:[%s8509_s0 + $0x378] sm:$0xff] }
  0xcf   :  { %585 = vmax.xlane.f32.xlu1 %v584_v19  ;;  %582 = vmax.xlane.f32.xlu0 %v581_v3 }
  0xd0   :  { %v5116_v53 = vpop.xlane.xlu1 %375  ;;  %v5118_v38 = vpop.xlane.xlu0 %372 }
  0xd1   :  { %8644 = vst [vmem:[#allocation11_spill] sm:$0xff] %v5116_v53  ;;  %8645 = vst [vmem:[#allocation12_spill] sm:$0xff] %v5118_v38  ;;  %v596_v38 = vsel %vm274_vm0, %v125_v51, -inf  ;;  %v126_v53 = vld [vmem:[%s8509_s0 + $0x360] sm:$0xff] }
  0xd2   :  { %v599_v51 = vsel %vm274_vm0, %v126_v53, -inf  ;;  %v131_v53 = vld [vmem:[%s8509_s0 + $0x388] sm:$0xff] }
  0xd3   :  { %591 = vmax.xlane.f32.xlu1 %v590_v61  ;;  %588 = vmax.xlane.f32.xlu0 %v587_v39 }
  0xd4   :  { %v5128_v19 = vpop.xlane.xlu1 %381  ;;  %v5130_v3 = vpop.xlane.xlu0 %378 }
  0xd5   :  { %8646 = vst [vmem:[#allocation13_spill] sm:$0xff] %v5128_v19  ;;  %8647 = vst [vmem:[#allocation14_spill] sm:$0xff] %v5130_v3  ;;  %v602_v3 = vsel %vm274_vm0, %v127_v18, -inf  ;;  %v128_v19 = vld [vmem:[%s8509_s0 + $0x370] sm:$0xff] }
  0xd6   :  { %v605_v18 = vsel %vm274_vm0, %v128_v19, -inf  ;;  %v133_v19 = vld [vmem:[%s8509_s0 + $0x398] sm:$0xff] }
  0xd7   :  { %597 = vmax.xlane.f32.xlu1 %v596_v38  ;;  %594 = vmax.xlane.f32.xlu0 %v593_v4 }
  0xd8   :  { %v5140_v61 = vpop.xlane.xlu1 %387  ;;  %v5142_v39 = vpop.xlane.xlu0 %384 }
  0xd9   :  { %8648 = vst [vmem:[#allocation15_spill] sm:$0xff] %v5140_v61  ;;  %8649 = vst [vmem:[#allocation16_spill] sm:$0xff] %v5142_v39  ;;  %v608_v39 = vsel %vm274_vm0, %v129_v60, -inf  ;;  %v130_v61 = vld [vmem:[%s8509_s0 + $0x380] sm:$0xff] }
  0xda   :  { %v611_v60 = vsel %vm274_vm0, %v130_v61, -inf  ;;  %v135_v61 = vld [vmem:[%s8509_s0 + $0x3a8] sm:$0xff] }
  0xdb   :  { %603 = vmax.xlane.f32.xlu1 %v602_v3  ;;  %600 = vmax.xlane.f32.xlu0 %v599_v51 }
  0xdc   :  { %v5152_v38 = vpop.xlane.xlu1 %393  ;;  %v5154_v4 = vpop.xlane.xlu0 %390 }
  0xdd   :  { %8650 = vst [vmem:[#allocation17_spill] sm:$0xff] %v5152_v38  ;;  %8651 = vst [vmem:[#allocation18_spill] sm:$0xff] %v5154_v4  ;;  %v614_v4 = vsel %vm274_vm0, %v131_v53, -inf  ;;  %v132_v38 = vld [vmem:[%s8509_s0 + $0x390] sm:$0xff] }
  0xde   :  { %v617_v53 = vsel %vm274_vm0, %v132_v38, -inf  ;;  %v137_v38 = vld [vmem:[%s8509_s0 + $0x3b8] sm:$0xff] }
  0xdf   :  { %609 = vmax.xlane.f32.xlu1 %v608_v39  ;;  %606 = vmax.xlane.f32.xlu0 %v605_v18 }
  0xe0   :  { %v5164_v3 = vpop.xlane.xlu1 %399  ;;  %v5166_v51 = vpop.xlane.xlu0 %396 }
  0xe1   :  { %8652 = vst [vmem:[#allocation19_spill] sm:$0xff] %v5164_v3  ;;  %8653 = vst [vmem:[#allocation20_spill] sm:$0xff] %v5166_v51  ;;  %v620_v51 = vsel %vm274_vm0, %v133_v19, -inf  ;;  %v134_v3 = vld [vmem:[%s8509_s0 + $0x3a0] sm:$0xff] }
  0xe2   :  { %v623_v19 = vsel %vm274_vm0, %v134_v3, -inf  ;;  %v632_v3 = vsel %vm274_vm0, %v137_v38, -inf }
  0xe3   :  { %615 = vmax.xlane.f32.xlu1 %v614_v4  ;;  %612 = vmax.xlane.f32.xlu0 %v611_v60 }
  0xe4   :  { %v5176_v39 = vpop.xlane.xlu1 %405  ;;  %v5178_v18 = vpop.xlane.xlu0 %402 }
  0xe5   :  { %8654 = vst [vmem:[#allocation21_spill] sm:$0xff] %v5176_v39  ;;  %8655 = vst [vmem:[#allocation22_spill] sm:$0xff] %v5178_v18  ;;  %v626_v18 = vsel %vm274_vm0, %v135_v61, -inf  ;;  %v136_v39 = vld [vmem:[%s8509_s0 + $0x3b0] sm:$0xff] }
  0xe6   :  { %v629_v61 = vsel %vm274_vm0, %v136_v39, -inf }
  0xe7   :  { %621 = vmax.xlane.f32.xlu1 %v620_v51  ;;  %618 = vmax.xlane.f32.xlu0 %v617_v53  ;;  %v5202_v51 = vsub.f32 %v4554_v1, %v4926_v23  ;;  %v138_v1 = vld [vmem:[%s8509_s0 + $0x3c0] sm:$0xff]  ;;  %v5222_v23 = vsub.f32 %v4549_v0, %v4924_v22  ;;  %v140_v22 = vld [vmem:[%s8509_s0 + $0x3d0] sm:$0xff] }
  0xe8   :  { %v5188_v4 = vpop.xlane.xlu1 %411  ;;  %v5190_v60 = vpop.xlane.xlu0 %408  ;;  %v635_v38 = vsel %vm274_vm0, %v138_v1, -inf  ;;  %v5246_v1 = vsub.f32 %v4577_v8, %v4948_v46  ;;  %v142_v8 = vld [vmem:[%s8509_s0 + $0x3e0] sm:$0xff] }
  0xe9   :  { %8656 = vst [vmem:[#allocation23_spill] sm:$0xff] %v5188_v4  ;;  %8657 = vst [vmem:[#allocation24_spill] sm:$0xff] %v5190_v60  ;;  %v5212_v4 = vsub.f32 %v4568_v5, %v4938_v35  ;;  %v787_v39 = vmul.f32 1.442695, %v5202_v51 }
  0xea   :  { %8658 = vst [vmem:[#allocation25_spill] sm:$0xff] %v5202_v51  ;;  %8661 = vst [vmem:[#allocation28_spill] sm:$0xff] %v5246_v1 }
  0xeb   :  { %627 = vmax.xlane.f32.xlu1 %v626_v18  ;;  %624 = vmax.xlane.f32.xlu0 %v623_v19  ;;  %v139_v18 = vld [vmem:[%s8509_s0 + $0x3c8] sm:$0xff]  ;;  %v789_v0 = vmul.f32 1.442695, %v5212_v4  ;;  %3774 = vpow2.f32 %v787_v39  ;;  %v797_v39 = vmul.f32 1.442695, %v5246_v1 }
  0xec   :  { %v5204_v53 = vpop.xlane.xlu1 %417  ;;  %v5206_v60 = vpop.xlane.xlu0 %414  ;;  %v638_v35 = vsel %vm274_vm0, %v139_v18, -inf  ;;  %v791_v18 = vmul.f32 1.442695, %v5222_v23 }
  0xed   :  { %8659 = vst [vmem:[#allocation26_spill] sm:$0xff] %v5206_v60  ;;  %v141_v60 = vld [vmem:[%s8509_s0 + $0x3d8] sm:$0xff]  ;;  %3776 = vpow2.f32 %v789_v0 }
  0xee   :  { %3778 = vpow2.f32 %v791_v18  ;;  %v5281_v18 = vsub.f32 %v4596_v13, %v4962_v57 }
  0xef   :  { %633 = vmax.xlane.f32.xlu1 %v632_v3  ;;  %630 = vmax.xlane.f32.xlu0 %v629_v61  ;;  %v5236_v3 = vsub.f32 %v4559_v2, %v4936_v34  ;;  %v644_v61 = vsel %vm274_vm0, %v141_v60, -inf  ;;  %v641_v34 = vsel %vm274_vm0, %v140_v22, -inf  ;;  %v5259_v60 = vsub.f32 %v4582_v9, %v4950_v47  ;;  %v145_v47 = vld [vmem:[%s8509_s0 + $0x3f8] sm:$0xff] }
  0xf0   :  { %v5225_v19 = vpop.xlane.xlu1 %423  ;;  %v5227_v5 = vpop.xlane.xlu0 %420  ;;  %v5268_v22 = vsub.f32 %v4591_v12, %v4960_v56  ;;  %v647_v9 = vsel %vm274_vm0, %v142_v8, -inf  ;;  %8663 = vst [vmem:[#allocation30_spill] sm:$0xff] %v5281_v18  ;;  %v144_v12 = vld [vmem:[%s8509_s0 + $0x3f0] sm:$0xff]  ;;  %v656_v56 = vsel %vm274_vm0, %v145_v47, -inf  ;;  %v799_v57 = vmul.f32 1.442695, %v5281_v18 }
  0xf1   :  { %8660 = vst [vmem:[#allocation27_spill] sm:$0xff] %v5236_v3  ;;  %v653_v13 = vsel %vm274_vm0, %v144_v12, -inf }
  0xf2   :  { %8662 = vst [vmem:[#allocation29_spill] sm:$0xff] %v5268_v22 }
  0xf3   :  { %639 = vmax.xlane.f32.xlu1 %v638_v35  ;;  %636 = vmax.xlane.f32.xlu0 %v635_v38  ;;  %v143_v35 = vld [vmem:[%s8509_s0 + $0x3e8] sm:$0xff]  ;;  %v793_v38 = vmul.f32 1.442695, %v5236_v3 }
  0xf4   :  { %v5248_v51 = vpop.xlane.xlu1 %429  ;;  %v5250_v2 = vpop.xlane.xlu0 %426  ;;  %v650_v46 = vsel %vm274_vm0, %v143_v35, -inf  ;;  %v5290_v35 = vsub.f32 %v4605_v16, %v4972_v62  ;;  %v5305_v62 = vsub.f32 %v4619_v20, %v4984_v10  ;;  %v5321_v10 = vsub.f32 %v4633_v24, %v4996_v26 }
  0xf5   :  { %3780 = vpow2.f32 %v793_v38  ;;  %v5337_v26 = vsub.f32 %v4647_v28, %v5008_v42  ;;  %v5353_v42 = vsub.f32 %v4661_v32, %v5020_v58  ;;  %v5369_v58 = vsub.f32 %v4675_v36, %v5032_v6 }
  0xf6   :  { %3782 = vpow2.f32 %v797_v39  ;;  %8664 = vst [vmem:[#allocation31_spill] sm:$0xff] %v5290_v35  ;;  %v3775_v39 = vpop.eup %3774  ;;  %v805_v16 = vmul.f32 1.442695, %v5290_v35  ;;  %8666 = vst [vmem:[#allocation33_spill] sm:$0xff] %v5305_v62  ;;  %v809_v20 = vmul.f32 1.442695, %v5305_v62  ;;  %v5385_v6 = vsub.f32 %v4689_v40, %v5044_v30 }
  0xf7   :  { %645 = vmax.xlane.f32.xlu1 %v644_v61  ;;  %642 = vmax.xlane.f32.xlu0 %v641_v34  ;;  %v795_v61 = vmul.f32 1.442695, %v5259_v60  ;;  %v801_v34 = vmul.f32 1.442695, %v5268_v22  ;;  %8668 = vst [vmem:[#allocation35_spill] sm:$0xff] %v5321_v10  ;;  %8670 = vst [vmem:[#allocation37_spill] sm:$0xff] %v5337_v26  ;;  %v5401_v30 = vsub.f32 %v4703_v44, %v5056_v54 }
  0xf8   :  { %v5270_v0 = vpop.xlane.xlu1 %435  ;;  %v5272_v3 = vpop.xlane.xlu0 %432  ;;  %v813_v24 = vmul.f32 1.442695, %v5321_v10  ;;  %v817_v28 = vmul.f32 1.442695, %v5337_v26  ;;  %8672 = vst [vmem:[#allocation39_spill] sm:$0xff] %v5353_v42  ;;  %8674 = vst [vmem:[#allocation41_spill] sm:$0xff] %v5369_v58  ;;  %v5417_v54 = vsub.f32 %v4717_v48, %v5068_v14  ;;  %v5433_v14 = vsub.f32 %v4731_v52, %v5080_v50 }
  0xf9   :  { %3784 = vpow2.f32 %v795_v61  ;;  %v821_v32 = vmul.f32 1.442695, %v5353_v42  ;;  %v825_v36 = vmul.f32 1.442695, %v5369_v58  ;;  %8676 = vst [vmem:[#allocation43_spill] sm:$0xff] %v5385_v6  ;;  %8678 = vst [vmem:[#allocation45_spill] sm:$0xff] %v5401_v30 }
  0xfa   :  { %3786 = vpow2.f32 %v801_v34  ;;  %v1043_v34 = vsel %vm274_vm0, %v3775_v39, 0.0  ;;  %v829_v40 = vmul.f32 1.442695, %v5385_v6  ;;  %v833_v44 = vmul.f32 1.442695, %v5401_v30  ;;  %8680 = vst [vmem:[#allocation47_spill] sm:$0xff] %v5417_v54 }
  0xfb   :  { %651 = vmax.xlane.f32.xlu1 %v650_v46  ;;  %648 = vmax.xlane.f32.xlu0 %v647_v9  ;;  %v5300_v46 = vsub.f32 %v4610_v17, %v4974_v63  ;;  %v3777_v9 = vpop.eup %3776  ;;  %3788 = vpow2.f32 %v799_v57  ;;  %v5314_v17 = vsub.f32 %v4624_v21, %v4986_v11  ;;  %v5330_v11 = vsub.f32 %v4638_v25, %v4998_v27  ;;  %v4286_v50 = vld [vmem:[%s8509_s0 + $0xe8] sm:$0xff]  ;;  %v8718_v35 = vld [vmem:[#allocation23_spill] sm:$0xff] }
  0xfc   :  { %v5292_v38 = vpop.xlane.xlu1 %441  ;;  %v5294_v8 = vpop.xlane.xlu0 %438  ;;  %3790 = vpow2.f32 %v805_v16  ;;  %v5346_v27 = vsub.f32 %v4652_v29, %v5010_v43  ;;  %v5362_v43 = vsub.f32 %v4666_v33, %v5022_v59  ;;  %v5378_v59 = vsub.f32 %v4680_v37, %v5034_v7  ;;  %8682 = vst [vmem:[#allocation49_spill] sm:$0xff] %v5433_v14 }
  0xfd   :  { %8665 = vst [vmem:[#allocation32_spill] sm:$0xff] %v5300_v46  ;;  %v803_v12 = vmul.f32 1.442695, %v5300_v46  ;;  %8667 = vst [vmem:[#allocation34_spill] sm:$0xff] %v5314_v17  ;;  %v3779_v63 = vpop.eup %3778  ;;  %v807_v21 = vmul.f32 1.442695, %v5314_v17  ;;  %v5394_v7 = vsub.f32 %v4694_v41, %v5046_v31  ;;  %v5410_v31 = vsub.f32 %v4708_v45, %v5058_v55 }
  0xfe   :  { %8669 = vst [vmem:[#allocation36_spill] sm:$0xff] %v5330_v11  ;;  %v1049_v16 = vsel %vm274_vm0, %v3779_v63, 0.0  ;;  %v811_v25 = vmul.f32 1.442695, %v5330_v11  ;;  %8671 = vst [vmem:[#allocation38_spill] sm:$0xff] %v5346_v27  ;;  %v5426_v55 = vsub.f32 %v4722_v49, %v5070_v15  ;;  %v8683_v15 = vld [vmem:[#allocation6_spill] sm:$0xff] }
  0xff   :  { %657 = vmax.xlane.f32.xlu1 %v656_v56  ;;  %654 = vmax.xlane.f32.xlu0 %v653_v13  ;;  %v1046_v56 = vsel %vm274_vm0, %v3777_v9, 0.0  ;;  %v3781_v13 = vpop.eup %3780  ;;  %3792 = vpow2.f32 %v803_v12  ;;  %v815_v29 = vmul.f32 1.442695, %v5346_v27  ;;  %8673 = vst [vmem:[#allocation40_spill] sm:$0xff] %v5362_v43  ;;  %v819_v33 = vmul.f32 1.442695, %v5362_v43 }
 0x100   :  { %v5307_v47 = vpop.xlane.xlu1 %447  ;;  %v5309_v61 = vpop.xlane.xlu0 %444  ;;  %v1052_v9 = vsel %vm274_vm0, %v3781_v13, 0.0  ;;  %3794 = vpow2.f32 %v809_v20  ;;  %8675 = vst [vmem:[#allocation42_spill] sm:$0xff] %v5378_v59  ;;  %v823_v37 = vmul.f32 1.442695, %v5378_v59  ;;  %8677 = vst [vmem:[#allocation44_spill] sm:$0xff] %v5394_v7  ;;  %v8698_v59 = vld [vmem:[#allocation13_spill] sm:$0xff] }
 0x101   :  { %v3783_v39 = vpop.eup %3782  ;;  %3796 = vpow2.f32 %v807_v21  ;;  %v827_v41 = vmul.f32 1.442695, %v5394_v7  ;;  %8679 = vst [vmem:[#allocation46_spill] sm:$0xff] %v5410_v31  ;;  %v831_v45 = vmul.f32 1.442695, %v5410_v31  ;;  %8681 = vst [vmem:[#allocation48_spill] sm:$0xff] %v5426_v55 }
 0x102   :  { %v1058_v13 = vsel %vm274_vm0, %v3783_v39, 0.0  ;;  %3798 = vpow2.f32 %v813_v24  ;;  %v837_v48 = vmul.f32 1.442695, %v5417_v54  ;;  %v835_v49 = vmul.f32 1.442695, %v5426_v55  ;;  %v8690_v31 = vld [vmem:[#allocation9_spill] sm:$0xff] }
 0x103   :  { %1047 = vadd.xlane.f32.xlu1 %v1046_v56  ;;  %1044 = vadd.xlane.f32.xlu0 %v1043_v34  ;;  %v3785_v56 = vpop.eup %3784  ;;  %3800 = vpow2.f32 %v811_v25  ;;  %v841_v52 = vmul.f32 1.442695, %v5433_v14  ;;  %v8694_v7 = vld [vmem:[#allocation11_spill] sm:$0xff]  ;;  %v8706_v27 = vld [vmem:[#allocation17_spill] sm:$0xff] }
 0x104   :  { %v5323_v57 = vpop.xlane.xlu1 %453  ;;  %v5325_v46 = vpop.xlane.xlu0 %450  ;;  %v1055_v20 = vsel %vm274_vm0, %v3785_v56, 0.0  ;;  %3802 = vpow2.f32 %v817_v28  ;;  %v8702_v43 = vld [vmem:[#allocation15_spill] sm:$0xff]  ;;  %v8714_v17 = vld [vmem:[#allocation21_spill] sm:$0xff] }
 0x105   :  { %v3787_v63 = vpop.eup %3786  ;;  %3804 = vpow2.f32 %v815_v29  ;;  %v8710_v11 = vld [vmem:[#allocation19_spill] sm:$0xff] }
 0x106   :  { %v1064_v56 = vsel %vm274_vm0, %v3787_v63, 0.0  ;;  %3806 = vpow2.f32 %v821_v32 }
 0x107   :  { %1053 = vadd.xlane.f32.xlu1 %v1052_v9  ;;  %1050 = vadd.xlane.f32.xlu0 %v1049_v16  ;;  %v3789_v9 = vpop.eup %3788  ;;  %3808 = vpow2.f32 %v819_v33 }
 0x108   :  { %v5339_v12 = vpop.xlane.xlu1 %459  ;;  %v5341_v34 = vpop.xlane.xlu0 %456  ;;  %v1061_v24 = vsel %vm274_vm0, %v3789_v9, 0.0  ;;  %3810 = vpow2.f32 %v825_v36 }
 0x109   :  { %v3791_v39 = vpop.eup %3790  ;;  %3812 = vpow2.f32 %v823_v37 }
 0x10a   :  { %v1070_v9 = vsel %vm274_vm0, %v3791_v39, 0.0  ;;  %3814 = vpow2.f32 %v829_v40 }
 0x10b   :  { %1059 = vadd.xlane.f32.xlu1 %v1058_v13  ;;  %1056 = vadd.xlane.f32.xlu0 %v1055_v20  ;;  %v3793_v13 = vpop.eup %3792  ;;  %3816 = vpow2.f32 %v827_v41 }
 0x10c   :  { %v5355_v21 = vpop.xlane.xlu1 %465  ;;  %v5357_v16 = vpop.xlane.xlu0 %462  ;;  %v1067_v28 = vsel %vm274_vm0, %v3793_v13, 0.0  ;;  %3818 = vpow2.f32 %v833_v44 }
 0x10d   :  { %v3795_v63 = vpop.eup %3794  ;;  %3820 = vpow2.f32 %v831_v45  ;;  %v8686_v45 = vld [vmem:[#allocation7_spill] sm:$0xff] }
 0x10e   :  { %v1076_v13 = vsel %vm274_vm0, %v3795_v63, 0.0  ;;  %3822 = vpow2.f32 %v837_v48  ;;  %v5451_v55 = vsub.f32 %v4286_v50, %v8686_v45  ;;  %v8688_v48 = vld [vmem:[#allocation8_spill] sm:$0xff] }
 0x10f   :  { %1065 = vadd.xlane.f32.xlu1 %v1064_v56  ;;  %1062 = vadd.xlane.f32.xlu0 %v1061_v24  ;;  %v3797_v56 = vpop.eup %3796  ;;  %3824 = vpow2.f32 %v835_v49 }
 0x110   :  { %v5371_v25 = vpop.xlane.xlu1 %471  ;;  %v5373_v20 = vpop.xlane.xlu0 %468  ;;  %v1073_v32 = vsel %vm274_vm0, %v3797_v56, 0.0  ;;  %3826 = vpow2.f32 %v841_v52  ;;  %v845_v49 = vmul.f32 1.442695, %v5451_v55 }
 0x111   :  { %v3799_v39 = vpop.eup %3798 }
 0x112   :  { %v1082_v56 = vsel %vm274_vm0, %v3799_v39, 0.0 }
 0x113   :  { %1071 = vadd.xlane.f32.xlu1 %v1070_v9  ;;  %1068 = vadd.xlane.f32.xlu0 %v1067_v28  ;;  %v3801_v9 = vpop.eup %3800 }
 0x114   :  { %v5387_v29 = vpop.xlane.xlu1 %477  ;;  %v5389_v24 = vpop.xlane.xlu0 %474  ;;  %v1079_v36 = vsel %vm274_vm0, %v3801_v9, 0.0 }
 0x115   :  { %v3803_v63 = vpop.eup %3802 }
 0x116   :  { %v1088_v9 = vsel %vm274_vm0, %v3803_v63, 0.0  ;;  %v8684_v63 = vld [vmem:[#allocation5_spill] sm:$0xff] }
 0x117   :  { %1077 = vadd.xlane.f32.xlu1 %v1076_v13  ;;  %1074 = vadd.xlane.f32.xlu0 %v1073_v32  ;;  %v3805_v13 = vpop.eup %3804  ;;  %8687 = vst [vmem:[#allocation5_spill] sm:$0xff] %v5451_v55 }
 0x118   :  { %v5403_v33 = vpop.xlane.xlu1 %483  ;;  %v5405_v28 = vpop.xlane.xlu0 %480  ;;  %v1085_v40 = vsel %vm274_vm0, %v3805_v13, 0.0  ;;  %v5442_v13 = vsub.f32 %v8684_v63, %v8683_v15 }
 0x119   :  { %v3807_v39 = vpop.eup %3806 }
 0x11a   :  { %8685 = vst [vmem:[#allocation6_spill] sm:$0xff] %v5442_v13  ;;  %v1094_v44 = vsel %vm274_vm0, %v3807_v39, 0.0  ;;  %v839_v39 = vmul.f32 1.442695, %v5442_v13  ;;  %v4288_v13 = vld [vmem:[%s8509_s0 + $0xf8] sm:$0xff] }
 0x11b   :  { %1083 = vadd.xlane.f32.xlu1 %v1082_v56  ;;  %1080 = vadd.xlane.f32.xlu0 %v1079_v36  ;;  %v3809_v56 = vpop.eup %3808  ;;  %v5471_v30 = vsub.f32 %v4288_v13, %v8690_v31 }
 0x11c   :  { %v5419_v37 = vpop.xlane.xlu1 %489  ;;  %v5421_v32 = vpop.xlane.xlu0 %486  ;;  %3828 = vpow2.f32 %v839_v39 }
 0x11d   :  { %8691 = vst [vmem:[#allocation8_spill] sm:$0xff] %v5471_v30  ;;  %3830 = vpow2.f32 %v845_v49  ;;  %v849_v39 = vmul.f32 1.442695, %v5471_v30 }
 0x11f   :  { %1089 = vadd.xlane.f32.xlu1 %v1088_v9  ;;  %1086 = vadd.xlane.f32.xlu0 %v1085_v40  ;;  %v3811_v9 = vpop.eup %3810  ;;  %v1091_v40 = vsel %vm274_vm0, %v3809_v56, 0.0  ;;  %v4287_v56 = vld [vmem:[%s8509_s0 + $0xe0] sm:$0xff] }
 0x120   :  { %v5435_v41 = vpop.xlane.xlu1 %495  ;;  %v5437_v36 = vpop.xlane.xlu0 %492  ;;  %v1100_v14 = vsel %vm274_vm0, %v3811_v9, 0.0  ;;  %v8692_v9 = vld [vmem:[#allocation10_spill] sm:$0xff] }
 0x121   :  { %v3813_v54 = vpop.eup %3812 }
 0x122   :  { %v1097_v50 = vsel %vm274_vm0, %v3813_v54, 0.0 }
 0x123   :  { %1095 = vadd.xlane.f32.xlu1 %v1094_v44  ;;  %1092 = vadd.xlane.f32.xlu0 %v1091_v40  ;;  %v5462_v44 = vsub.f32 %v4287_v56, %v8688_v48  ;;  %v3815_v40 = vpop.eup %3814 }
 0x124   :  { %v5453_v15 = vpop.xlane.xlu1 %501  ;;  %v5455_v63 = vpop.xlane.xlu0 %498  ;;  %v1106_v55 = vsel %vm274_vm0, %v3815_v40, 0.0 }
 0x125   :  { %8689 = vst [vmem:[#allocation7_spill] sm:$0xff] %v5462_v44  ;;  %v3817_v45 = vpop.eup %3816  ;;  %v843_v54 = vmul.f32 1.442695, %v5462_v44  ;;  %v4290_v44 = vld [vmem:[%s8509_s0 + $0x108] sm:$0xff] }
 0x126   :  { %v1103_v31 = vsel %vm274_vm0, %v3817_v45, 0.0  ;;  %v5491_v6 = vsub.f32 %v4290_v44, %v8694_v7  ;;  %v8696_v45 = vld [vmem:[#allocation12_spill] sm:$0xff] }
 0x127   :  { %1101 = vadd.xlane.f32.xlu1 %v1100_v14  ;;  %1098 = vadd.xlane.f32.xlu0 %v1097_v50  ;;  %v4289_v14 = vld [vmem:[%s8509_s0 + $0xf0] sm:$0xff]  ;;  %v3819_v50 = vpop.eup %3818  ;;  %3832 = vpow2.f32 %v843_v54 }
 0x128   :  { %v5473_v56 = vpop.xlane.xlu1 %507  ;;  %v5475_v48 = vpop.xlane.xlu0 %504  ;;  %v5482_v52 = vsub.f32 %v4289_v14, %v8692_v9  ;;  %8695 = vst [vmem:[#allocation10_spill] sm:$0xff] %v5491_v6  ;;  %v1112_v30 = vsel %vm274_vm0, %v3819_v50, 0.0  ;;  %3834 = vpow2.f32 %v849_v39  ;;  %v853_v54 = vmul.f32 1.442695, %v5491_v6 }
 0x129   :  { %v3821_v13 = vpop.eup %3820 }
 0x12a   :  { %8693 = vst [vmem:[#allocation9_spill] sm:$0xff] %v5482_v52  ;;  %v847_v40 = vmul.f32 1.442695, %v5482_v52  ;;  %v1109_v7 = vsel %vm274_vm0, %v3821_v13, 0.0  ;;  %v4292_v52 = vld [vmem:[%s8509_s0 + $0x118] sm:$0xff]  ;;  %v8700_v13 = vld [vmem:[#allocation14_spill] sm:$0xff] }
 0x12b   :  { %1107 = vadd.xlane.f32.xlu1 %v1106_v55  ;;  %1104 = vadd.xlane.f32.xlu0 %v1103_v31  ;;  %v4291_v55 = vld [vmem:[%s8509_s0 + $0x100] sm:$0xff]  ;;  %v3823_v31 = vpop.eup %3822  ;;  %v5511_v58 = vsub.f32 %v4292_v52, %v8698_v59 }
 0x12c   :  { %v5493_v14 = vpop.xlane.xlu1 %513  ;;  %v5495_v9 = vpop.xlane.xlu0 %510  ;;  %v5502_v49 = vsub.f32 %v4291_v55, %v8696_v45  ;;  %3836 = vpow2.f32 %v847_v40  ;;  %v1118_v6 = vsel %vm274_vm0, %v3823_v31, 0.0 }
 0x12d   :  { %v3825_v44 = vpop.eup %3824  ;;  %8699 = vst [vmem:[#allocation12_spill] sm:$0xff] %v5511_v58  ;;  %3838 = vpow2.f32 %v853_v54  ;;  %v857_v40 = vmul.f32 1.442695, %v5511_v58 }
 0x12e   :  { %8697 = vst [vmem:[#allocation11_spill] sm:$0xff] %v5502_v49  ;;  %v851_v50 = vmul.f32 1.442695, %v5502_v49  ;;  %v1115_v59 = vsel %vm274_vm0, %v3825_v44, 0.0  ;;  %v4294_v49 = vld [vmem:[%s8509_s0 + $0x128] sm:$0xff]  ;;  %v8704_v44 = vld [vmem:[#allocation16_spill] sm:$0xff] }
 0x12f   :  { %1113 = vadd.xlane.f32.xlu1 %v1112_v30  ;;  %1110 = vadd.xlane.f32.xlu0 %v1109_v7  ;;  %v4293_v30 = vld [vmem:[%s8509_s0 + $0x110] sm:$0xff]  ;;  %v3827_v7 = vpop.eup %3826  ;;  %v5531_v42 = vsub.f32 %v4294_v49, %v8702_v43 }
 0x130   :  { %v5513_v55 = vpop.xlane.xlu1 %519  ;;  %v5515_v45 = vpop.xlane.xlu0 %516  ;;  %v5522_v39 = vsub.f32 %v4293_v30, %v8700_v13  ;;  %3840 = vpow2.f32 %v851_v50  ;;  %v1124_v58 = vsel %vm274_vm0, %v3827_v7, 0.0 }
 0x131   :  { %v3829_v52 = vpop.eup %3828  ;;  %8703 = vst [vmem:[#allocation14_spill] sm:$0xff] %v5531_v42  ;;  %3842 = vpow2.f32 %v857_v40  ;;  %v861_v50 = vmul.f32 1.442695, %v5531_v42 }
 0x132   :  { %8701 = vst [vmem:[#allocation13_spill] sm:$0xff] %v5522_v39  ;;  %v855_v31 = vmul.f32 1.442695, %v5522_v39  ;;  %v1121_v43 = vsel %vm274_vm0, %v3829_v52, 0.0  ;;  %v4296_v39 = vld [vmem:[%s8509_s0 + $0x138] sm:$0xff]  ;;  %v8708_v52 = vld [vmem:[#allocation18_spill] sm:$0xff] }
 0x133   :  { %1119 = vadd.xlane.f32.xlu1 %v1118_v6  ;;  %1116 = vadd.xlane.f32.xlu0 %v1115_v59  ;;  %v4295_v6 = vld [vmem:[%s8509_s0 + $0x120] sm:$0xff]  ;;  %v3831_v59 = vpop.eup %3830  ;;  %v5551_v26 = vsub.f32 %v4296_v39, %v8706_v27 }
 0x134   :  { %v5533_v30 = vpop.xlane.xlu1 %525  ;;  %v5535_v13 = vpop.xlane.xlu0 %522  ;;  %v5542_v54 = vsub.f32 %v4295_v6, %v8704_v44  ;;  %3844 = vpow2.f32 %v855_v31  ;;  %v1130_v42 = vsel %vm274_vm0, %v3831_v59, 0.0 }
 0x135   :  { %v3833_v49 = vpop.eup %3832  ;;  %8707 = vst [vmem:[#allocation16_spill] sm:$0xff] %v5551_v26  ;;  %3846 = vpow2.f32 %v861_v50  ;;  %v865_v31 = vmul.f32 1.442695, %v5551_v26 }
 0x136   :  { %8705 = vst [vmem:[#allocation15_spill] sm:$0xff] %v5542_v54  ;;  %v859_v7 = vmul.f32 1.442695, %v5542_v54  ;;  %v1127_v27 = vsel %vm274_vm0, %v3833_v49, 0.0  ;;  %v4298_v54 = vld [vmem:[%s8509_s0 + $0x148] sm:$0xff]  ;;  %v8712_v49 = vld [vmem:[#allocation20_spill] sm:$0xff] }
 0x137   :  { %1125 = vadd.xlane.f32.xlu1 %v1124_v58  ;;  %1122 = vadd.xlane.f32.xlu0 %v1121_v43  ;;  %v4297_v58 = vld [vmem:[%s8509_s0 + $0x130] sm:$0xff]  ;;  %v3835_v43 = vpop.eup %3834  ;;  %v5571_v10 = vsub.f32 %v4298_v54, %v8710_v11 }
 0x138   :  { %v5553_v6 = vpop.xlane.xlu1 %531  ;;  %v5555_v44 = vpop.xlane.xlu0 %528  ;;  %v5562_v40 = vsub.f32 %v4297_v58, %v8708_v52  ;;  %3848 = vpow2.f32 %v859_v7  ;;  %v1136_v26 = vsel %vm274_vm0, %v3835_v43, 0.0 }
 0x139   :  { %v3837_v39 = vpop.eup %3836  ;;  %8711 = vst [vmem:[#allocation18_spill] sm:$0xff] %v5571_v10  ;;  %3850 = vpow2.f32 %v865_v31  ;;  %v869_v7 = vmul.f32 1.442695, %v5571_v10 }
 0x13a   :  { %8709 = vst [vmem:[#allocation17_spill] sm:$0xff] %v5562_v40  ;;  %v863_v59 = vmul.f32 1.442695, %v5562_v40  ;;  %v1133_v11 = vsel %vm274_vm0, %v3837_v39, 0.0  ;;  %v4300_v40 = vld [vmem:[%s8509_s0 + $0x158] sm:$0xff]  ;;  %v8716_v39 = vld [vmem:[#allocation22_spill] sm:$0xff] }
 0x13b   :  { %1131 = vadd.xlane.f32.xlu1 %v1130_v42  ;;  %1128 = vadd.xlane.f32.xlu0 %v1127_v27  ;;  %v4299_v42 = vld [vmem:[%s8509_s0 + $0x140] sm:$0xff]  ;;  %v3839_v27 = vpop.eup %3838  ;;  %v5591_v62 = vsub.f32 %v4300_v40, %v8714_v17 }
 0x13c   :  { %v5573_v58 = vpop.xlane.xlu1 %537  ;;  %v5575_v52 = vpop.xlane.xlu0 %534  ;;  %v5582_v50 = vsub.f32 %v4299_v42, %v8712_v49  ;;  %3852 = vpow2.f32 %v863_v59  ;;  %v1142_v10 = vsel %vm274_vm0, %v3839_v27, 0.0 }
 0x13d   :  { %v3841_v54 = vpop.eup %3840  ;;  %8715 = vst [vmem:[#allocation20_spill] sm:$0xff] %v5591_v62  ;;  %3854 = vpow2.f32 %v869_v7  ;;  %v873_v59 = vmul.f32 1.442695, %v5591_v62 }
 0x13e   :  { %8713 = vst [vmem:[#allocation19_spill] sm:$0xff] %v5582_v50  ;;  %v867_v43 = vmul.f32 1.442695, %v5582_v50  ;;  %v1139_v17 = vsel %vm274_vm0, %v3841_v54, 0.0  ;;  %v4302_v50 = vld [vmem:[%s8509_s0 + $0x168] sm:$0xff]  ;;  %v8720_v54 = vld [vmem:[#allocation24_spill] sm:$0xff] }
 0x13f   :  { %1137 = vadd.xlane.f32.xlu1 %v1136_v26  ;;  %1134 = vadd.xlane.f32.xlu0 %v1133_v11  ;;  %v4301_v26 = vld [vmem:[%s8509_s0 + $0x150] sm:$0xff]  ;;  %v3843_v11 = vpop.eup %3842  ;;  %v5611_v22 = vsub.f32 %v4302_v50, %v8718_v35 }
 0x140   :  { %v5593_v42 = vpop.xlane.xlu1 %543  ;;  %v5595_v49 = vpop.xlane.xlu0 %540  ;;  %v5602_v31 = vsub.f32 %v4301_v26, %v8716_v39  ;;  %3856 = vpow2.f32 %v867_v43  ;;  %v1148_v62 = vsel %vm274_vm0, %v3843_v11, 0.0 }
 0x141   :  { %v3845_v40 = vpop.eup %3844  ;;  %8719 = vst [vmem:[#allocation22_spill] sm:$0xff] %v5611_v22  ;;  %3858 = vpow2.f32 %v873_v59  ;;  %v877_v43 = vmul.f32 1.442695, %v5611_v22 }
 0x142   :  { %8717 = vst [vmem:[#allocation21_spill] sm:$0xff] %v5602_v31  ;;  %v871_v27 = vmul.f32 1.442695, %v5602_v31  ;;  %v1145_v35 = vsel %vm274_vm0, %v3845_v40, 0.0  ;;  %v4304_v31 = vld [vmem:[%s8509_s0 + $0x178] sm:$0xff]  ;;  %v8723_v40 = vld [vmem:[#allocation26_spill] sm:$0xff] }
 0x143   :  { %1143 = vadd.xlane.f32.xlu1 %v1142_v10  ;;  %1140 = vadd.xlane.f32.xlu0 %v1139_v17  ;;  %v4303_v10 = vld [vmem:[%s8509_s0 + $0x160] sm:$0xff]  ;;  %v3847_v17 = vpop.eup %3846  ;;  %v5631_v18 = vsub.f32 %v4304_v31, %v5204_v53 }
 0x144   :  { %v5613_v26 = vpop.xlane.xlu1 %549  ;;  %v5615_v39 = vpop.xlane.xlu0 %546  ;;  %v5622_v7 = vsub.f32 %v4303_v10, %v8720_v54  ;;  %3860 = vpow2.f32 %v871_v27  ;;  %v1154_v22 = vsel %vm274_vm0, %v3847_v17, 0.0 }
 0x145   :  { %v3849_v50 = vpop.eup %3848  ;;  %8722 = vst [vmem:[#allocation24_spill] sm:$0xff] %v5631_v18  ;;  %3862 = vpow2.f32 %v877_v43  ;;  %v881_v27 = vmul.f32 1.442695, %v5631_v18 }
 0x146   :  { %8721 = vst [vmem:[#allocation23_spill] sm:$0xff] %v5622_v7  ;;  %v875_v11 = vmul.f32 1.442695, %v5622_v7  ;;  %v1151_v53 = vsel %vm274_vm0, %v3849_v50, 0.0  ;;  %v4306_v7 = vld [vmem:[%s8509_s0 + $0x188] sm:$0xff] }
 0x147   :  { %1149 = vadd.xlane.f32.xlu1 %v1148_v62  ;;  %1146 = vadd.xlane.f32.xlu0 %v1145_v35  ;;  %v4305_v62 = vld [vmem:[%s8509_s0 + $0x170] sm:$0xff]  ;;  %v3851_v35 = vpop.eup %3850  ;;  %v5651_v1 = vsub.f32 %v4306_v7, %v5225_v19 }
 0x148   :  { %v5633_v10 = vpop.xlane.xlu1 %555  ;;  %v5635_v54 = vpop.xlane.xlu0 %552  ;;  %v5642_v59 = vsub.f32 %v4305_v62, %v8723_v40  ;;  %3864 = vpow2.f32 %v875_v11 }
 0x149   :  { %v3853_v31 = vpop.eup %3852  ;;  %8725 = vst [vmem:[#allocation50_spill] sm:$0xff] %v5651_v1  ;;  %3866 = vpow2.f32 %v881_v27  ;;  %v885_v11 = vmul.f32 1.442695, %v5651_v1  ;;  %v4310_v1 = vld [vmem:[%s8509_s0 + $0x1a8] sm:$0xff] }
 0x14a   :  { %8724 = vst [vmem:[#allocation26_spill] sm:$0xff] %v5642_v59  ;;  %v879_v17 = vmul.f32 1.442695, %v5642_v59  ;;  %v3855_v43 = vpop.eup %3854  ;;  %v1157_v19 = vsel %vm274_vm0, %v3853_v31, 0.0  ;;  %v4308_v59 = vld [vmem:[%s8509_s0 + $0x198] sm:$0xff]  ;;  %v4309_v31 = vld [vmem:[%s8509_s0 + $0x190] sm:$0xff] }
 0x14b   :  { %1155 = vadd.xlane.f32.xlu1 %v1154_v22  ;;  %1152 = vadd.xlane.f32.xlu0 %v1151_v53  ;;  %v4307_v22 = vld [vmem:[%s8509_s0 + $0x180] sm:$0xff]  ;;  %v1160_v53 = vsel %vm274_vm0, %v3851_v35, 0.0  ;;  %v3857_v7 = vpop.eup %3856  ;;  %v5671_v18 = vsub.f32 %v4308_v59, %v5248_v51  ;;  %v5682_v27 = vsub.f32 %v4309_v31, %v5250_v2 }
 0x14c   :  { %v5653_v62 = vpop.xlane.xlu1 %561  ;;  %v5655_v40 = vpop.xlane.xlu0 %558  ;;  %v5662_v50 = vsub.f32 %v4307_v22, %v5227_v5  ;;  %3868 = vpow2.f32 %v879_v17  ;;  %v1163_v51 = vsel %vm274_vm0, %v3857_v7, 0.0  ;;  %v4311_v7 = vld [vmem:[%s8509_s0 + $0x1a0] sm:$0xff] }
 0x14d   :  { %8727 = vst [vmem:[#allocation52_spill] sm:$0xff] %v5671_v18  ;;  %8728 = vst [vmem:[#allocation53_spill] sm:$0xff] %v5682_v27  ;;  %3870 = vpow2.f32 %v885_v11  ;;  %v889_v17 = vmul.f32 1.442695, %v5671_v18  ;;  %v5702_v11 = vsub.f32 %v4311_v7, %v5272_v3  ;;  %v4312_v18 = vld [vmem:[%s8509_s0 + $0x1b8] sm:$0xff] }
 0x14e   :  { %8726 = vst [vmem:[#allocation51_spill] sm:$0xff] %v5662_v50  ;;  %v883_v35 = vmul.f32 1.442695, %v5662_v50  ;;  %v5691_v50 = vsub.f32 %v4310_v1, %v5270_v0 }
 0x14f   :  { %1161 = vadd.xlane.f32.xlu1 %v1160_v53  ;;  %1158 = vadd.xlane.f32.xlu0 %v1157_v19  ;;  %v3859_v53 = vpop.eup %3858  ;;  %v1166_v19 = vsel %vm274_vm0, %v3855_v43, 0.0  ;;  %v887_v43 = vmul.f32 1.442695, %v5682_v27  ;;  %8730 = vst [vmem:[#allocation55_spill] sm:$0xff] %v5702_v11  ;;  %v5711_v27 = vsub.f32 %v4312_v18, %v5292_v38 }
 0x150   :  { %v5673_v5 = vpop.xlane.xlu1 %567  ;;  %v5675_v22 = vpop.xlane.xlu0 %564  ;;  %8729 = vst [vmem:[#allocation54_spill] sm:$0xff] %v5691_v50  ;;  %3872 = vpow2.f32 %v883_v35  ;;  %v893_v35 = vmul.f32 1.442695, %v5691_v50  ;;  %v4314_v50 = vld [vmem:[%s8509_s0 + $0x1c8] sm:$0xff] }
 0x151   :  { %v3861_v59 = vpop.eup %3860  ;;  %3874 = vpow2.f32 %v889_v17  ;;  %8731 = vst [vmem:[#allocation56_spill] sm:$0xff] %v5711_v27 }
 0x152   :  { %v1169_v1 = vsel %vm274_vm0, %v3861_v59, 0.0  ;;  %3876 = vpow2.f32 %v887_v43  ;;  %v4313_v59 = vld [vmem:[%s8509_s0 + $0x1b0] sm:$0xff]  ;;  %v897_v43 = vmul.f32 1.442695, %v5711_v27  ;;  %v4316_v27 = vld [vmem:[%s8509_s0 + $0x1d8] sm:$0xff] }
 0x153   :  { %1167 = vadd.xlane.f32.xlu1 %v1166_v19  ;;  %1164 = vadd.xlane.f32.xlu0 %v1163_v51  ;;  %v3863_v19 = vpop.eup %3862  ;;  %v1172_v51 = vsel %vm274_vm0, %v3859_v53, 0.0  ;;  %v891_v53 = vmul.f32 1.442695, %v5702_v11  ;;  %v5722_v17 = vsub.f32 %v4313_v59, %v5294_v8  ;;  %3878 = vpow2.f32 %v893_v35 }
 0x154   :  { %v5693_v2 = vpop.xlane.xlu1 %573  ;;  %v5695_v31 = vpop.xlane.xlu0 %570  ;;  %v5731_v11 = vsub.f32 %v4314_v50, %v5307_v47 }
 0x155   :  { %v3865_v0 = vpop.eup %3864  ;;  %8732 = vst [vmem:[#allocation57_spill] sm:$0xff] %v5722_v17  ;;  %3880 = vpow2.f32 %v891_v53 }
 0x156   :  { %v1175_v18 = vsel %vm274_vm0, %v3865_v0, 0.0  ;;  %8733 = vst [vmem:[#allocation58_spill] sm:$0xff] %v5731_v11  ;;  %v4315_v0 = vld [vmem:[%s8509_s0 + $0x1c0] sm:$0xff]  ;;  %3882 = vpow2.f32 %v897_v43  ;;  %v901_v53 = vmul.f32 1.442695, %v5731_v11  ;;  %v4318_v11 = vld [vmem:[%s8509_s0 + $0x1e8] sm:$0xff] }
 0x157   :  { %1173 = vadd.xlane.f32.xlu1 %v1172_v51  ;;  %1170 = vadd.xlane.f32.xlu0 %v1169_v1  ;;  %v3867_v51 = vpop.eup %3866  ;;  %v1178_v1 = vsel %vm274_vm0, %v3863_v19, 0.0  ;;  %v895_v19 = vmul.f32 1.442695, %v5722_v17  ;;  %v5742_v35 = vsub.f32 %v4315_v0, %v5309_v61  ;;  %v5751_v17 = vsub.f32 %v4316_v27, %v5323_v57 }
 0x158   :  { %v5713_v3 = vpop.xlane.xlu1 %579  ;;  %v5715_v7 = vpop.xlane.xlu0 %576 }
 0x159   :  { %v3869_v38 = vpop.eup %3868  ;;  %8734 = vst [vmem:[#allocation59_spill] sm:$0xff] %v5742_v35  ;;  %8735 = vst [vmem:[#allocation60_spill] sm:$0xff] %v5751_v17  ;;  %3884 = vpow2.f32 %v895_v19  ;;  %v905_v19 = vmul.f32 1.442695, %v5751_v17  ;;  %v4320_v17 = vld [vmem:[%s8509_s0 + $0x1f8] sm:$0xff] }
 0x15a   :  { %v1181_v47 = vsel %vm274_vm0, %v3869_v38, 0.0  ;;  %v4317_v38 = vld [vmem:[%s8509_s0 + $0x1d0] sm:$0xff]  ;;  %3886 = vpow2.f32 %v901_v53 }
 0x15b   :  { %1179 = vadd.xlane.f32.xlu1 %v1178_v1  ;;  %1176 = vadd.xlane.f32.xlu0 %v1175_v18  ;;  %v3871_v1 = vpop.eup %3870  ;;  %v1184_v18 = vsel %vm274_vm0, %v3867_v51, 0.0  ;;  %v899_v51 = vmul.f32 1.442695, %v5742_v35  ;;  %v5762_v43 = vsub.f32 %v4317_v38, %v5325_v46  ;;  %v5771_v35 = vsub.f32 %v4318_v11, %v5339_v12 }
 0x15c   :  { %v5733_v8 = vpop.xlane.xlu1 %585  ;;  %v5735_v59 = vpop.xlane.xlu0 %582 }
 0x15d   :  { %v3873_v50 = vpop.eup %3872  ;;  %8736 = vst [vmem:[#allocation61_spill] sm:$0xff] %v5762_v43  ;;  %8737 = vst [vmem:[#allocation62_spill] sm:$0xff] %v5771_v35  ;;  %3888 = vpow2.f32 %v899_v51  ;;  %v909_v51 = vmul.f32 1.442695, %v5771_v35  ;;  %v4322_v35 = vld [vmem:[%s8509_s0 + $0x208] sm:$0xff] }
 0x15e   :  { %v1187_v57 = vsel %vm274_vm0, %v3873_v50, 0.0  ;;  %v4319_v50 = vld [vmem:[%s8509_s0 + $0x1e0] sm:$0xff]  ;;  %3890 = vpow2.f32 %v905_v19 }
 0x15f   :  { %1185 = vadd.xlane.f32.xlu1 %v1184_v18  ;;  %1182 = vadd.xlane.f32.xlu0 %v1181_v47  ;;  %v3875_v18 = vpop.eup %3874  ;;  %v1190_v47 = vsel %vm274_vm0, %v3871_v1, 0.0  ;;  %v903_v1 = vmul.f32 1.442695, %v5762_v43  ;;  %v5782_v53 = vsub.f32 %v4319_v50, %v5341_v34  ;;  %v5791_v43 = vsub.f32 %v4320_v17, %v5355_v21 }
 0x160   :  { %v5753_v61 = vpop.xlane.xlu1 %591  ;;  %v5755_v0 = vpop.xlane.xlu0 %588 }
 0x161   :  { %v3877_v27 = vpop.eup %3876  ;;  %8738 = vst [vmem:[#allocation63_spill] sm:$0xff] %v5782_v53  ;;  %8739 = vst [vmem:[#allocation64_spill] sm:$0xff] %v5791_v43  ;;  %3892 = vpow2.f32 %v903_v1  ;;  %v913_v1 = vmul.f32 1.442695, %v5791_v43  ;;  %v4324_v43 = vld [vmem:[%s8509_s0 + $0x218] sm:$0xff] }
 0x162   :  { %v1193_v12 = vsel %vm274_vm0, %v3877_v27, 0.0  ;;  %v4321_v27 = vld [vmem:[%s8509_s0 + $0x1f0] sm:$0xff]  ;;  %3894 = vpow2.f32 %v909_v51 }
 0x163   :  { %1191 = vadd.xlane.f32.xlu1 %v1190_v47  ;;  %1188 = vadd.xlane.f32.xlu0 %v1187_v57  ;;  %v3879_v47 = vpop.eup %3878  ;;  %v1196_v57 = vsel %vm274_vm0, %v3875_v18, 0.0  ;;  %v907_v18 = vmul.f32 1.442695, %v5782_v53  ;;  %v5802_v19 = vsub.f32 %v4321_v27, %v5357_v16  ;;  %v5811_v53 = vsub.f32 %v4322_v35, %v5371_v25 }
 0x164   :  { %v5773_v46 = vpop.xlane.xlu1 %597  ;;  %v5775_v38 = vpop.xlane.xlu0 %594 }
 0x165   :  { %v3881_v11 = vpop.eup %3880  ;;  %8740 = vst [vmem:[#allocation65_spill] sm:$0xff] %v5802_v19  ;;  %8741 = vst [vmem:[#allocation66_spill] sm:$0xff] %v5811_v53  ;;  %3896 = vpow2.f32 %v907_v18  ;;  %v917_v18 = vmul.f32 1.442695, %v5811_v53  ;;  %v4326_v53 = vld [vmem:[%s8509_s0 + $0x228] sm:$0xff] }
 0x166   :  { %v1199_v21 = vsel %vm274_vm0, %v3881_v11, 0.0  ;;  %v4323_v11 = vld [vmem:[%s8509_s0 + $0x200] sm:$0xff]  ;;  %3898 = vpow2.f32 %v913_v1 }
 0x167   :  { %1197 = vadd.xlane.f32.xlu1 %v1196_v57  ;;  %1194 = vadd.xlane.f32.xlu0 %v1193_v12  ;;  %v3883_v57 = vpop.eup %3882  ;;  %v1202_v12 = vsel %vm274_vm0, %v3879_v47, 0.0  ;;  %v911_v47 = vmul.f32 1.442695, %v5802_v19  ;;  %v5822_v51 = vsub.f32 %v4323_v11, %v5373_v20  ;;  %v5831_v19 = vsub.f32 %v4324_v43, %v5387_v29 }
 0x168   :  { %v5793_v34 = vpop.xlane.xlu1 %603  ;;  %v5795_v50 = vpop.xlane.xlu0 %600 }
 0x169   :  { %v3885_v17 = vpop.eup %3884  ;;  %8742 = vst [vmem:[#allocation67_spill] sm:$0xff] %v5822_v51  ;;  %8743 = vst [vmem:[#allocation68_spill] sm:$0xff] %v5831_v19  ;;  %3900 = vpow2.f32 %v911_v47  ;;  %v921_v47 = vmul.f32 1.442695, %v5831_v19  ;;  %v4328_v19 = vld [vmem:[%s8509_s0 + $0x238] sm:$0xff] }
 0x16a   :  { %v1205_v25 = vsel %vm274_vm0, %v3885_v17, 0.0  ;;  %v4325_v17 = vld [vmem:[%s8509_s0 + $0x210] sm:$0xff]  ;;  %3902 = vpow2.f32 %v917_v18 }
 0x16b   :  { %1203 = vadd.xlane.f32.xlu1 %v1202_v12  ;;  %1200 = vadd.xlane.f32.xlu0 %v1199_v21  ;;  %v3887_v12 = vpop.eup %3886  ;;  %v1208_v21 = vsel %vm274_vm0, %v3883_v57, 0.0  ;;  %v915_v57 = vmul.f32 1.442695, %v5822_v51  ;;  %v5842_v1 = vsub.f32 %v4325_v17, %v5389_v24  ;;  %v5851_v51 = vsub.f32 %v4326_v53, %v5403_v33 }
 0x16c   :  { %v5813_v16 = vpop.xlane.xlu1 %609  ;;  %v5815_v27 = vpop.xlane.xlu0 %606 }
 0x16d   :  { %v3889_v35 = vpop.eup %3888  ;;  %8744 = vst [vmem:[#allocation69_spill] sm:$0xff] %v5842_v1  ;;  %8745 = vst [vmem:[#allocation70_spill] sm:$0xff] %v5851_v51  ;;  %3904 = vpow2.f32 %v915_v57  ;;  %v925_v57 = vmul.f32 1.442695, %v5851_v51  ;;  %v4330_v51 = vld [vmem:[%s8509_s0 + $0x248] sm:$0xff] }
 0x16e   :  { %v1211_v29 = vsel %vm274_vm0, %v3889_v35, 0.0  ;;  %v4327_v35 = vld [vmem:[%s8509_s0 + $0x220] sm:$0xff]  ;;  %3906 = vpow2.f32 %v921_v47 }
 0x16f   :  { %1209 = vadd.xlane.f32.xlu1 %v1208_v21  ;;  %1206 = vadd.xlane.f32.xlu0 %v1205_v25  ;;  %v3891_v21 = vpop.eup %3890  ;;  %v1214_v25 = vsel %vm274_vm0, %v3887_v12, 0.0  ;;  %v919_v12 = vmul.f32 1.442695, %v5842_v1  ;;  %v5862_v18 = vsub.f32 %v4327_v35, %v5405_v28  ;;  %v5871_v1 = vsub.f32 %v4328_v19, %v5419_v37 }
 0x170   :  { %v5833_v20 = vpop.xlane.xlu1 %615  ;;  %v5835_v11 = vpop.xlane.xlu0 %612 }
 0x171   :  { %v3893_v43 = vpop.eup %3892  ;;  %8746 = vst [vmem:[#allocation71_spill] sm:$0xff] %v5862_v18  ;;  %8747 = vst [vmem:[#allocation72_spill] sm:$0xff] %v5871_v1  ;;  %3908 = vpow2.f32 %v919_v12  ;;  %v929_v12 = vmul.f32 1.442695, %v5871_v1  ;;  %v4332_v1 = vld [vmem:[%s8509_s0 + $0x258] sm:$0xff] }
 0x172   :  { %v1217_v33 = vsel %vm274_vm0, %v3893_v43, 0.0  ;;  %v4329_v43 = vld [vmem:[%s8509_s0 + $0x230] sm:$0xff]  ;;  %3910 = vpow2.f32 %v925_v57 }
 0x173   :  { %1215 = vadd.xlane.f32.xlu1 %v1214_v25  ;;  %1212 = vadd.xlane.f32.xlu0 %v1211_v29  ;;  %v3895_v25 = vpop.eup %3894  ;;  %v1220_v29 = vsel %vm274_vm0, %v3891_v21, 0.0  ;;  %v923_v21 = vmul.f32 1.442695, %v5862_v18  ;;  %v5882_v47 = vsub.f32 %v4329_v43, %v5421_v32  ;;  %v5891_v18 = vsub.f32 %v4330_v51, %v5435_v41 }
 0x174   :  { %v5853_v24 = vpop.xlane.xlu1 %621  ;;  %v5855_v17 = vpop.xlane.xlu0 %618 }
 0x175   :  { %v3897_v53 = vpop.eup %3896  ;;  %8748 = vst [vmem:[#allocation73_spill] sm:$0xff] %v5882_v47  ;;  %8749 = vst [vmem:[#allocation74_spill] sm:$0xff] %v5891_v18  ;;  %3912 = vpow2.f32 %v923_v21  ;;  %v933_v21 = vmul.f32 1.442695, %v5891_v18  ;;  %v4334_v18 = vld [vmem:[%s8509_s0 + $0x268] sm:$0xff] }
 0x176   :  { %v1223_v37 = vsel %vm274_vm0, %v3897_v53, 0.0  ;;  %v4331_v53 = vld [vmem:[%s8509_s0 + $0x240] sm:$0xff]  ;;  %3914 = vpow2.f32 %v929_v12 }
 0x177   :  { %1221 = vadd.xlane.f32.xlu1 %v1220_v29  ;;  %1218 = vadd.xlane.f32.xlu0 %v1217_v33  ;;  %v3899_v29 = vpop.eup %3898  ;;  %v1226_v33 = vsel %vm274_vm0, %v3895_v25, 0.0  ;;  %v927_v25 = vmul.f32 1.442695, %v5882_v47  ;;  %v5902_v57 = vsub.f32 %v4331_v53, %v5437_v36  ;;  %v5911_v47 = vsub.f32 %v4332_v1, %v5453_v15 }
 0x178   :  { %v5873_v28 = vpop.xlane.xlu1 %627  ;;  %v5875_v35 = vpop.xlane.xlu0 %624 }
 0x179   :  { %v3901_v19 = vpop.eup %3900  ;;  %8750 = vst [vmem:[#allocation75_spill] sm:$0xff] %v5902_v57  ;;  %8751 = vst [vmem:[#allocation76_spill] sm:$0xff] %v5911_v47  ;;  %3916 = vpow2.f32 %v927_v25  ;;  %v937_v25 = vmul.f32 1.442695, %v5911_v47  ;;  %v4336_v47 = vld [vmem:[%s8509_s0 + $0x278] sm:$0xff] }
 0x17a   :  { %v1229_v41 = vsel %vm274_vm0, %v3901_v19, 0.0  ;;  %v4333_v19 = vld [vmem:[%s8509_s0 + $0x250] sm:$0xff]  ;;  %3918 = vpow2.f32 %v933_v21 }
 0x17b   :  { %1227 = vadd.xlane.f32.xlu1 %v1226_v33  ;;  %1224 = vadd.xlane.f32.xlu0 %v1223_v37  ;;  %v3903_v33 = vpop.eup %3902  ;;  %v1232_v37 = vsel %vm274_vm0, %v3899_v29, 0.0  ;;  %v931_v29 = vmul.f32 1.442695, %v5902_v57  ;;  %v5922_v12 = vsub.f32 %v4333_v19, %v5455_v63  ;;  %v5931_v57 = vsub.f32 %v4334_v18, %v5473_v56 }
 0x17c   :  { %v5893_v32 = vpop.xlane.xlu1 %633  ;;  %v5895_v43 = vpop.xlane.xlu0 %630 }
 0x17d   :  { %v3905_v51 = vpop.eup %3904  ;;  %8752 = vst [vmem:[#allocation77_spill] sm:$0xff] %v5922_v12  ;;  %8753 = vst [vmem:[#allocation78_spill] sm:$0xff] %v5931_v57  ;;  %3920 = vpow2.f32 %v931_v29  ;;  %v941_v29 = vmul.f32 1.442695, %v5931_v57  ;;  %v4338_v57 = vld [vmem:[%s8509_s0 + $0x288] sm:$0xff] }
 0x17e   :  { %v1235_v15 = vsel %vm274_vm0, %v3905_v51, 0.0  ;;  %v4335_v51 = vld [vmem:[%s8509_s0 + $0x260] sm:$0xff]  ;;  %3922 = vpow2.f32 %v937_v25 }
 0x17f   :  { %1233 = vadd.xlane.f32.xlu1 %v1232_v37  ;;  %1230 = vadd.xlane.f32.xlu0 %v1229_v41  ;;  %v3907_v37 = vpop.eup %3906  ;;  %v1238_v41 = vsel %vm274_vm0, %v3903_v33, 0.0  ;;  %v935_v33 = vmul.f32 1.442695, %v5922_v12  ;;  %v5942_v21 = vsub.f32 %v4335_v51, %v5475_v48  ;;  %v5951_v12 = vsub.f32 %v4336_v47, %v5493_v14 }
 0x180   :  { %v5913_v36 = vpop.xlane.xlu1 %639  ;;  %v5915_v53 = vpop.xlane.xlu0 %636 }
 0x181   :  { %v3909_v1 = vpop.eup %3908  ;;  %8754 = vst [vmem:[#allocation79_spill] sm:$0xff] %v5942_v21  ;;  %8755 = vst [vmem:[#allocation80_spill] sm:$0xff] %v5951_v12  ;;  %3924 = vpow2.f32 %v935_v33  ;;  %v945_v33 = vmul.f32 1.442695, %v5951_v12  ;;  %v4340_v12 = vld [vmem:[%s8509_s0 + $0x298] sm:$0xff] }
 0x182   :  { %v1241_v56 = vsel %vm274_vm0, %v3909_v1, 0.0  ;;  %v4337_v1 = vld [vmem:[%s8509_s0 + $0x270] sm:$0xff]  ;;  %3926 = vpow2.f32 %v941_v29 }
 0x183   :  { %1239 = vadd.xlane.f32.xlu1 %v1238_v41  ;;  %1236 = vadd.xlane.f32.xlu0 %v1235_v15  ;;  %v3911_v41 = vpop.eup %3910  ;;  %v1244_v15 = vsel %vm274_vm0, %v3907_v37, 0.0  ;;  %v939_v37 = vmul.f32 1.442695, %v5942_v21  ;;  %v5962_v25 = vsub.f32 %v4337_v1, %v5495_v9  ;;  %v5971_v21 = vsub.f32 %v4338_v57, %v5513_v55 }
 0x184   :  { %v5933_v63 = vpop.xlane.xlu1 %645  ;;  %v5935_v19 = vpop.xlane.xlu0 %642 }
 0x185   :  { %v3913_v18 = vpop.eup %3912  ;;  %8756 = vst [vmem:[#allocation81_spill] sm:$0xff] %v5962_v25  ;;  %8757 = vst [vmem:[#allocation82_spill] sm:$0xff] %v5971_v21  ;;  %3928 = vpow2.f32 %v939_v37  ;;  %v949_v37 = vmul.f32 1.442695, %v5971_v21 }
 0x186   :  { %v1247_v14 = vsel %vm274_vm0, %v3913_v18, 0.0  ;;  %v4339_v18 = vld [vmem:[%s8509_s0 + $0x280] sm:$0xff]  ;;  %3930 = vpow2.f32 %v945_v33  ;;  %v4341_v33 = vld [vmem:[%s8509_s0 + $0x290] sm:$0xff] }
 0x187   :  { %1245 = vadd.xlane.f32.xlu1 %v1244_v15  ;;  %1242 = vadd.xlane.f32.xlu0 %v1241_v56  ;;  %v3915_v15 = vpop.eup %3914  ;;  %v1250_v56 = vsel %vm274_vm0, %v3911_v41, 0.0  ;;  %v943_v41 = vmul.f32 1.442695, %v5962_v25  ;;  %v5982_v29 = vsub.f32 %v4339_v18, %v5515_v45  ;;  %v5991_v25 = vsub.f32 %v4340_v12, %v5533_v30 }
 0x188   :  { %v5953_v48 = vpop.xlane.xlu1 %651  ;;  %v5955_v51 = vpop.xlane.xlu0 %648 }
 0x189   :  { %v3917_v47 = vpop.eup %3916  ;;  %8758 = vst [vmem:[#allocation83_spill] sm:$0xff] %v5982_v29  ;;  %8759 = vst [vmem:[#allocation84_spill] sm:$0xff] %v5991_v25  ;;  %3932 = vpow2.f32 %v943_v41  ;;  %v953_v41 = vmul.f32 1.442695, %v5991_v25  ;;  %v4344_v25 = vld [vmem:[%s8509_s0 + $0x2b8] sm:$0xff] }
 0x18a   :  { %v1253_v55 = vsel %vm274_vm0, %v3917_v47, 0.0  ;;  %v947_v47 = vmul.f32 1.442695, %v5982_v29  ;;  %3934 = vpow2.f32 %v949_v37 }
 0x18b   :  { %1251 = vadd.xlane.f32.xlu1 %v1250_v56  ;;  %1248 = vadd.xlane.f32.xlu0 %v1247_v14  ;;  %v3919_v56 = vpop.eup %3918  ;;  %v1256_v14 = vsel %vm274_vm0, %v3915_v15, 0.0  ;;  %v4528_v15 = vmov 0  }
 0x18c   :  { %v5973_v9 = vpop.xlane.xlu1 %657  ;;  %v5975_v1 = vpop.xlane.xlu0 %654  ;;  %3773 = vset.pattern.permute.xlu1 %v4528_v15  ;;  %3772 = vset.pattern.permute.xlu0 %v4528_v15  ;;  %v1262_v30 = vsel %vm274_vm0, %v3919_v56, 0.0  ;;  %v4342_v15 = vld [vmem:[%s8509_s0 + $0x2a8] sm:$0xff]  ;;  %3936 = vpow2.f32 %v947_v47 }
 0x18d   :  { %v3921_v57 = vpop.eup %3920  ;;  %v6011_v29 = vsub.f32 %v4342_v15, %v5553_v6  ;;  %3938 = vpow2.f32 %v953_v41 }
 0x18e   :  { %v1259_v12 = vsel %vm274_vm0, %v3921_v57, 0.0  ;;  %v4343_v57 = vld [vmem:[%s8509_s0 + $0x2a0] sm:$0xff] }
 0x18f   :  { %1257 = vadd.xlane.f32.xlu1 %v1256_v14  ;;  %1254 = vadd.xlane.f32.xlu0 %v1253_v55  ;;  %v6002_v14 = vsub.f32 %v4341_v33, %v5535_v13  ;;  %v3923_v55 = vpop.eup %3922  ;;  %8761 = vst [vmem:[#allocation86_spill] sm:$0xff] %v6011_v29  ;;  %v6022_v37 = vsub.f32 %v4343_v57, %v5555_v44  ;;  %v957_v47 = vmul.f32 1.442695, %v6011_v29  ;;  %v4346_v29 = vld [vmem:[%s8509_s0 + $0x2c8] sm:$0xff] }
 0x190   :  { %v5993_v45 = vpop.xlane.xlu1 %1047  ;;  %v5995_v18 = vpop.xlane.xlu0 %1044 }
 0x191   :  { %8760 = vst [vmem:[#allocation85_spill] sm:$0xff] %v6002_v14  ;;  %v3925_v21 = vpop.eup %3924  ;;  %v951_v56 = vmul.f32 1.442695, %v6002_v14  ;;  %8762 = vst [vmem:[#allocation87_spill] sm:$0xff] %v6022_v37  ;;  %v6031_v14 = vsub.f32 %v4344_v25, %v5573_v58 }
 0x192   :  { %v1265_v6 = vsel %vm274_vm0, %v3925_v21, 0.0  ;;  %v955_v21 = vmul.f32 1.442695, %v6022_v37  ;;  %v6051_v37 = vsub.f32 %v4346_v29, %v5593_v42 }
 0x193   :  { %1263 = vadd.xlane.f32.xlu1 %v1262_v30  ;;  %1260 = vadd.xlane.f32.xlu0 %v1259_v12  ;;  %v3927_v30 = vpop.eup %3926  ;;  %v1268_v12 = vsel %vm274_vm0, %v3923_v55, 0.0  ;;  %8763 = vst [vmem:[#allocation88_spill] sm:$0xff] %v6031_v14  ;;  %3940 = vpow2.f32 %v951_v56  ;;  %v4345_v55 = vld [vmem:[%s8509_s0 + $0x2b0] sm:$0xff]  ;;  %v961_v56 = vmul.f32 1.442695, %v6031_v14  ;;  %v4348_v14 = vld [vmem:[%s8509_s0 + $0x2d8] sm:$0xff] }
 0x194   :  { %v6013_v13 = vpop.xlane.xlu1 %1053  ;;  %v6015_v33 = vpop.xlane.xlu0 %1050  ;;  %v6042_v41 = vsub.f32 %v4345_v55, %v5575_v52  ;;  %3942 = vpow2.f32 %v957_v47  ;;  %8765 = vst [vmem:[#allocation90_spill] sm:$0xff] %v6051_v37 }
 0x195   :  { %v3929_v15 = vpop.eup %3928  ;;  %3944 = vpow2.f32 %v955_v21  ;;  %v965_v21 = vmul.f32 1.442695, %v6051_v37  ;;  %v4350_v37 = vld [vmem:[%s8509_s0 + $0x2e8] sm:$0xff] }
 0x196   :  { %8764 = vst [vmem:[#allocation89_spill] sm:$0xff] %v6042_v41  ;;  %v1271_v58 = vsel %vm274_vm0, %v3929_v15, 0.0  ;;  %v4347_v15 = vld [vmem:[%s8509_s0 + $0x2c0] sm:$0xff]  ;;  %3946 = vpow2.f32 %v961_v56 }
 0x197   :  { %1269 = vadd.xlane.f32.xlu1 %v1268_v12  ;;  %1266 = vadd.xlane.f32.xlu0 %v1265_v6  ;;  %v3931_v12 = vpop.eup %3930  ;;  %v1274_v6 = vsel %vm274_vm0, %v3927_v30, 0.0  ;;  %v959_v30 = vmul.f32 1.442695, %v6042_v41  ;;  %v6062_v47 = vsub.f32 %v4347_v15, %v5595_v49  ;;  %v6071_v41 = vsub.f32 %v4348_v14, %v5613_v26 }
 0x198   :  { %v6033_v44 = vpop.xlane.xlu1 %1059  ;;  %v6035_v57 = vpop.xlane.xlu0 %1056 }
 0x199   :  { %v3933_v25 = vpop.eup %3932  ;;  %8766 = vst [vmem:[#allocation91_spill] sm:$0xff] %v6062_v47  ;;  %8767 = vst [vmem:[#allocation92_spill] sm:$0xff] %v6071_v41  ;;  %3948 = vpow2.f32 %v959_v30  ;;  %v969_v30 = vmul.f32 1.442695, %v6071_v41  ;;  %v4352_v41 = vld [vmem:[%s8509_s0 + $0x2f8] sm:$0xff] }
 0x19a   :  { %v1277_v42 = vsel %vm274_vm0, %v3933_v25, 0.0  ;;  %v4349_v25 = vld [vmem:[%s8509_s0 + $0x2d0] sm:$0xff]  ;;  %3950 = vpow2.f32 %v965_v21 }
 0x19b   :  { %1275 = vadd.xlane.f32.xlu1 %v1274_v6  ;;  %1272 = vadd.xlane.f32.xlu0 %v1271_v58  ;;  %v3935_v6 = vpop.eup %3934  ;;  %v1280_v58 = vsel %vm274_vm0, %v3931_v12, 0.0  ;;  %v963_v12 = vmul.f32 1.442695, %v6062_v47  ;;  %v6082_v56 = vsub.f32 %v4349_v25, %v5615_v39  ;;  %v6091_v47 = vsub.f32 %v4350_v37, %v5633_v10 }
 0x19c   :  { %v6053_v52 = vpop.xlane.xlu1 %1065  ;;  %v6055_v55 = vpop.xlane.xlu0 %1062 }
 0x19d   :  { %v3937_v29 = vpop.eup %3936  ;;  %8768 = vst [vmem:[#allocation93_spill] sm:$0xff] %v6082_v56  ;;  %8769 = vst [vmem:[#allocation94_spill] sm:$0xff] %v6091_v47  ;;  %3952 = vpow2.f32 %v963_v12  ;;  %v973_v12 = vmul.f32 1.442695, %v6091_v47  ;;  %v4354_v47 = vld [vmem:[%s8509_s0 + $0x308] sm:$0xff] }
 0x19e   :  { %v1283_v26 = vsel %vm274_vm0, %v3937_v29, 0.0  ;;  %v4351_v29 = vld [vmem:[%s8509_s0 + $0x2e0] sm:$0xff]  ;;  %3954 = vpow2.f32 %v969_v30 }
 0x19f   :  { %1281 = vadd.xlane.f32.xlu1 %v1280_v58  ;;  %1278 = vadd.xlane.f32.xlu0 %v1277_v42  ;;  %v3939_v58 = vpop.eup %3938  ;;  %v1286_v42 = vsel %vm274_vm0, %v3935_v6, 0.0  ;;  %v967_v6 = vmul.f32 1.442695, %v6082_v56  ;;  %v6102_v21 = vsub.f32 %v4351_v29, %v5635_v54  ;;  %v6111_v56 = vsub.f32 %v4352_v41, %v5653_v62 }
 0x1a0   :  { %v6073_v49 = vpop.xlane.xlu1 %1071  ;;  %v6075_v15 = vpop.xlane.xlu0 %1068 }
 0x1a1   :  { %v3941_v14 = vpop.eup %3940  ;;  %8770 = vst [vmem:[#allocation95_spill] sm:$0xff] %v6102_v21  ;;  %8771 = vst [vmem:[#allocation96_spill] sm:$0xff] %v6111_v56  ;;  %3956 = vpow2.f32 %v967_v6  ;;  %v977_v6 = vmul.f32 1.442695, %v6111_v56  ;;  %v4356_v56 = vld [vmem:[%s8509_s0 + $0x318] sm:$0xff] }
 0x1a2   :  { %v1289_v10 = vsel %vm274_vm0, %v3941_v14, 0.0  ;;  %v4353_v14 = vld [vmem:[%s8509_s0 + $0x2f0] sm:$0xff]  ;;  %3958 = vpow2.f32 %v973_v12 }
 0x1a3   :  { %1287 = vadd.xlane.f32.xlu1 %v1286_v42  ;;  %1284 = vadd.xlane.f32.xlu0 %v1283_v26  ;;  %v3943_v42 = vpop.eup %3942  ;;  %v1292_v26 = vsel %vm274_vm0, %v3939_v58, 0.0  ;;  %v971_v58 = vmul.f32 1.442695, %v6102_v21  ;;  %v6122_v30 = vsub.f32 %v4353_v14, %v5655_v40  ;;  %v6131_v21 = vsub.f32 %v4354_v47, %v5673_v5 }
 0x1a4   :  { %v6093_v39 = vpop.xlane.xlu1 %1077  ;;  %v6095_v25 = vpop.xlane.xlu0 %1074 }
 0x1a5   :  { %v3945_v37 = vpop.eup %3944  ;;  %8772 = vst [vmem:[#allocation97_spill] sm:$0xff] %v6122_v30  ;;  %8773 = vst [vmem:[#allocation98_spill] sm:$0xff] %v6131_v21  ;;  %3960 = vpow2.f32 %v971_v58  ;;  %v981_v58 = vmul.f32 1.442695, %v6131_v21  ;;  %v4358_v21 = vld [vmem:[%s8509_s0 + $0x328] sm:$0xff] }
 0x1a6   :  { %v1295_v62 = vsel %vm274_vm0, %v3945_v37, 0.0  ;;  %v4355_v37 = vld [vmem:[%s8509_s0 + $0x300] sm:$0xff]  ;;  %3962 = vpow2.f32 %v977_v6 }
 0x1a7   :  { %1293 = vadd.xlane.f32.xlu1 %v1292_v26  ;;  %1290 = vadd.xlane.f32.xlu0 %v1289_v10  ;;  %v3947_v26 = vpop.eup %3946  ;;  %v1298_v10 = vsel %vm274_vm0, %v3943_v42, 0.0  ;;  %v975_v42 = vmul.f32 1.442695, %v6122_v30  ;;  %v6142_v12 = vsub.f32 %v4355_v37, %v5675_v22  ;;  %v6151_v30 = vsub.f32 %v4356_v56, %v5693_v2 }
 0x1a8   :  { %v6113_v54 = vpop.xlane.xlu1 %1083  ;;  %v6115_v29 = vpop.xlane.xlu0 %1080 }
 0x1a9   :  { %v3949_v41 = vpop.eup %3948  ;;  %8774 = vst [vmem:[#allocation99_spill] sm:$0xff] %v6142_v12  ;;  %8775 = vst [vmem:[#allocation100_spill] sm:$0xff] %v6151_v30  ;;  %3964 = vpow2.f32 %v975_v42  ;;  %v985_v42 = vmul.f32 1.442695, %v6151_v30  ;;  %v4360_v30 = vld [vmem:[%s8509_s0 + $0x338] sm:$0xff] }
 0x1aa   :  { %v1301_v5 = vsel %vm274_vm0, %v3949_v41, 0.0  ;;  %v4357_v41 = vld [vmem:[%s8509_s0 + $0x310] sm:$0xff]  ;;  %3966 = vpow2.f32 %v981_v58 }
 0x1ab   :  { %1299 = vadd.xlane.f32.xlu1 %v1298_v10  ;;  %1296 = vadd.xlane.f32.xlu0 %v1295_v62  ;;  %v3951_v10 = vpop.eup %3950  ;;  %v1304_v62 = vsel %vm274_vm0, %v3947_v26, 0.0  ;;  %v979_v26 = vmul.f32 1.442695, %v6142_v12  ;;  %v6162_v6 = vsub.f32 %v4357_v41, %v5695_v31  ;;  %v6171_v12 = vsub.f32 %v4358_v21, %v5713_v3 }
 0x1ac   :  { %v6133_v40 = vpop.xlane.xlu1 %1089  ;;  %v6135_v14 = vpop.xlane.xlu0 %1086 }
 0x1ad   :  { %v3953_v47 = vpop.eup %3952  ;;  %8776 = vst [vmem:[#allocation101_spill] sm:$0xff] %v6162_v6  ;;  %8777 = vst [vmem:[#allocation102_spill] sm:$0xff] %v6171_v12  ;;  %3968 = vpow2.f32 %v979_v26  ;;  %v989_v26 = vmul.f32 1.442695, %v6171_v12  ;;  %v4362_v12 = vld [vmem:[%s8509_s0 + $0x348] sm:$0xff] }
 0x1ae   :  { %v1307_v2 = vsel %vm274_vm0, %v3953_v47, 0.0  ;;  %v4359_v47 = vld [vmem:[%s8509_s0 + $0x320] sm:$0xff]  ;;  %3970 = vpow2.f32 %v985_v42 }
 0x1af   :  { %1305 = vadd.xlane.f32.xlu1 %v1304_v62  ;;  %1302 = vadd.xlane.f32.xlu0 %v1301_v5  ;;  %v3955_v62 = vpop.eup %3954  ;;  %v1310_v5 = vsel %vm274_vm0, %v3951_v10, 0.0  ;;  %v983_v10 = vmul.f32 1.442695, %v6162_v6  ;;  %v6182_v58 = vsub.f32 %v4359_v47, %v5715_v7  ;;  %v6191_v6 = vsub.f32 %v4360_v30, %v5733_v8 }
 0x1b0   :  { %v6153_v22 = vpop.xlane.xlu1 %1095  ;;  %v6155_v37 = vpop.xlane.xlu0 %1092 }
 0x1b1   :  { %v3957_v56 = vpop.eup %3956  ;;  %8778 = vst [vmem:[#allocation103_spill] sm:$0xff] %v6182_v58  ;;  %8779 = vst [vmem:[#allocation104_spill] sm:$0xff] %v6191_v6  ;;  %3972 = vpow2.f32 %v983_v10  ;;  %v993_v10 = vmul.f32 1.442695, %v6191_v6 }
 0x1b2   :  { %v1313_v3 = vsel %vm274_vm0, %v3957_v56, 0.0  ;;  %v4361_v56 = vld [vmem:[%s8509_s0 + $0x330] sm:$0xff]  ;;  %3974 = vpow2.f32 %v989_v26 }
 0x1b3   :  { %1311 = vadd.xlane.f32.xlu1 %v1310_v5  ;;  %1308 = vadd.xlane.f32.xlu0 %v1307_v2  ;;  %v3959_v5 = vpop.eup %3958  ;;  %v1316_v2 = vsel %vm274_vm0, %v3955_v62, 0.0  ;;  %v987_v62 = vmul.f32 1.442695, %v6182_v58  ;;  %v6202_v42 = vsub.f32 %v4361_v56, %v5735_v59  ;;  %v6211_v58 = vsub.f32 %v4362_v12, %v5753_v61 }
 0x1b4   :  { %v6173_v31 = vpop.xlane.xlu1 %1101  ;;  %v6175_v41 = vpop.xlane.xlu0 %1098 }
 0x1b5   :  { %v3961_v21 = vpop.eup %3960  ;;  %8780 = vst [vmem:[#allocation105_spill] sm:$0xff] %v6202_v42  ;;  %8781 = vst [vmem:[#allocation106_spill] sm:$0xff] %v6211_v58  ;;  %3976 = vpow2.f32 %v987_v62  ;;  %v997_v62 = vmul.f32 1.442695, %v6211_v58 }
 0x1b6   :  { %v1319_v8 = vsel %vm274_vm0, %v3961_v21, 0.0  ;;  %v4363_v21 = vld [vmem:[%s8509_s0 + $0x340] sm:$0xff]  ;;  %3978 = vpow2.f32 %v993_v10 }
 0x1b7   :  { %1317 = vadd.xlane.f32.xlu1 %v1316_v2  ;;  %1314 = vadd.xlane.f32.xlu0 %v1313_v3  ;;  %v3963_v2 = vpop.eup %3962  ;;  %v1322_v3 = vsel %vm274_vm0, %v3959_v5, 0.0  ;;  %v991_v5 = vmul.f32 1.442695, %v6202_v42  ;;  %v6222_v26 = vsub.f32 %v4363_v21, %v5755_v0  ;;  %v4364_v42 = vld [vmem:[%s8509_s0 + $0x358] sm:$0xff] }
 0x1b8   :  { %v6193_v7 = vpop.xlane.xlu1 %1107  ;;  %v6195_v47 = vpop.xlane.xlu0 %1104  ;;  %v6231_v6 = vsub.f32 %v4364_v42, %v5773_v46 }
 0x1b9   :  { %v3965_v30 = vpop.eup %3964  ;;  %8782 = vst [vmem:[#allocation107_spill] sm:$0xff] %v6222_v26  ;;  %3980 = vpow2.f32 %v991_v5 }
 0x1ba   :  { %v1325_v61 = vsel %vm274_vm0, %v3965_v30, 0.0  ;;  %8783 = vst [vmem:[#allocation108_spill] sm:$0xff] %v6231_v6  ;;  %v4365_v30 = vld [vmem:[%s8509_s0 + $0x350] sm:$0xff]  ;;  %3982 = vpow2.f32 %v997_v62  ;;  %v1001_v5 = vmul.f32 1.442695, %v6231_v6 }
 0x1bb   :  { %1323 = vadd.xlane.f32.xlu1 %v1322_v3  ;;  %1320 = vadd.xlane.f32.xlu0 %v1319_v8  ;;  %v3967_v3 = vpop.eup %3966  ;;  %v1328_v8 = vsel %vm274_vm0, %v3963_v2, 0.0  ;;  %v995_v2 = vmul.f32 1.442695, %v6222_v26  ;;  %v6242_v10 = vsub.f32 %v4365_v30, %v5775_v38  ;;  %v4366_v26 = vld [vmem:[%s8509_s0 + $0x368] sm:$0xff] }
 0x1bc   :  { %v6213_v59 = vpop.xlane.xlu1 %1113  ;;  %v6215_v56 = vpop.xlane.xlu0 %1110  ;;  %v6251_v58 = vsub.f32 %v4366_v26, %v5793_v34 }
 0x1bd   :  { %v3969_v12 = vpop.eup %3968  ;;  %8784 = vst [vmem:[#allocation109_spill] sm:$0xff] %v6242_v10  ;;  %3984 = vpow2.f32 %v995_v2 }
 0x1be   :  { %v1331_v46 = vsel %vm274_vm0, %v3969_v12, 0.0  ;;  %8785 = vst [vmem:[#allocation110_spill] sm:$0xff] %v6251_v58  ;;  %v4367_v12 = vld [vmem:[%s8509_s0 + $0x360] sm:$0xff]  ;;  %3986 = vpow2.f32 %v1001_v5  ;;  %v1005_v2 = vmul.f32 1.442695, %v6251_v58 }
 0x1bf   :  { %1329 = vadd.xlane.f32.xlu1 %v1328_v8  ;;  %1326 = vadd.xlane.f32.xlu0 %v1325_v61  ;;  %v3971_v8 = vpop.eup %3970  ;;  %v1334_v61 = vsel %vm274_vm0, %v3967_v3, 0.0  ;;  %v999_v3 = vmul.f32 1.442695, %v6242_v10  ;;  %v6262_v62 = vsub.f32 %v4367_v12, %v5795_v50  ;;  %v4368_v10 = vld [vmem:[%s8509_s0 + $0x378] sm:$0xff] }
 0x1c0   :  { %v6233_v0 = vpop.xlane.xlu1 %1119  ;;  %v6235_v21 = vpop.xlane.xlu0 %1116  ;;  %v6271_v6 = vsub.f32 %v4368_v10, %v5813_v16 }
 0x1c1   :  { %v3973_v42 = vpop.eup %3972  ;;  %8786 = vst [vmem:[#allocation111_spill] sm:$0xff] %v6262_v62  ;;  %3988 = vpow2.f32 %v999_v3 }
 0x1c2   :  { %v1337_v34 = vsel %vm274_vm0, %v3973_v42, 0.0  ;;  %8787 = vst [vmem:[#allocation112_spill] sm:$0xff] %v6271_v6  ;;  %v4369_v42 = vld [vmem:[%s8509_s0 + $0x370] sm:$0xff]  ;;  %3990 = vpow2.f32 %v1005_v2  ;;  %v1009_v3 = vmul.f32 1.442695, %v6271_v6 }
 0x1c3   :  { %1335 = vadd.xlane.f32.xlu1 %v1334_v61  ;;  %1332 = vadd.xlane.f32.xlu0 %v1331_v46  ;;  %v3975_v61 = vpop.eup %3974  ;;  %v1340_v46 = vsel %vm274_vm0, %v3971_v8, 0.0  ;;  %v1003_v8 = vmul.f32 1.442695, %v6262_v62  ;;  %v6282_v5 = vsub.f32 %v4369_v42, %v5815_v27  ;;  %v4370_v62 = vld [vmem:[%s8509_s0 + $0x388] sm:$0xff] }
 0x1c4   :  { %v6253_v38 = vpop.xlane.xlu1 %1125  ;;  %v6255_v30 = vpop.xlane.xlu0 %1122  ;;  %v6291_v58 = vsub.f32 %v4370_v62, %v5833_v20 }
 0x1c5   :  { %v3977_v26 = vpop.eup %3976  ;;  %8788 = vst [vmem:[#allocation113_spill] sm:$0xff] %v6282_v5  ;;  %3992 = vpow2.f32 %v1003_v8 }
 0x1c6   :  { %v1343_v16 = vsel %vm274_vm0, %v3977_v26, 0.0  ;;  %8789 = vst [vmem:[#allocation114_spill] sm:$0xff] %v6291_v58  ;;  %v4371_v26 = vld [vmem:[%s8509_s0 + $0x380] sm:$0xff]  ;;  %3994 = vpow2.f32 %v1009_v3  ;;  %v1013_v8 = vmul.f32 1.442695, %v6291_v58 }
 0x1c7   :  { %1341 = vadd.xlane.f32.xlu1 %v1340_v46  ;;  %1338 = vadd.xlane.f32.xlu0 %v1337_v34  ;;  %v3979_v46 = vpop.eup %3978  ;;  %v1346_v34 = vsel %vm274_vm0, %v3975_v61, 0.0  ;;  %v1007_v61 = vmul.f32 1.442695, %v6282_v5  ;;  %v6302_v2 = vsub.f32 %v4371_v26, %v5835_v11  ;;  %v4372_v5 = vld [vmem:[%s8509_s0 + $0x398] sm:$0xff] }
 0x1c8   :  { %v6273_v50 = vpop.xlane.xlu1 %1131  ;;  %v6275_v12 = vpop.xlane.xlu0 %1128  ;;  %v6311_v6 = vsub.f32 %v4372_v5, %v5853_v24 }
 0x1c9   :  { %v3981_v10 = vpop.eup %3980  ;;  %8790 = vst [vmem:[#allocation115_spill] sm:$0xff] %v6302_v2  ;;  %3996 = vpow2.f32 %v1007_v61 }
 0x1ca   :  { %v1349_v20 = vsel %vm274_vm0, %v3981_v10, 0.0  ;;  %8791 = vst [vmem:[#allocation116_spill] sm:$0xff] %v6311_v6  ;;  %v4373_v10 = vld [vmem:[%s8509_s0 + $0x390] sm:$0xff]  ;;  %3998 = vpow2.f32 %v1013_v8  ;;  %v1017_v61 = vmul.f32 1.442695, %v6311_v6 }
 0x1cb   :  { %1347 = vadd.xlane.f32.xlu1 %v1346_v34  ;;  %1344 = vadd.xlane.f32.xlu0 %v1343_v16  ;;  %v3983_v34 = vpop.eup %3982  ;;  %v1352_v16 = vsel %vm274_vm0, %v3979_v46, 0.0  ;;  %v1011_v46 = vmul.f32 1.442695, %v6302_v2  ;;  %v6322_v3 = vsub.f32 %v4373_v10, %v5855_v17  ;;  %v4374_v2 = vld [vmem:[%s8509_s0 + $0x3a8] sm:$0xff] }
 0x1cc   :  { %v6293_v27 = vpop.xlane.xlu1 %1137  ;;  %v6295_v42 = vpop.xlane.xlu0 %1134  ;;  %v6331_v58 = vsub.f32 %v4374_v2, %v5873_v28 }
 0x1cd   :  { %v3985_v62 = vpop.eup %3984  ;;  %8792 = vst [vmem:[#allocation117_spill] sm:$0xff] %v6322_v3  ;;  %4000 = vpow2.f32 %v1011_v46 }
 0x1ce   :  { %v1355_v24 = vsel %vm274_vm0, %v3985_v62, 0.0  ;;  %8793 = vst [vmem:[#allocation118_spill] sm:$0xff] %v6331_v58  ;;  %v4375_v62 = vld [vmem:[%s8509_s0 + $0x3a0] sm:$0xff]  ;;  %4002 = vpow2.f32 %v1017_v61  ;;  %v1021_v46 = vmul.f32 1.442695, %v6331_v58 }
 0x1cf   :  { %1353 = vadd.xlane.f32.xlu1 %v1352_v16  ;;  %1350 = vadd.xlane.f32.xlu0 %v1349_v20  ;;  %v3987_v16 = vpop.eup %3986  ;;  %v1358_v20 = vsel %vm274_vm0, %v3983_v34, 0.0  ;;  %v1015_v34 = vmul.f32 1.442695, %v6322_v3  ;;  %v6342_v8 = vsub.f32 %v4375_v62, %v5875_v35  ;;  %v4376_v3 = vld [vmem:[%s8509_s0 + $0x3b8] sm:$0xff] }
 0x1d0   :  { %v6313_v11 = vpop.xlane.xlu1 %1143  ;;  %v6315_v26 = vpop.xlane.xlu0 %1140  ;;  %v6351_v6 = vsub.f32 %v4376_v3, %v5893_v32 }
 0x1d1   :  { %v3989_v5 = vpop.eup %3988  ;;  %8794 = vst [vmem:[#allocation119_spill] sm:$0xff] %v6342_v8  ;;  %4004 = vpow2.f32 %v1015_v34 }
 0x1d2   :  { %v1361_v28 = vsel %vm274_vm0, %v3989_v5, 0.0  ;;  %8795 = vst [vmem:[#allocation120_spill] sm:$0xff] %v6351_v6  ;;  %v4377_v5 = vld [vmem:[%s8509_s0 + $0x3b0] sm:$0xff]  ;;  %4006 = vpow2.f32 %v1021_v46  ;;  %v1025_v34 = vmul.f32 1.442695, %v6351_v6 }
 0x1d3   :  { %1359 = vadd.xlane.f32.xlu1 %v1358_v20  ;;  %1356 = vadd.xlane.f32.xlu0 %v1355_v24  ;;  %v3991_v20 = vpop.eup %3990  ;;  %v1364_v24 = vsel %vm274_vm0, %v3987_v16, 0.0  ;;  %v1019_v16 = vmul.f32 1.442695, %v6342_v8  ;;  %v6362_v61 = vsub.f32 %v4377_v5, %v5895_v43  ;;  %v4378_v8 = vld [vmem:[%s8509_s0 + $0x3c8] sm:$0xff] }
 0x1d4   :  { %v6333_v17 = vpop.xlane.xlu1 %1149  ;;  %v6335_v10 = vpop.xlane.xlu0 %1146  ;;  %v6371_v58 = vsub.f32 %v4378_v8, %v5913_v36 }
 0x1d5   :  { %v3993_v2 = vpop.eup %3992  ;;  %8798 = vst [vmem:[#allocation123_spill] sm:$0xff] %v6362_v61  ;;  %4008 = vpow2.f32 %v1019_v16 }
 0x1d6   :  { %v1367_v32 = vsel %vm274_vm0, %v3993_v2, 0.0  ;;  %8799 = vst [vmem:[#allocation124_spill] sm:$0xff] %v6371_v58  ;;  %v4379_v2 = vld [vmem:[%s8509_s0 + $0x3c0] sm:$0xff]  ;;  %4010 = vpow2.f32 %v1025_v34  ;;  %v1029_v16 = vmul.f32 1.442695, %v6371_v58 }
 0x1d7   :  { %1365 = vadd.xlane.f32.xlu1 %v1364_v24  ;;  %1362 = vadd.xlane.f32.xlu0 %v1361_v28  ;;  %v3995_v24 = vpop.eup %3994  ;;  %v1370_v28 = vsel %vm274_vm0, %v3991_v20, 0.0  ;;  %v1023_v20 = vmul.f32 1.442695, %v6362_v61  ;;  %v6382_v46 = vsub.f32 %v4379_v2, %v5915_v53  ;;  %v4380_v61 = vld [vmem:[%s8509_s0 + $0x3d8] sm:$0xff] }
 0x1d8   :  { %v6353_v35 = vpop.xlane.xlu1 %1155  ;;  %v6355_v62 = vpop.xlane.xlu0 %1152  ;;  %v6391_v6 = vsub.f32 %v4380_v61, %v5933_v63 }
 0x1d9   :  { %8796 = vst [vmem:[#allocation121_spill] sm:$0xff] %v6353_v35  ;;  %8797 = vst [vmem:[#allocation122_spill] sm:$0xff] %v6355_v62  ;;  %v3997_v3 = vpop.eup %3996  ;;  %4012 = vpow2.f32 %v1023_v20  ;;  %v8902_v35 = vld [vmem:[#allocation31_spill] sm:$0xff] }
 0x1da   :  { %8802 = vst [vmem:[#allocation127_spill] sm:$0xff] %v6382_v46  ;;  %v1373_v36 = vsel %vm274_vm0, %v3997_v3, 0.0  ;;  %8803 = vst [vmem:[#allocation128_spill] sm:$0xff] %v6391_v6  ;;  %v4381_v3 = vld [vmem:[%s8509_s0 + $0x3d0] sm:$0xff]  ;;  %4014 = vpow2.f32 %v1029_v16  ;;  %v1033_v20 = vmul.f32 1.442695, %v6391_v6 }
 0x1db   :  { %1371 = vadd.xlane.f32.xlu1 %v1370_v28  ;;  %1368 = vadd.xlane.f32.xlu0 %v1367_v32  ;;  %v3999_v28 = vpop.eup %3998  ;;  %v1376_v32 = vsel %vm274_vm0, %v3995_v24, 0.0  ;;  %v1027_v24 = vmul.f32 1.442695, %v6382_v46  ;;  %v6402_v34 = vsub.f32 %v4381_v3, %v5935_v19  ;;  %v4382_v46 = vld [vmem:[%s8509_s0 + $0x3e8] sm:$0xff] }
 0x1dc   :  { %v6373_v43 = vpop.xlane.xlu1 %1161  ;;  %v6375_v5 = vpop.xlane.xlu0 %1158  ;;  %v6411_v58 = vsub.f32 %v4382_v46, %v5953_v48 }
 0x1dd   :  { %8800 = vst [vmem:[#allocation125_spill] sm:$0xff] %v6373_v43  ;;  %8801 = vst [vmem:[#allocation126_spill] sm:$0xff] %v6375_v5  ;;  %v4001_v8 = vpop.eup %4000  ;;  %4016 = vpow2.f32 %v1027_v24 }
 0x1de   :  { %8806 = vst [vmem:[#allocation131_spill] sm:$0xff] %v6402_v34  ;;  %v1379_v63 = vsel %vm274_vm0, %v4001_v8, 0.0  ;;  %8807 = vst [vmem:[#allocation132_spill] sm:$0xff] %v6411_v58  ;;  %v4383_v8 = vld [vmem:[%s8509_s0 + $0x3e0] sm:$0xff]  ;;  %4018 = vpow2.f32 %v1033_v20  ;;  %v1037_v24 = vmul.f32 1.442695, %v6411_v58 }
 0x1df   :  { %1377 = vadd.xlane.f32.xlu1 %v1376_v32  ;;  %1374 = vadd.xlane.f32.xlu0 %v1373_v36  ;;  %v4003_v32 = vpop.eup %4002  ;;  %v1382_v36 = vsel %vm274_vm0, %v3999_v28, 0.0  ;;  %v1031_v28 = vmul.f32 1.442695, %v6402_v34  ;;  %v6422_v16 = vsub.f32 %v4383_v8, %v5955_v51  ;;  %v4384_v34 = vld [vmem:[%s8509_s0 + $0x3f8] sm:$0xff] }
 0x1e0   :  { %v6393_v53 = vpop.xlane.xlu1 %1167  ;;  %v6395_v2 = vpop.xlane.xlu0 %1164  ;;  %v6431_v6 = vsub.f32 %v4384_v34, %v5973_v9 }
 0x1e1   :  { %8804 = vst [vmem:[#allocation129_spill] sm:$0xff] %v6393_v53  ;;  %8805 = vst [vmem:[#allocation130_spill] sm:$0xff] %v6395_v2  ;;  %v4005_v61 = vpop.eup %4004  ;;  %4020 = vpow2.f32 %v1031_v28 }
 0x1e2   :  { %8810 = vst [vmem:[#allocation135_spill] sm:$0xff] %v6422_v16  ;;  %v1385_v48 = vsel %vm274_vm0, %v4005_v61, 0.0  ;;  %8811 = vst [vmem:[#allocation136_spill] sm:$0xff] %v6431_v6  ;;  %v4385_v61 = vld [vmem:[%s8509_s0 + $0x3f0] sm:$0xff]  ;;  %4022 = vpow2.f32 %v1037_v24  ;;  %v1041_v28 = vmul.f32 1.442695, %v6431_v6 }
 0x1e3   :  { %1383 = vadd.xlane.f32.xlu1 %v1382_v36  ;;  %1380 = vadd.xlane.f32.xlu0 %v1379_v63  ;;  %v4007_v36 = vpop.eup %4006  ;;  %v1388_v63 = vsel %vm274_vm0, %v4003_v32, 0.0  ;;  %v1035_v32 = vmul.f32 1.442695, %v6422_v16  ;;  %v6442_v20 = vsub.f32 %v4385_v61, %v5975_v1  ;;  %s3631_s0 = sshll.u32 %s4530_s16, 4  ;;  %s3632_s0 = int_to_ptr.vmem [resolvable:$true] %s3631_s0 }
 0x1e4   :  { %v6413_v19 = vpop.xlane.xlu1 %1173  ;;  %v6415_v3 = vpop.xlane.xlu0 %1170  ;;  %s4504_s17 = scalar_lea.vmem %s3632_s0, 16  ;;  %s4508_s18 = scalar_lea.vmem %s3632_s0, 32 }
 0x1e5   :  { %8808 = vst [vmem:[#allocation133_spill] sm:$0xff] %v6413_v19  ;;  %8809 = vst [vmem:[#allocation134_spill] sm:$0xff] %v6415_v3  ;;  %v4009_v46 = vpop.eup %4008  ;;  %4024 = vpow2.f32 %v1035_v32  ;;  %p4505_p0 = scmp.ne.s32.totalorder %s3632_s0, %s4504_s17  ;;  %p4509_p1 = scmp.lt.s32.totalorder %s3632_s0, %s3632_s0 }
 0x1e6   :  { %8814 = vst [vmem:[#allocation139_spill] sm:$0xff] %v6442_v20  ;;  %v1391_v9 = vsel %vm274_vm0, %v4009_v46, 0.0  ;;  %4026 = vpow2.f32 %v1041_v28  ;;  %p4510_p2 = scmp.lt.s32.totalorder %s4508_s18, %s4504_s17 }
 0x1e7   :  { %1389 = vadd.xlane.f32.xlu1 %v1388_v63  ;;  %1386 = vadd.xlane.f32.xlu0 %v1385_v48  ;;  %v4011_v63 = vpop.eup %4010  ;;  %v1394_v48 = vsel %vm274_vm0, %v4007_v36, 0.0 }
 0x1e8   :  { %v6433_v51 = vpop.xlane.xlu1 %1179  ;;  %v6435_v8 = vpop.xlane.xlu0 %1176  ;;  %v1400_v61 = vsel %vm274_vm0, %v4011_v63, 0.0  ;;  %p4511_p3 = por %p4510_p2, %p4509_p1 }
 0x1e9   :  { %8812 = vst [vmem:[#allocation137_spill] sm:$0xff] %v6433_v51  ;;  %8813 = vst [vmem:[#allocation138_spill] sm:$0xff] %v6435_v8  ;;  %v4013_v34 = vpop.eup %4012  ;;  %v1039_v51 = vmul.f32 1.442695, %v6442_v20 }
 0x1ea   :  { %v4015_v1 = vpop.eup %4014  ;;  %v1397_v36 = vsel %vm274_vm0, %v4013_v34, 0.0  ;;  %p4512_p4 = pnand %p4511_p3, %p4505_p0 }
 0x1eb   :  { %1395 = vadd.xlane.f32.xlu1 %v1394_v48  ;;  %1392 = vadd.xlane.f32.xlu0 %v1391_v9  ;;  %v4017_v8 = vpop.eup %4016  ;;  %4028 = vpow2.f32 %v1039_v51  ;;  %v1406_v9 = vsel %vm274_vm0, %v4015_v1, 0.0 }
 0x1ec   :  { %v6447_v58 = vpop.xlane.xlu1 %1185  ;;  %v6449_v16 = vpop.xlane.xlu0 %1182  ;;  %v1403_v32 = vsel %vm274_vm0, %v4017_v8, 0.0  ;;  %4030 = vlog2.f32 %v5995_v18  ;;  %v202_v18 = vld [vmem:[%s8510_s1 + $0x1c0] sm:$0xff] }
 0x1ed   :  { %8815 = vst [vmem:[#allocation140_spill] sm:$0xff] %v6447_v58  ;;  %8816 = vst [vmem:[#allocation141_spill] sm:$0xff] %v6449_v16  ;;  %v4019_v48 = vpop.eup %4018  ;;  %4032 = vlog2.f32 %v5993_v45  ;;  %v203_v45 = vld [vmem:[%s8510_s1 + $0x1c8] sm:$0xff] }
 0x1ee   :  { %v4021_v20 = vpop.eup %4020  ;;  %v1412_v28 = vsel %vm274_vm0, %v4019_v48, 0.0  ;;  %4034 = vlog2.f32 %v6015_v33  ;;  %v204_v33 = vld [vmem:[%s8510_s1 + $0x1d0] sm:$0xff] }
 0x1ef   :  { %1401 = vadd.xlane.f32.xlu1 %v1400_v61  ;;  %1398 = vadd.xlane.f32.xlu0 %v1397_v36  ;;  %v4023_v61 = vpop.eup %4022  ;;  %v1409_v36 = vsel %vm274_vm0, %v4021_v20, 0.0  ;;  %4036 = vlog2.f32 %v6013_v13  ;;  %v205_v13 = vld [vmem:[%s8510_s1 + $0x1d8] sm:$0xff] }
 0x1f0   :  { %v6454_v46 = vpop.xlane.xlu1 %1191  ;;  %v6456_v24 = vpop.xlane.xlu0 %1188  ;;  %4038 = vlog2.f32 %v6035_v57 }
 0x1f1   :  { %8817 = vst [vmem:[#allocation142_spill] sm:$0xff] %v6454_v46  ;;  %8818 = vst [vmem:[#allocation143_spill] sm:$0xff] %v6456_v24  ;;  %v4025_v6 = vpop.eup %4024  ;;  %4040 = vlog2.f32 %v6033_v44  ;;  %v206_v44 = vld [vmem:[%s8510_s1 + $0x1e0] sm:$0xff] }
 0x1f2   :  { %v4027_v8 = vpop.eup %4026  ;;  %4042 = vlog2.f32 %v6055_v55 }
 0x1f3   :  { %1407 = vadd.xlane.f32.xlu1 %v1406_v9  ;;  %1404 = vadd.xlane.f32.xlu0 %v1403_v32  ;;  %v1418_v9 = vsel %vm274_vm0, %v4023_v61, 0.0  ;;  %v1415_v32 = vsel %vm274_vm0, %v4025_v6, 0.0  ;;  %v1424_v20 = vsel %vm274_vm0, %v4027_v8, 0.0  ;;  %4044 = vlog2.f32 %v6053_v52 }
 0x1f4   :  { %v6460_v63 = vpop.xlane.xlu1 %1197  ;;  %v6462_v34 = vpop.xlane.xlu0 %1194  ;;  %4046 = vlog2.f32 %v6073_v49  ;;  %v210_v49 = vld [vmem:[%s8510_s1 + $0x200] sm:$0xff] }
 0x1f5   :  { %8819 = vst [vmem:[#allocation144_spill] sm:$0xff] %v6460_v63  ;;  %8820 = vst [vmem:[#allocation145_spill] sm:$0xff] %v6462_v34  ;;  %v4029_v63 = vpop.eup %4028  ;;  %4048 = vlog2.f32 %v6075_v15 }
 0x1f6   :  { %4050 = vlog2.f32 %v6093_v39 }
 0x1f7   :  { %1413 = vadd.xlane.f32.xlu1 %v1412_v28  ;;  %1410 = vadd.xlane.f32.xlu0 %v1409_v36  ;;  %v1421_v28 = vsel %vm274_vm0, %v4029_v63, 0.0  ;;  %v6497_v63 = vld [vmem:[%s8510_s1 + $0x8] sm:$0xff]  ;;  %4052 = vlog2.f32 %v6095_v25 }
 0x1f8   :  { %v6466_v51 = vpop.xlane.xlu1 %1203  ;;  %v6468_v1 = vpop.xlane.xlu0 %1200  ;;  %4054 = vlog2.f32 %v6113_v54 }
 0x1f9   :  { %8821 = vst [vmem:[#allocation146_spill] sm:$0xff] %v6466_v51  ;;  %8822 = vst [vmem:[#allocation147_spill] sm:$0xff] %v6468_v1  ;;  %4056 = vlog2.f32 %v6115_v29 }
 0x1fa   :  { %4058 = vlog2.f32 %v6133_v40 }
 0x1fb   :  { %1419 = vadd.xlane.f32.xlu1 %v1418_v9  ;;  %1416 = vadd.xlane.f32.xlu0 %v1415_v32  ;;  %4060 = vlog2.f32 %v6135_v14 }
 0x1fc   :  { %v6472_v34 = vpop.xlane.xlu1 %1209  ;;  %v6474_v48 = vpop.xlane.xlu0 %1206 }
 0x1fd   :  { %8823 = vst [vmem:[#allocation148_spill] sm:$0xff] %v6472_v34  ;;  %8824 = vst [vmem:[#allocation149_spill] sm:$0xff] %v6474_v48 }
 0x1ff   :  { %1425 = vadd.xlane.f32.xlu1 %v1424_v20  ;;  %1422 = vadd.xlane.f32.xlu0 %v1421_v28  ;;  %v6507_v28 = vld [vmem:[%s8510_s1 + $0x10] sm:$0xff] }
 0x200   :  { %v6478_v36 = vpop.xlane.xlu1 %1215  ;;  %v6480_v51 = vpop.xlane.xlu0 %1212 }
 0x201   :  { %8825 = vst [vmem:[#allocation150_spill] sm:$0xff] %v6478_v36  ;;  %8826 = vst [vmem:[#allocation151_spill] sm:$0xff] %v6480_v51 }
 0x204   :  { %v6482_v61 = vpop.xlane.xlu1 %1221  ;;  %v6484_v6 = vpop.xlane.xlu0 %1218 }
 0x205   :  { %8827 = vst [vmem:[#allocation152_spill] sm:$0xff] %v6482_v61  ;;  %8828 = vst [vmem:[#allocation153_spill] sm:$0xff] %v6484_v6 }
 0x208   :  { %v6486_v9 = vpop.xlane.xlu1 %1227  ;;  %v6488_v32 = vpop.xlane.xlu0 %1224 }
 0x209   :  { %8829 = vst [vmem:[#allocation154_spill] sm:$0xff] %v6486_v9  ;;  %8830 = vst [vmem:[#allocation155_spill] sm:$0xff] %v6488_v32 }
 0x20c   :  { %v6490_v34 = vpop.xlane.xlu1 %1233  ;;  %v6492_v48 = vpop.xlane.xlu0 %1230 }
 0x20d   :  { %8831 = vst [vmem:[#allocation156_spill] sm:$0xff] %v6490_v34  ;;  %8832 = vst [vmem:[#allocation157_spill] sm:$0xff] %v6492_v48  ;;  %v6512_v34 = vld [vmem:[%s8510_s1] sm:$0xff] }
 0x210   :  { %1433 = vperm.xlu1 %3773, %v6497_v63   ;;  %v6500_v8 = vpop.xlane.xlu1 %1239  ;;  %v6502_v20 = vpop.xlane.xlu0 %1236 }
 0x211   :  { %8833 = vst [vmem:[#allocation158_spill] sm:$0xff] %v6500_v8  ;;  %8834 = vst [vmem:[#allocation159_spill] sm:$0xff] %v6502_v20  ;;  %v6523_v8 = vld [vmem:[%s8510_s1 + $0x18] sm:$0xff]  ;;  %v155_v20 = vld [vmem:[%s8510_s1 + $0x48] sm:$0xff] }
 0x214   :  { %1436 = vperm.xlu1 %3773, %v6507_v28   ;;  %v6515_v48 = vpop.xlane.xlu1 %1245  ;;  %v6517_v9 = vpop.xlane.xlu0 %1242 }
 0x215   :  { %8835 = vst [vmem:[#allocation160_spill] sm:$0xff] %v6515_v48  ;;  %8836 = vst [vmem:[#allocation161_spill] sm:$0xff] %v6517_v9  ;;  %1430 = vperm.xlu0 %3772, %v6512_v34   ;;  %v6536_v48 = vld [vmem:[%s8510_s1 + $0x20] sm:$0xff]  ;;  %v157_v9 = vld [vmem:[%s8510_s1 + $0x58] sm:$0xff] }
 0x218   :  { %1439 = vperm.xlu1 %3773, %v6523_v8   ;;  %v6529_v32 = vpop.xlane.xlu1 %1251  ;;  %v6531_v61 = vpop.xlane.xlu0 %1248 }
 0x219   :  { %8837 = vst [vmem:[#allocation162_spill] sm:$0xff] %v6529_v32  ;;  %8838 = vst [vmem:[#allocation163_spill] sm:$0xff] %v6531_v61  ;;  %1457 = vperm.xlu0 %3772, %v155_v20   ;;  %v6549_v20 = vld [vmem:[%s8510_s1 + $0x28] sm:$0xff] }
 0x21a   :  { %v159_v32 = vld [vmem:[%s8510_s1 + $0x68] sm:$0xff] }
 0x21c   :  { %1442 = vperm.xlu1 %3773, %v6536_v48   ;;  %v6542_v6 = vpop.xlane.xlu1 %1257  ;;  %v6544_v36 = vpop.xlane.xlu0 %1254 }
 0x21d   :  { %8839 = vst [vmem:[#allocation164_spill] sm:$0xff] %v6542_v6  ;;  %8840 = vst [vmem:[#allocation165_spill] sm:$0xff] %v6544_v36  ;;  %1463 = vperm.xlu0 %3772, %v157_v9   ;;  %v6562_v9 = vld [vmem:[%s8510_s1 + $0x30] sm:$0xff]  ;;  %v161_v6 = vld [vmem:[%s8510_s1 + $0x78] sm:$0xff] }
 0x220   :  { %1445 = vperm.xlu1 %3773, %v6549_v20   ;;  %v6555_v61 = vpop.xlane.xlu1 %1263  ;;  %v6557_v51 = vpop.xlane.xlu0 %1260 }
 0x221   :  { %8841 = vst [vmem:[#allocation166_spill] sm:$0xff] %v6555_v61  ;;  %8842 = vst [vmem:[#allocation167_spill] sm:$0xff] %v6557_v51  ;;  %1469 = vperm.xlu0 %3772, %v159_v32   ;;  %v6575_v32 = vld [vmem:[%s8510_s1 + $0x38] sm:$0xff]  ;;  %v163_v61 = vld [vmem:[%s8510_s1 + $0x88] sm:$0xff] }
 0x224   :  { %1448 = vperm.xlu1 %3773, %v6562_v9   ;;  %v6568_v36 = vpop.xlane.xlu1 %1269  ;;  %v6570_v1 = vpop.xlane.xlu0 %1266 }
 0x225   :  { %8843 = vst [vmem:[#allocation168_spill] sm:$0xff] %v6568_v36  ;;  %8844 = vst [vmem:[#allocation169_spill] sm:$0xff] %v6570_v1  ;;  %1475 = vperm.xlu0 %3772, %v161_v6   ;;  %v6588_v6 = vld [vmem:[%s8510_s1 + $0x40] sm:$0xff]  ;;  %v165_v36 = vld [vmem:[%s8510_s1 + $0x98] sm:$0xff] }
 0x228   :  { %1451 = vperm.xlu1 %3773, %v6575_v32   ;;  %v6581_v51 = vpop.xlane.xlu1 %1275  ;;  %v6583_v46 = vpop.xlane.xlu0 %1272 }
 0x229   :  { %8845 = vst [vmem:[#allocation170_spill] sm:$0xff] %v6581_v51  ;;  %8846 = vst [vmem:[#allocation171_spill] sm:$0xff] %v6583_v46  ;;  %1481 = vperm.xlu0 %3772, %v163_v61   ;;  %v6601_v61 = vld [vmem:[%s8510_s1 + $0x50] sm:$0xff]  ;;  %v167_v51 = vld [vmem:[%s8510_s1 + $0xa8] sm:$0xff] }
 0x22c   :  { %1454 = vperm.xlu1 %3773, %v6588_v6   ;;  %v6594_v1 = vpop.xlane.xlu1 %1281  ;;  %v6596_v24 = vpop.xlane.xlu0 %1278 }
 0x22d   :  { %8847 = vst [vmem:[#allocation172_spill] sm:$0xff] %v6594_v1  ;;  %8848 = vst [vmem:[#allocation173_spill] sm:$0xff] %v6596_v24  ;;  %1487 = vperm.xlu0 %3772, %v165_v36   ;;  %v158_v36 = vld [vmem:[%s8510_s1 + $0x60] sm:$0xff]  ;;  %v169_v1 = vld [vmem:[%s8510_s1 + $0xb8] sm:$0xff] }
 0x230   :  { %1460 = vperm.xlu1 %3773, %v6601_v61   ;;  %v6607_v46 = vpop.xlane.xlu1 %1287  ;;  %v6609_v58 = vpop.xlane.xlu0 %1284 }
 0x231   :  { %8849 = vst [vmem:[#allocation174_spill] sm:$0xff] %v6607_v46  ;;  %8850 = vst [vmem:[#allocation175_spill] sm:$0xff] %v6609_v58  ;;  %1493 = vperm.xlu0 %3772, %v167_v51   ;;  %v160_v46 = vld [vmem:[%s8510_s1 + $0x70] sm:$0xff]  ;;  %v171_v51 = vld [vmem:[%s8510_s1 + $0xc8] sm:$0xff] }
 0x234   :  { %1466 = vperm.xlu1 %3773, %v158_v36   ;;  %v6617_v24 = vpop.xlane.xlu1 %1293  ;;  %v6619_v16 = vpop.xlane.xlu0 %1290  ;;  %v162_v36 = vld [vmem:[%s8510_s1 + $0x80] sm:$0xff] }
 0x235   :  { %8851 = vst [vmem:[#allocation176_spill] sm:$0xff] %v6617_v24  ;;  %8852 = vst [vmem:[#allocation177_spill] sm:$0xff] %v6619_v16  ;;  %1499 = vperm.xlu0 %3772, %v169_v1   ;;  %v173_v1 = vld [vmem:[%s8510_s1 + $0xd8] sm:$0xff] }
 0x238   :  { %1472 = vperm.xlu1 %3773, %v160_v46   ;;  %v6627_v58 = vpop.xlane.xlu1 %1299  ;;  %v6629_v19 = vpop.xlane.xlu0 %1296  ;;  %v164_v46 = vld [vmem:[%s8510_s1 + $0x90] sm:$0xff] }
 0x239   :  { %8853 = vst [vmem:[#allocation178_spill] sm:$0xff] %v6627_v58  ;;  %8854 = vst [vmem:[#allocation179_spill] sm:$0xff] %v6629_v19  ;;  %1505 = vperm.xlu0 %3772, %v171_v51   ;;  %v175_v51 = vld [vmem:[%s8510_s1 + $0xe8] sm:$0xff] }
 0x23c   :  { %1478 = vperm.xlu1 %3773, %v162_v36   ;;  %v6637_v24 = vpop.xlane.xlu1 %1305  ;;  %v6639_v16 = vpop.xlane.xlu0 %1302  ;;  %v166_v36 = vld [vmem:[%s8510_s1 + $0xa0] sm:$0xff] }
 0x23d   :  { %8855 = vst [vmem:[#allocation180_spill] sm:$0xff] %v6637_v24  ;;  %8856 = vst [vmem:[#allocation181_spill] sm:$0xff] %v6639_v16  ;;  %1511 = vperm.xlu0 %3772, %v173_v1   ;;  %v177_v1 = vld [vmem:[%s8510_s1 + $0xf8] sm:$0xff] }
 0x240   :  { %1484 = vperm.xlu1 %3773, %v164_v46   ;;  %v6647_v58 = vpop.xlane.xlu1 %1311  ;;  %v6649_v19 = vpop.xlane.xlu0 %1308  ;;  %v168_v46 = vld [vmem:[%s8510_s1 + $0xb0] sm:$0xff] }
 0x241   :  { %8857 = vst [vmem:[#allocation182_spill] sm:$0xff] %v6647_v58  ;;  %8858 = vst [vmem:[#allocation183_spill] sm:$0xff] %v6649_v19  ;;  %1517 = vperm.xlu0 %3772, %v175_v51   ;;  %v179_v51 = vld [vmem:[%s8510_s1 + $0x108] sm:$0xff] }
 0x244   :  { %1490 = vperm.xlu1 %3773, %v166_v36   ;;  %v6657_v24 = vpop.xlane.xlu1 %1317  ;;  %v6659_v16 = vpop.xlane.xlu0 %1314  ;;  %v170_v36 = vld [vmem:[%s8510_s1 + $0xc0] sm:$0xff] }
 0x245   :  { %8859 = vst [vmem:[#allocation184_spill] sm:$0xff] %v6657_v24  ;;  %8860 = vst [vmem:[#allocation185_spill] sm:$0xff] %v6659_v16  ;;  %1523 = vperm.xlu0 %3772, %v177_v1   ;;  %v181_v1 = vld [vmem:[%s8510_s1 + $0x118] sm:$0xff] }
 0x248   :  { %1496 = vperm.xlu1 %3773, %v168_v46   ;;  %v6667_v58 = vpop.xlane.xlu1 %1323  ;;  %v6669_v19 = vpop.xlane.xlu0 %1320  ;;  %v172_v46 = vld [vmem:[%s8510_s1 + $0xd0] sm:$0xff] }
 0x249   :  { %8861 = vst [vmem:[#allocation186_spill] sm:$0xff] %v6667_v58  ;;  %8862 = vst [vmem:[#allocation187_spill] sm:$0xff] %v6669_v19  ;;  %1529 = vperm.xlu0 %3772, %v179_v51   ;;  %v183_v51 = vld [vmem:[%s8510_s1 + $0x128] sm:$0xff] }
 0x24c   :  { %1502 = vperm.xlu1 %3773, %v170_v36   ;;  %v6677_v24 = vpop.xlane.xlu1 %1329  ;;  %v6679_v16 = vpop.xlane.xlu0 %1326  ;;  %v174_v36 = vld [vmem:[%s8510_s1 + $0xe0] sm:$0xff] }
 0x24d   :  { %8863 = vst [vmem:[#allocation188_spill] sm:$0xff] %v6677_v24  ;;  %8864 = vst [vmem:[#allocation189_spill] sm:$0xff] %v6679_v16  ;;  %1535 = vperm.xlu0 %3772, %v181_v1   ;;  %v185_v1 = vld [vmem:[%s8510_s1 + $0x138] sm:$0xff] }
 0x250   :  { %1508 = vperm.xlu1 %3773, %v172_v46   ;;  %v6687_v58 = vpop.xlane.xlu1 %1335  ;;  %v6689_v19 = vpop.xlane.xlu0 %1332  ;;  %v176_v46 = vld [vmem:[%s8510_s1 + $0xf0] sm:$0xff] }
 0x251   :  { %8865 = vst [vmem:[#allocation190_spill] sm:$0xff] %v6687_v58  ;;  %8866 = vst [vmem:[#allocation191_spill] sm:$0xff] %v6689_v19  ;;  %1541 = vperm.xlu0 %3772, %v183_v51   ;;  %v187_v51 = vld [vmem:[%s8510_s1 + $0x148] sm:$0xff] }
 0x254   :  { %1514 = vperm.xlu1 %3773, %v174_v36   ;;  %v6697_v16 = vpop.xlane.xlu1 %1341  ;;  %v6699_v24 = vpop.xlane.xlu0 %1338  ;;  %v178_v36 = vld [vmem:[%s8510_s1 + $0x100] sm:$0xff] }
 0x255   :  { %8867 = vst [vmem:[#allocation192_spill] sm:$0xff] %v6697_v16  ;;  %8868 = vst [vmem:[#allocation193_spill] sm:$0xff] %v6699_v24  ;;  %1547 = vperm.xlu0 %3772, %v185_v1   ;;  %v189_v1 = vld [vmem:[%s8510_s1 + $0x158] sm:$0xff] }
 0x258   :  { %1520 = vperm.xlu1 %3773, %v176_v46   ;;  %v6707_v19 = vpop.xlane.xlu1 %1347  ;;  %v6709_v58 = vpop.xlane.xlu0 %1344  ;;  %v180_v46 = vld [vmem:[%s8510_s1 + $0x110] sm:$0xff] }
 0x259   :  { %8869 = vst [vmem:[#allocation194_spill] sm:$0xff] %v6707_v19  ;;  %8870 = vst [vmem:[#allocation195_spill] sm:$0xff] %v6709_v58  ;;  %1553 = vperm.xlu0 %3772, %v187_v51   ;;  %v191_v51 = vld [vmem:[%s8510_s1 + $0x168] sm:$0xff] }
 0x25c   :  { %1526 = vperm.xlu1 %3773, %v178_v36   ;;  %v6717_v16 = vpop.xlane.xlu1 %1353  ;;  %v6719_v24 = vpop.xlane.xlu0 %1350  ;;  %v182_v36 = vld [vmem:[%s8510_s1 + $0x120] sm:$0xff] }
 0x25d   :  { %8871 = vst [vmem:[#allocation196_spill] sm:$0xff] %v6717_v16  ;;  %8872 = vst [vmem:[#allocation197_spill] sm:$0xff] %v6719_v24  ;;  %1559 = vperm.xlu0 %3772, %v189_v1   ;;  %v193_v1 = vld [vmem:[%s8510_s1 + $0x178] sm:$0xff] }
 0x260   :  { %1532 = vperm.xlu1 %3773, %v180_v46   ;;  %v6727_v19 = vpop.xlane.xlu1 %1359  ;;  %v6729_v58 = vpop.xlane.xlu0 %1356  ;;  %v184_v46 = vld [vmem:[%s8510_s1 + $0x130] sm:$0xff] }
 0x261   :  { %8873 = vst [vmem:[#allocation198_spill] sm:$0xff] %v6727_v19  ;;  %8874 = vst [vmem:[#allocation199_spill] sm:$0xff] %v6729_v58  ;;  %1565 = vperm.xlu0 %3772, %v191_v51   ;;  %v186_v19 = vld [vmem:[%s8510_s1 + $0x140] sm:$0xff] }
 0x264   :  { %1538 = vperm.xlu1 %3773, %v182_v36   ;;  %v6737_v24 = vpop.xlane.xlu1 %1365  ;;  %v6739_v16 = vpop.xlane.xlu0 %1362 }
 0x265   :  { %8875 = vst [vmem:[#allocation200_spill] sm:$0xff] %v6737_v24  ;;  %8876 = vst [vmem:[#allocation201_spill] sm:$0xff] %v6739_v16  ;;  %1571 = vperm.xlu0 %3772, %v193_v1   ;;  %v188_v1 = vld [vmem:[%s8510_s1 + $0x150] sm:$0xff] }
 0x268   :  { %1544 = vperm.xlu1 %3773, %v184_v46   ;;  %v6744_v51 = vpop.xlane.xlu1 %1371  ;;  %v6746_v58 = vpop.xlane.xlu0 %1368 }
 0x269   :  { %8877 = vst [vmem:[#allocation202_spill] sm:$0xff] %v6744_v51  ;;  %8878 = vst [vmem:[#allocation203_spill] sm:$0xff] %v6746_v58  ;;  %v190_v58 = vld [vmem:[%s8510_s1 + $0x160] sm:$0xff] }
 0x26c   :  { %1550 = vperm.xlu1 %3773, %v186_v19   ;;  %v6751_v36 = vpop.xlane.xlu1 %1377  ;;  %v6753_v24 = vpop.xlane.xlu0 %1374 }
 0x26d   :  { %8879 = vst [vmem:[#allocation204_spill] sm:$0xff] %v6751_v36  ;;  %8880 = vst [vmem:[#allocation205_spill] sm:$0xff] %v6753_v24  ;;  %v192_v24 = vld [vmem:[%s8510_s1 + $0x170] sm:$0xff] }
 0x270   :  { %1556 = vperm.xlu1 %3773, %v188_v1   ;;  %v6758_v16 = vpop.xlane.xlu1 %1383  ;;  %v6760_v46 = vpop.xlane.xlu0 %1380 }
 0x271   :  { %8881 = vst [vmem:[#allocation206_spill] sm:$0xff] %v6758_v16  ;;  %8882 = vst [vmem:[#allocation207_spill] sm:$0xff] %v6760_v46 }
 0x274   :  { %1562 = vperm.xlu1 %3773, %v190_v58   ;;  %v6765_v51 = vpop.xlane.xlu1 %1389  ;;  %v6767_v19 = vpop.xlane.xlu0 %1386 }
 0x275   :  { %8883 = vst [vmem:[#allocation208_spill] sm:$0xff] %v6765_v51  ;;  %8884 = vst [vmem:[#allocation209_spill] sm:$0xff] %v6767_v19 }
 0x278   :  { %1568 = vperm.xlu1 %3773, %v192_v24   ;;  %v6772_v36 = vpop.xlane.xlu1 %1395  ;;  %v6774_v1 = vpop.xlane.xlu0 %1392 }
 0x279   :  { %8885 = vst [vmem:[#allocation210_spill] sm:$0xff] %v6772_v36  ;;  %8886 = vst [vmem:[#allocation211_spill] sm:$0xff] %v6774_v1  ;;  %v1427_v36 = vlaneseq }
 0x27b   :  { %v6796_v43 = vand.u32 127, %v1427_v36 }
 0x27c   :  { %v6776_v16 = vpop.xlane.xlu1 %1401  ;;  %v6778_v46 = vpop.xlane.xlu0 %1398 }
 0x27d   :  { %8887 = vst [vmem:[#allocation212_spill] sm:$0xff] %v6776_v16  ;;  %8888 = vst [vmem:[#allocation213_spill] sm:$0xff] %v6778_v46 }
 0x280   :  { %v6780_v3 = vpop.xlane.xlu1 %1407  ;;  %v6782_v58 = vpop.xlane.xlu0 %1404 }
 0x281   :  { %8889 = vst [vmem:[#allocation214_spill] sm:$0xff] %v6780_v3  ;;  %8890 = vst [vmem:[#allocation215_spill] sm:$0xff] %v6782_v58 }
 0x284   :  { %v6784_v51 = vpop.xlane.xlu1 %1413  ;;  %v6786_v19 = vpop.xlane.xlu0 %1410 }
 0x285   :  { %8891 = vst [vmem:[#allocation216_spill] sm:$0xff] %v6784_v51  ;;  %8892 = vst [vmem:[#allocation217_spill] sm:$0xff] %v6786_v19  ;;  %v8897_v19 = vld [vmem:[#allocation25_spill] sm:$0xff] }
 0x288   :  { %v6788_v53 = vpop.xlane.xlu1 %1419  ;;  %v6790_v2 = vpop.xlane.xlu0 %1416 }
 0x289   :  { %8893 = vst [vmem:[#allocation218_spill] sm:$0xff] %v6788_v53  ;;  %8894 = vst [vmem:[#allocation219_spill] sm:$0xff] %v6790_v2 }
 0x28c   :  { %v6792_v24 = vpop.xlane.xlu1 %1425  ;;  %v6794_v1 = vpop.xlane.xlu0 %1422 }
 0x28d   :  { %8895 = vst [vmem:[#allocation220_spill] sm:$0xff] %v6792_v24  ;;  %8896 = vst [vmem:[#allocation221_spill] sm:$0xff] %v6794_v1 }
 0x290   :  { %v1434_v16 = vpop.permute.xlu1 %1433 }
 0x291   :  { %vm1814_vm1 = vcmp.eq.s32.totalorder %v6796_v43, %v1434_v16 }
 0x292   :  { %v1942_v1 = vsel %vm1814_vm1, %v5212_v4, 0.0 }
 0x293   :  { %v2072_v58 = vsel %vm274_vm0, %v1942_v1, 0.0  ;;  %v8899_v1 = vld [vmem:[#allocation28_spill] sm:$0xff] }
 0x294   :  { %v1437_v46 = vpop.permute.xlu1 %1436  ;;  %v1431_v3 = vpop.permute.xlu0 %1430 }
 0x295   :  { %vm1815_vm2 = vcmp.eq.s32.totalorder %v6796_v43, %v1437_v46  ;;  %vm1813_vm3 = vcmp.eq.s32.totalorder %v6796_v43, %v1431_v3 }
 0x296   :  { %v1941_v53 = vsel %vm1813_vm3, %v8897_v19, 0.0  ;;  %v1943_v36 = vsel %vm1815_vm2, %v5222_v23, 0.0  ;;  %v8898_v19 = vld [vmem:[#allocation27_spill] sm:$0xff] }
 0x297   :  { %v2069_v2 = vsel %vm274_vm0, %v1941_v53, 0.0  ;;  %v2075_v16 = vsel %vm274_vm0, %v1943_v36, 0.0 }
 0x298   :  { %v1440_v51 = vpop.permute.xlu1 %1439  ;;  %2070 = vadd.xlane.f32.xlu0 %v2069_v2  ;;  %v1458_v24 = vpop.permute.xlu0 %1457 }
 0x299   :  { %vm1816_vm4 = vcmp.eq.s32.totalorder %v6796_v43, %v1440_v51  ;;  %vm1822_vm8 = vcmp.eq.s32.totalorder %v6796_v43, %v1458_v24 }
 0x29a   :  { %v1944_v5 = vsel %vm1816_vm4, %v8898_v19, 0.0 }
 0x29b   :  { %v2078_v23 = vsel %vm274_vm0, %v1944_v5, 0.0 }
 0x29c   :  { %2073 = vadd.xlane.f32.xlu1 %v2072_v58  ;;  %v1443_v46 = vpop.permute.xlu1 %1442  ;;  %2076 = vadd.xlane.f32.xlu0 %v2075_v16  ;;  %v1464_v3 = vpop.permute.xlu0 %1463 }
 0x29d   :  { %vm1817_vm5 = vcmp.eq.s32.totalorder %v6796_v43, %v1443_v46  ;;  %vm1824_vm10 = vcmp.eq.s32.totalorder %v6796_v43, %v1464_v3 }
 0x29e   :  { %v1945_v53 = vsel %vm1817_vm5, %v5259_v60, 0.0  ;;  %v8900_v60 = vld [vmem:[#allocation30_spill] sm:$0xff] }
 0x29f   :  { %v2081_v4 = vsel %vm274_vm0, %v1945_v53, 0.0 }
 0x2a0   :  { %v1446_v2 = vpop.permute.xlu1 %1445  ;;  %2082 = vadd.xlane.f32.xlu1 %v2081_v4  ;;  %2079 = vadd.xlane.f32.xlu0 %v2078_v23  ;;  %v1470_v51 = vpop.permute.xlu0 %1469  ;;  %v8901_v23 = vld [vmem:[#allocation29_spill] sm:$0xff] }
 0x2a1   :  { %vm1818_vm6 = vcmp.eq.s32.totalorder %v6796_v43, %v1446_v2  ;;  %vm1826_vm12 = vcmp.eq.s32.totalorder %v6796_v43, %v1470_v51 }
 0x2a2   :  { %v1946_v58 = vsel %vm1818_vm6, %v8899_v1, 0.0 }
 0x2a3   :  { %v2084_v36 = vsel %vm274_vm0, %v1946_v58, 0.0 }
 0x2a4   :  { %v1449_v16 = vpop.permute.xlu1 %1448  ;;  %2085 = vadd.xlane.f32.xlu0 %v2084_v36  ;;  %v1476_v19 = vpop.permute.xlu0 %1475 }
 0x2a5   :  { %vm1819_vm7 = vcmp.eq.s32.totalorder %v6796_v43, %v1449_v16  ;;  %v1950_v16 = vsel %vm1822_vm8, %v8902_v35, 0.0  ;;  %v8905_v35 = vld [vmem:[#allocation34_spill] sm:$0xff]  ;;  %vm1828_vm14 = vcmp.eq.s32.totalorder %v6796_v43, %v1476_v19 }
 0x2a6   :  { %v1947_v46 = vsel %vm1819_vm7, %v8900_v60, 0.0  ;;  %v8903_v60 = vld [vmem:[#allocation32_spill] sm:$0xff]  ;;  %v2096_v24 = vsel %vm274_vm0, %v1950_v16, 0.0 }
 0x2a7   :  { %v2087_v53 = vsel %vm274_vm0, %v1947_v46, 0.0 }
 0x2a8   :  { %v1452_v5 = vpop.permute.xlu1 %1451  ;;  %2088 = vadd.xlane.f32.xlu1 %v2087_v53  ;;  %v1482_v4 = vpop.permute.xlu0 %1481 }
 0x2a9   :  { %vm1820_vm9 = vcmp.eq.s32.totalorder %v6796_v43, %v1452_v5  ;;  %vm1830_vm1 = vcmp.eq.s32.totalorder %v6796_v43, %v1482_v4 }
 0x2aa   :  { %v1948_v2 = vsel %vm1820_vm9, %v8901_v23, 0.0 }
 0x2ab   :  { %v2090_v1 = vsel %vm274_vm0, %v1948_v2, 0.0  ;;  %v8904_v2 = vld [vmem:[#allocation33_spill] sm:$0xff] }
 0x2ac   :  { %v1455_v58 = vpop.permute.xlu1 %1454  ;;  %2091 = vadd.xlane.f32.xlu0 %v2090_v1  ;;  %v1488_v36 = vpop.permute.xlu0 %1487  ;;  %v1952_v62 = vsel %vm1824_vm10, %v8904_v2, 0.0 }
 0x2ad   :  { %vm1821_vm11 = vcmp.eq.s32.totalorder %v6796_v43, %v1455_v58  ;;  %v2102_v58 = vsel %vm274_vm0, %v1952_v62, 0.0  ;;  %vm1832_vm3 = vcmp.eq.s32.totalorder %v6796_v43, %v1488_v36 }
 0x2ae   :  { %v1949_v46 = vsel %vm1821_vm11, %v8903_v60, 0.0 }
 0x2af   :  { %v2093_v53 = vsel %vm274_vm0, %v1949_v46, 0.0  ;;  %v8906_v46 = vld [vmem:[#allocation35_spill] sm:$0xff] }
 0x2b0   :  { %v1461_v5 = vpop.permute.xlu1 %1460  ;;  %2094 = vadd.xlane.f32.xlu1 %v2093_v53  ;;  %2097 = vadd.xlane.f32.xlu0 %v2096_v24  ;;  %v1494_v23 = vpop.permute.xlu0 %1493  ;;  %v1954_v53 = vsel %vm1826_vm12, %v8906_v46, 0.0  ;;  %v8907_v24 = vld [vmem:[#allocation36_spill] sm:$0xff] }
 0x2b1   :  { %vm1823_vm13 = vcmp.eq.s32.totalorder %v6796_v43, %v1461_v5  ;;  %v2108_v2 = vsel %vm274_vm0, %v1954_v53, 0.0  ;;  %vm1834_vm5 = vcmp.eq.s32.totalorder %v6796_v43, %v1494_v23 }
 0x2b2   :  { %v1951_v3 = vsel %vm1823_vm13, %v8905_v35, 0.0 }
 0x2b3   :  { %v2099_v1 = vsel %vm274_vm0, %v1951_v3, 0.0  ;;  %v8908_v3 = vld [vmem:[#allocation37_spill] sm:$0xff] }
 0x2b4   :  { %v1467_v60 = vpop.permute.xlu1 %1466  ;;  %2100 = vadd.xlane.f32.xlu1 %v2099_v1  ;;  %2103 = vadd.xlane.f32.xlu0 %v2102_v58  ;;  %v1500_v16 = vpop.permute.xlu0 %1499  ;;  %v1956_v1 = vsel %vm1828_vm14, %v8908_v3, 0.0  ;;  %v8909_v58 = vld [vmem:[#allocation38_spill] sm:$0xff] }
 0x2b5   :  { %vm1825_vm15 = vcmp.eq.s32.totalorder %v6796_v43, %v1467_v60  ;;  %v2114_v46 = vsel %vm274_vm0, %v1956_v1, 0.0  ;;  %vm1836_vm7 = vcmp.eq.s32.totalorder %v6796_v43, %v1500_v16 }
 0x2b6   :  { %v1953_v51 = vsel %vm1825_vm15, %v8907_v24, 0.0 }
 0x2b7   :  { %v2105_v5 = vsel %vm274_vm0, %v1953_v51, 0.0  ;;  %v8910_v51 = vld [vmem:[#allocation39_spill] sm:$0xff] }
 0x2b8   :  { %v1473_v35 = vpop.permute.xlu1 %1472  ;;  %2106 = vadd.xlane.f32.xlu1 %v2105_v5  ;;  %2109 = vadd.xlane.f32.xlu0 %v2108_v2  ;;  %v1506_v62 = vpop.permute.xlu0 %1505  ;;  %v1958_v5 = vsel %vm1830_vm1, %v8910_v51, 0.0  ;;  %v8911_v2 = vld [vmem:[#allocation40_spill] sm:$0xff] }
 0x2b9   :  { %vm1827_vm2 = vcmp.eq.s32.totalorder %v6796_v43, %v1473_v35  ;;  %v2120_v3 = vsel %vm274_vm0, %v1958_v5, 0.0  ;;  %vm1838_vm9 = vcmp.eq.s32.totalorder %v6796_v43, %v1506_v62 }
 0x2ba   :  { %v1955_v19 = vsel %vm1827_vm2, %v8909_v58, 0.0 }
 0x2bb   :  { %v2111_v60 = vsel %vm274_vm0, %v1955_v19, 0.0  ;;  %v8912_v19 = vld [vmem:[#allocation41_spill] sm:$0xff] }
 0x2bc   :  { %v1479_v24 = vpop.permute.xlu1 %1478  ;;  %2112 = vadd.xlane.f32.xlu1 %v2111_v60  ;;  %2115 = vadd.xlane.f32.xlu0 %v2114_v46  ;;  %v1512_v53 = vpop.permute.xlu0 %1511  ;;  %v1960_v60 = vsel %vm1832_vm3, %v8912_v19, 0.0  ;;  %v8913_v46 = vld [vmem:[#allocation42_spill] sm:$0xff] }
 0x2bd   :  { %vm1829_vm4 = vcmp.eq.s32.totalorder %v6796_v43, %v1479_v24  ;;  %v2126_v51 = vsel %vm274_vm0, %v1960_v60, 0.0  ;;  %vm1840_vm11 = vcmp.eq.s32.totalorder %v6796_v43, %v1512_v53 }
 0x2be   :  { %v1957_v4 = vsel %vm1829_vm4, %v8911_v2, 0.0 }
 0x2bf   :  { %v2117_v35 = vsel %vm274_vm0, %v1957_v4, 0.0  ;;  %v8914_v4 = vld [vmem:[#allocation43_spill] sm:$0xff] }
 0x2c0   :  { %v1485_v58 = vpop.permute.xlu1 %1484  ;;  %2118 = vadd.xlane.f32.xlu1 %v2117_v35  ;;  %2121 = vadd.xlane.f32.xlu0 %v2120_v3  ;;  %v1518_v1 = vpop.permute.xlu0 %1517  ;;  %v1962_v35 = vsel %vm1834_vm5, %v8914_v4, 0.0  ;;  %v8915_v3 = vld [vmem:[#allocation44_spill] sm:$0xff] }
 0x2c1   :  { %vm1831_vm6 = vcmp.eq.s32.totalorder %v6796_v43, %v1485_v58  ;;  %v2132_v19 = vsel %vm274_vm0, %v1962_v35, 0.0  ;;  %v8918_v35 = vld [vmem:[#allocation47_spill] sm:$0xff]  ;;  %vm1842_vm13 = vcmp.eq.s32.totalorder %v6796_v43, %v1518_v1 }
 0x2c2   :  { %v1959_v36 = vsel %vm1831_vm6, %v8913_v46, 0.0 }
 0x2c3   :  { %v2123_v24 = vsel %vm274_vm0, %v1959_v36, 0.0  ;;  %v8916_v36 = vld [vmem:[#allocation45_spill] sm:$0xff] }
 0x2c4   :  { %v1491_v2 = vpop.permute.xlu1 %1490  ;;  %2124 = vadd.xlane.f32.xlu1 %v2123_v24  ;;  %2127 = vadd.xlane.f32.xlu0 %v2126_v51  ;;  %v1524_v5 = vpop.permute.xlu0 %1523  ;;  %v1964_v24 = vsel %vm1836_vm7, %v8916_v36, 0.0  ;;  %v8917_v51 = vld [vmem:[#allocation46_spill] sm:$0xff] }
 0x2c5   :  { %vm1833_vm8 = vcmp.eq.s32.totalorder %v6796_v43, %v1491_v2  ;;  %v2138_v4 = vsel %vm274_vm0, %v1964_v24, 0.0  ;;  %v8920_v24 = vld [vmem:[#allocation49_spill] sm:$0xff]  ;;  %vm1844_vm15 = vcmp.eq.s32.totalorder %v6796_v43, %v1524_v5 }
 0x2c6   :  { %v1961_v23 = vsel %vm1833_vm8, %v8915_v3, 0.0 }
 0x2c7   :  { %v2129_v58 = vsel %vm274_vm0, %v1961_v23, 0.0  ;;  %v1966_v23 = vsel %vm1838_vm9, %v8918_v35, 0.0 }
 0x2c8   :  { %v1497_v46 = vpop.permute.xlu1 %1496  ;;  %2130 = vadd.xlane.f32.xlu1 %v2129_v58  ;;  %2133 = vadd.xlane.f32.xlu0 %v2132_v19  ;;  %v1530_v60 = vpop.permute.xlu0 %1529  ;;  %v8919_v19 = vld [vmem:[#allocation48_spill] sm:$0xff]  ;;  %v2144_v36 = vsel %vm274_vm0, %v1966_v23, 0.0  ;;  %v8922_v23 = vld [vmem:[#allocation5_spill] sm:$0xff] }
 0x2c9   :  { %vm1835_vm10 = vcmp.eq.s32.totalorder %v6796_v43, %v1497_v46  ;;  %vm1846_vm2 = vcmp.eq.s32.totalorder %v6796_v43, %v1530_v60 }
 0x2ca   :  { %v1963_v16 = vsel %vm1835_vm10, %v8917_v51, 0.0 }
 0x2cb   :  { %v2135_v2 = vsel %vm274_vm0, %v1963_v16, 0.0  ;;  %v1968_v16 = vsel %vm1840_vm11, %v8920_v24, 0.0 }
 0x2cc   :  { %v1503_v3 = vpop.permute.xlu1 %1502  ;;  %2136 = vadd.xlane.f32.xlu1 %v2135_v2  ;;  %2139 = vadd.xlane.f32.xlu0 %v2138_v4  ;;  %v1536_v58 = vpop.permute.xlu0 %1535  ;;  %v8921_v2 = vld [vmem:[#allocation6_spill] sm:$0xff] }
 0x2cd   :  { %vm1837_vm12 = vcmp.eq.s32.totalorder %v6796_v43, %v1503_v3  ;;  %v2150_v3 = vsel %vm274_vm0, %v1968_v16, 0.0  ;;  %v8924_v16 = vld [vmem:[#allocation8_spill] sm:$0xff]  ;;  %vm1848_vm4 = vcmp.eq.s32.totalorder %v6796_v43, %v1536_v58 }
 0x2ce   :  { %v1965_v62 = vsel %vm1837_vm12, %v8919_v19, 0.0 }
 0x2cf   :  { %v2141_v46 = vsel %vm274_vm0, %v1965_v62, 0.0  ;;  %v1970_v62 = vsel %vm1842_vm13, %v8922_v23, 0.0 }
 0x2d0   :  { %v1509_v51 = vpop.permute.xlu1 %1508  ;;  %2142 = vadd.xlane.f32.xlu1 %v2141_v46  ;;  %2145 = vadd.xlane.f32.xlu0 %v2144_v36  ;;  %v1542_v35 = vpop.permute.xlu0 %1541  ;;  %v8923_v46 = vld [vmem:[#allocation7_spill] sm:$0xff] }
 0x2d1   :  { %vm1839_vm14 = vcmp.eq.s32.totalorder %v6796_v43, %v1509_v51  ;;  %v2156_v51 = vsel %vm274_vm0, %v1970_v62, 0.0  ;;  %v8926_v62 = vld [vmem:[#allocation10_spill] sm:$0xff]  ;;  %vm1850_vm6 = vcmp.eq.s32.totalorder %v6796_v43, %v1542_v35 }
 0x2d2   :  { %v1967_v53 = vsel %vm1839_vm14, %v8921_v2, 0.0  ;;  %v1972_v2 = vsel %vm1844_vm15, %v8924_v16, 0.0 }
 0x2d3   :  { %v2147_v4 = vsel %vm274_vm0, %v1967_v53, 0.0 }
 0x2d4   :  { %v1515_v19 = vpop.permute.xlu1 %1514  ;;  %2148 = vadd.xlane.f32.xlu1 %v2147_v4  ;;  %2151 = vadd.xlane.f32.xlu0 %v2150_v3  ;;  %v1548_v53 = vpop.permute.xlu0 %1547  ;;  %v8925_v4 = vld [vmem:[#allocation9_spill] sm:$0xff] }
 0x2d5   :  { %vm1841_vm1 = vcmp.eq.s32.totalorder %v6796_v43, %v1515_v19  ;;  %v2162_v19 = vsel %vm274_vm0, %v1972_v2, 0.0  ;;  %v8928_v2 = vld [vmem:[#allocation12_spill] sm:$0xff]  ;;  %vm1852_vm8 = vcmp.eq.s32.totalorder %v6796_v43, %v1548_v53 }
 0x2d6   :  { %v1969_v1 = vsel %vm1841_vm1, %v8923_v46, 0.0  ;;  %v1974_v46 = vsel %vm1846_vm2, %v8926_v62, 0.0  ;;  %v8930_v62 = vld [vmem:[#allocation14_spill] sm:$0xff] }
 0x2d7   :  { %v2153_v36 = vsel %vm274_vm0, %v1969_v1, 0.0  ;;  %v8927_v1 = vld [vmem:[#allocation11_spill] sm:$0xff] }
 0x2d8   :  { %v1521_v24 = vpop.permute.xlu1 %1520  ;;  %2154 = vadd.xlane.f32.xlu1 %v2153_v36  ;;  %2157 = vadd.xlane.f32.xlu0 %v2156_v51  ;;  %v2168_v51 = vsel %vm274_vm0, %v1974_v46, 0.0  ;;  %v1978_v46 = vsel %vm1850_vm6, %v8930_v62, 0.0  ;;  %v8934_v62 = vld [vmem:[#allocation18_spill] sm:$0xff]  ;;  %vm2455_vm6 = vcmp.ge.s32.totalorder %v6507_v28, 0 }
 0x2d9   :  { %vm1843_vm3 = vcmp.eq.s32.totalorder %v6796_v43, %v1521_v24  ;;  %v1554_v24 = vpop.permute.xlu0 %1553 }
 0x2da   :  { %v1971_v5 = vsel %vm1843_vm3, %v8925_v4, 0.0  ;;  %v1976_v4 = vsel %vm1848_vm4, %v8928_v2, 0.0  ;;  %v8932_v2 = vld [vmem:[#allocation16_spill] sm:$0xff]  ;;  %vm1854_vm10 = vcmp.eq.s32.totalorder %v6796_v43, %v1554_v24  ;;  %vm2453_vm4 = vcmp.ge.s32.totalorder %v6512_v34, 0  ;;  %v207_v34 = vld [vmem:[%s8510_s1 + $0x1e8] sm:$0xff] }
 0x2db   :  { %v2159_v3 = vsel %vm274_vm0, %v1971_v5, 0.0  ;;  %v8929_v5 = vld [vmem:[#allocation13_spill] sm:$0xff] }
 0x2dc   :  { %v1527_v23 = vpop.permute.xlu1 %1526  ;;  %2160 = vadd.xlane.f32.xlu1 %v2159_v3  ;;  %2163 = vadd.xlane.f32.xlu0 %v2162_v19  ;;  %v2174_v19 = vsel %vm274_vm0, %v1976_v4, 0.0  ;;  %v1980_v4 = vsel %vm1852_vm8, %v8932_v2, 0.0  ;;  %v8936_v2 = vld [vmem:[#allocation21_spill] sm:$0xff]  ;;  %vm2457_vm8 = vcmp.ge.s32.totalorder %v6536_v48, 0 }
 0x2dd   :  { %vm1845_vm5 = vcmp.eq.s32.totalorder %v6796_v43, %v1527_v23 }
 0x2de   :  { %v1973_v60 = vsel %vm1845_vm5, %v8927_v1, 0.0  ;;  %v1560_v1 = vpop.permute.xlu0 %1559  ;;  %vm2454_vm5 = vcmp.ge.s32.totalorder %v6497_v63, 0 }
 0x2df   :  { %v2165_v36 = vsel %vm274_vm0, %v1973_v60, 0.0  ;;  %v8931_v60 = vld [vmem:[#allocation15_spill] sm:$0xff]  ;;  %vm1856_vm13 = vcmp.eq.s32.totalorder %v6796_v43, %v1560_v1 }
 0x2e0   :  { %v1533_v16 = vpop.permute.xlu1 %1532  ;;  %2166 = vadd.xlane.f32.xlu1 %v2165_v36  ;;  %2169 = vadd.xlane.f32.xlu0 %v2168_v51  ;;  %v2180_v51 = vsel %vm274_vm0, %v1978_v46, 0.0  ;;  %v1982_v46 = vsel %vm1854_vm10, %v8934_v62, 0.0  ;;  %vm2458_vm10 = vcmp.ge.s32.totalorder %v6549_v20, 0  ;;  %v213_v20 = vld [vmem:[%s8510_s1 + $0x218] sm:$0xff] }
 0x2e1   :  { %vm1847_vm7 = vcmp.eq.s32.totalorder %v6796_v43, %v1533_v16 }
 0x2e2   :  { %v1975_v58 = vsel %vm1847_vm7, %v8929_v5, 0.0  ;;  %v8933_v5 = vld [vmem:[#allocation17_spill] sm:$0xff]  ;;  %vm2456_vm7 = vcmp.ge.s32.totalorder %v6523_v8, 0 }
 0x2e3   :  { %v2171_v3 = vsel %vm274_vm0, %v1975_v58, 0.0 }
 0x2e4   :  { %v1539_v23 = vpop.permute.xlu1 %1538  ;;  %2172 = vadd.xlane.f32.xlu1 %v2171_v3  ;;  %2175 = vadd.xlane.f32.xlu0 %v2174_v19  ;;  %v2186_v3 = vsel %vm274_vm0, %v1980_v4, 0.0  ;;  %v1566_v19 = vpop.permute.xlu0 %1565 }
 0x2e5   :  { %vm1849_vm9 = vcmp.eq.s32.totalorder %v6796_v43, %v1539_v23  ;;  %vm1858_vm15 = vcmp.eq.s32.totalorder %v6796_v43, %v1566_v19 }
 0x2e6   :  { %v1977_v35 = vsel %vm1849_vm9, %v8931_v60, 0.0  ;;  %v8935_v60 = vld [vmem:[#allocation19_spill] sm:$0xff]  ;;  %vm3350_vm9 = vcmask 7168  }
 0x2e7   :  { %v2177_v36 = vsel %vm274_vm0, %v1977_v35, 0.0 }
 0x2e8   :  { %v1545_v16 = vpop.permute.xlu1 %1544  ;;  %2178 = vadd.xlane.f32.xlu1 %v2177_v36  ;;  %2181 = vadd.xlane.f32.xlu0 %v2180_v51  ;;  %v2192_v36 = vsel %vm274_vm0, %v1982_v46, 0.0 }
 0x2e9   :  { %vm1851_vm11 = vcmp.eq.s32.totalorder %v6796_v43, %v1545_v16  ;;  %v1572_v16 = vpop.permute.xlu0 %1571 }
 0x2ea   :  { %v1979_v53 = vsel %vm1851_vm11, %v8933_v5, 0.0  ;;  %vm1860_vm1 = vcmp.eq.s32.totalorder %v6796_v43, %v1572_v16  ;;  %vm2459_vm11 = vcmp.ge.s32.totalorder %v6562_v9, 0 }
 0x2eb   :  { %v2183_v58 = vsel %vm274_vm0, %v1979_v53, 0.0 }
 0x2ec   :  { %v1551_v23 = vpop.permute.xlu1 %1550  ;;  %2184 = vadd.xlane.f32.xlu1 %v2183_v58  ;;  %2187 = vadd.xlane.f32.xlu0 %v2186_v3  ;;  %v8937_v58 = vld [vmem:[#allocation20_spill] sm:$0xff] }
 0x2ed   :  { %vm1853_vm12 = vcmp.eq.s32.totalorder %v6796_v43, %v1551_v23  ;;  %v1984_v3 = vsel %vm1856_vm13, %v8937_v58, 0.0  ;;  %v8938_v23 = vld [vmem:[#allocation23_spill] sm:$0xff]  ;;  %v195_v58 = vld [vmem:[%s8510_s1 + $0x188] sm:$0xff] }
 0x2ee   :  { %v1981_v35 = vsel %vm1853_vm12, %v8935_v60, 0.0  ;;  %v2198_v46 = vsel %vm274_vm0, %v1984_v3, 0.0  ;;  %v196_v3 = vld [vmem:[%s8510_s1 + $0x190] sm:$0xff]  ;;  %vm2460_vm12 = vcmp.ge.s32.totalorder %v6575_v32, 0  ;;  %v217_v32 = vld [vmem:[%s8510_s1 + $0x238] sm:$0xff] }
 0x2ef   :  { %v2189_v24 = vsel %vm274_vm0, %v1981_v35, 0.0  ;;  %v8939_v35 = vld [vmem:[#allocation22_spill] sm:$0xff] }
 0x2f0   :  { %v1557_v51 = vpop.permute.xlu1 %1556  ;;  %2190 = vadd.xlane.f32.xlu1 %v2189_v24  ;;  %2193 = vadd.xlane.f32.xlu0 %v2192_v36  ;;  %v1986_v24 = vsel %vm1858_vm15, %v8939_v35, 0.0  ;;  %v8940_v36 = vld [vmem:[#allocation24_spill] sm:$0xff]  ;;  %v4031_v35 = vpop.eup %4030  ;;  %4062 = vlog2.f32 %v6153_v22 }
 0x2f1   :  { %vm1855_vm14 = vcmp.eq.s32.totalorder %v6796_v43, %v1557_v51  ;;  %v1988_v51 = vsel %vm1860_vm1, %v8940_v36, 0.0  ;;  %v2204_v19 = vsel %vm274_vm0, %v1986_v24, 0.0  ;;  %v4033_v24 = vpop.eup %4032  ;;  %v2838_v57 = vmul.f32 0.6931472, %v4031_v35 }
 0x2f2   :  { %v1983_v4 = vsel %vm1855_vm14, %v8936_v2, 0.0  ;;  %v2210_v16 = vsel %vm274_vm0, %v1988_v51, 0.0  ;;  %v8941_v2 = vld [vmem:[#allocation26_spill] sm:$0xff]  ;;  %v4035_v36 = vpop.eup %4034  ;;  %vm2461_vm14 = vcmp.ge.s32.totalorder %v6588_v6, 0  ;;  %vm2463_vm1 = vcmp.ge.s32.totalorder %v6601_v61, 0  ;;  %v4390_v61 = vld [vmem:[%s8510_s1 + $0x78] sm:$0xff] }
 0x2f3   :  { %v2195_v5 = vsel %vm274_vm0, %v1983_v4, 0.0  ;;  %v2842_v63 = vmul.f32 0.6931472, %v4035_v36  ;;  %4064 = vlog2.f32 %v6155_v37  ;;  %v4389_v37 = vld [vmem:[%s8510_s1 + $0x60] sm:$0xff] }
 0x2f4   :  { %v1563_v53 = vpop.permute.xlu1 %1562  ;;  %2196 = vadd.xlane.f32.xlu1 %v2195_v5  ;;  %4066 = vlog2.f32 %v6173_v31  ;;  %v221_v31 = vld [vmem:[%s8510_s1 + $0x258] sm:$0xff] }
 0x2f5   :  { %vm1857_vm2 = vcmp.eq.s32.totalorder %v6796_v43, %v1563_v53  ;;  %v194_v53 = vld [vmem:[%s8510_s1 + $0x180] sm:$0xff] }
 0x2f6   :  { %v1985_v62 = vsel %vm1857_vm2, %v8938_v23, 0.0  ;;  %v197_v23 = vld [vmem:[%s8510_s1 + $0x198] sm:$0xff] }
 0x2f7   :  { %v2201_v1 = vsel %vm274_vm0, %v1985_v62, 0.0  ;;  %v198_v62 = vld [vmem:[%s8510_s1 + $0x1a0] sm:$0xff] }
 0x2f8   :  { %v1569_v60 = vpop.permute.xlu1 %1568  ;;  %2202 = vadd.xlane.f32.xlu0 %v2201_v1  ;;  %2199 = vadd.xlane.f32.xlu1 %v2198_v46  ;;  %v199_v1 = vld [vmem:[%s8510_s1 + $0x1a8] sm:$0xff]  ;;  %v200_v46 = vld [vmem:[%s8510_s1 + $0x1b0] sm:$0xff] }
 0x2f9   :  { %vm1859_vm3 = vcmp.eq.s32.totalorder %v6796_v43, %v1569_v60  ;;  %v201_v60 = vld [vmem:[%s8510_s1 + $0x1b8] sm:$0xff] }
 0x2fa   :  { %v1987_v4 = vsel %vm1859_vm3, %v8941_v2, 0.0  ;;  %vm2465_vm3 = vcmp.ge.s32.totalorder %v4389_v37, 0  ;;  %v224_v37 = vld [vmem:[%s8510_s1 + $0x270] sm:$0xff] }
 0x2fb   :  { %v2207_v5 = vsel %vm274_vm0, %v1987_v4, 0.0  ;;  %v4037_v4 = vpop.eup %4036  ;;  %4068 = vlog2.f32 %v6175_v41  ;;  %v4391_v41 = vld [vmem:[%s8510_s1 + $0x70] sm:$0xff] }
 0x2fc   :  { %2205 = vadd.xlane.f32.xlu1 %v2204_v19  ;;  %2211 = vadd.xlane.f32.xlu0 %v2210_v16  ;;  %v4529_v16 = vmov 0.0  }
 0x2fd   :  { %v3639_v2 = vsel %vm2453_vm4, 1.0, %v4529_v16  ;;  %v3641_v55 = vsel %vm2455_vm6, 1.0, %v4529_v16  ;;  %v3642_v36 = vsel %vm2456_vm7, 1.0, %v4529_v16  ;;  %v3647_v14 = vsel %vm2461_vm14, 1.0, %v4529_v16 }
 0x2fe   :  { %vm2468_vm4 = vcmp.ge.s32.totalorder %v4390_v61, 0 }
 0x300   :  { %2208 = vadd.xlane.f32.xlu1 %v2207_v5  ;;  %v2840_v5 = vmul.f32 0.6931472, %v4033_v24 }
 0x311   :  { %1574 = vperm.xlu1 %3773, %v194_v53   ;;  %v4039_v53 = vpop.eup %4038  ;;  %4070 = vlog2.f32 %v6193_v7  ;;  %v223_v7 = vld [vmem:[%s8510_s1 + $0x268] sm:$0xff] }
 0x312   :  { %1577 = vperm.xlu0 %3772, %v195_v58   ;;  %v2846_v35 = vmul.f32 0.6931472, %v4039_v53 }
 0x315   :  { %1580 = vperm.xlu1 %3773, %v196_v3   ;;  %v3640_v3 = vsel %vm2454_vm5, 1.0, %v4529_v16  ;;  %vm2467_vm5 = vcmp.ge.s32.totalorder %v4391_v41, 0  ;;  %v4396_v41 = vld [vmem:[%s8510_s1 + $0xa8] sm:$0xff] }
 0x316   :  { %1583 = vperm.xlu0 %3772, %v197_v23  }
 0x319   :  { %1586 = vperm.xlu1 %3773, %v198_v62  }
 0x31a   :  { %1589 = vperm.xlu0 %3772, %v199_v1  }
 0x31d   :  { %1592 = vperm.xlu1 %3773, %v200_v46  }
 0x31e   :  { %1595 = vperm.xlu0 %3772, %v201_v60   ;;  %v208_v60 = vld [vmem:[%s8510_s1 + $0x1f0] sm:$0xff] }
 0x321   :  { %1598 = vperm.xlu1 %3773, %v202_v18   ;;  %v209_v18 = vld [vmem:[%s8510_s1 + $0x1f8] sm:$0xff] }
 0x322   :  { %1601 = vperm.xlu0 %3772, %v203_v45  }
 0x325   :  { %1604 = vperm.xlu1 %3773, %v204_v33   ;;  %v2071_v51 = vpop.xlane.xlu0 %2070  ;;  %v2844_v33 = vmul.f32 0.6931472, %v4037_v4 }
 0x326   :  { %v3093_v19 = vsub.f32 %v2838_v57, %v2071_v51  ;;  %1607 = vperm.xlu0 %3772, %v205_v13   ;;  %v4041_v13 = vpop.eup %4040  ;;  %v3643_v57 = vsel %vm2457_vm8, 1.0, %v4529_v16  ;;  %4072 = vlog2.f32 %v6195_v47  ;;  %v4393_v47 = vld [vmem:[%s8510_s1 + $0x80] sm:$0xff] }
 0x327   :  { %v4043_v53 = vpop.eup %4042  ;;  %vm2469_vm7 = vcmp.ge.s32.totalorder %v4393_v47, 0  ;;  %4074 = vlog2.f32 %v6213_v59  ;;  %v226_v59 = vld [vmem:[%s8510_s1 + $0x280] sm:$0xff] }
 0x328   :  { %v3221_v62 = vmul.f32 %v3639_v2, %v3093_v19  ;;  %v4045_v9 = vpop.eup %4044  ;;  %4076 = vlog2.f32 %v6215_v56  ;;  %v4395_v56 = vld [vmem:[%s8510_s1 + $0x90] sm:$0xff] }
 0x329   :  { %v2074_v58 = vpop.xlane.xlu1 %2073  ;;  %1610 = vperm.xlu1 %3773, %v206_v44   ;;  %v2077_v23 = vpop.xlane.xlu0 %2076  ;;  %v2852_v54 = vmul.f32 0.6931472, %v4045_v9 }
 0x32a   :  { %v3094_v1 = vsub.f32 %v2840_v5, %v2074_v58  ;;  %v3095_v46 = vsub.f32 %v2842_v63, %v2077_v23  ;;  %1613 = vperm.xlu0 %3772, %v207_v34   ;;  %v3351_v51 = vsel %vm3350_vm9, %v3221_v62, 0.0  ;;  %v211_v34 = vld [vmem:[%s8510_s1 + $0x208] sm:$0xff]  ;;  %v2848_v63 = vmul.f32 0.6931472, %v4041_v13  ;;  %v212_v62 = vld [vmem:[%s8510_s1 + $0x210] sm:$0xff]  ;;  %v4047_v13 = vpop.eup %4046 }
 0x32b   :  { %v3644_v23 = vsel %vm2458_vm10, 1.0, %v4529_v16  ;;  %vm2471_vm10 = vcmp.ge.s32.totalorder %v4395_v56, 0  ;;  %4078 = vlog2.f32 %v6233_v0  ;;  %v229_v0 = vld [vmem:[%s8510_s1 + $0x298] sm:$0xff] }
 0x32c   :  { %v3222_v45 = vmul.f32 %v3640_v3, %v3094_v1  ;;  %v3223_v28 = vmul.f32 %v3641_v55, %v3095_v46 }
 0x32d   :  { %v2083_v24 = vpop.xlane.xlu1 %2082  ;;  %1616 = vperm.xlu1 %3773, %v208_v60   ;;  %v2080_v52 = vpop.xlane.xlu0 %2079  ;;  %v2850_v60 = vmul.f32 0.6931472, %v4043_v53 }
 0x32e   :  { %v3352_v19 = vsel %vm3350_vm9, %v3222_v45, 0.0  ;;  %v3097_v44 = vsub.f32 %v2846_v35, %v2083_v24  ;;  %v3096_v2 = vsub.f32 %v2844_v33, %v2080_v52  ;;  %1619 = vperm.xlu0 %3772, %v209_v18   ;;  %v3354_v8 = vsel %vm3350_vm9, %v3223_v28, 0.0  ;;  %v214_v33 = vld [vmem:[%s8510_s1 + $0x220] sm:$0xff] }
 0x32f   :  { %v3353_v48 = vadd.f32 %v3352_v19, %v3351_v51  ;;  %v3645_v28 = vsel %vm2459_vm11, 1.0, %v4529_v16  ;;  %v4386_v51 = vld [vmem:[%s8510_s1 + $0x48] sm:$0xff]  ;;  %vm2474_vm11 = vcmp.ge.s32.totalorder %v4396_v41, 0 }
 0x330   :  { %v3225_v4 = vmul.f32 %v3643_v57, %v3097_v44  ;;  %v3224_v5 = vmul.f32 %v3642_v36, %v3096_v2  ;;  %v215_v57 = vld [vmem:[%s8510_s1 + $0x228] sm:$0xff]  ;;  %v4049_v36 = vpop.eup %4048  ;;  %vm2462_vm13 = vcmp.ge.s32.totalorder %v4386_v51, 0  ;;  %v3646_v44 = vsel %vm2460_vm12, 1.0, %v4529_v16 }
 0x331   :  { %v3355_v58 = vadd.f32 %v3354_v8, %v3353_v48  ;;  %1622 = vperm.xlu1 %3773, %v210_v49   ;;  %v2086_v3 = vpop.xlane.xlu0 %2085  ;;  %v216_v49 = vld [vmem:[%s8510_s1 + $0x230] sm:$0xff]  ;;  %v2854_v40 = vmul.f32 0.6931472, %v4049_v36  ;;  %4080 = vlog2.f32 %v6235_v21  ;;  %v4397_v21 = vld [vmem:[%s8510_s1 + $0xa0] sm:$0xff] }
 0x332   :  { %v3356_v15 = vsel %vm3350_vm9, %v3224_v5, 0.0  ;;  %v3098_v55 = vsub.f32 %v2848_v63, %v2086_v3  ;;  %1625 = vperm.xlu0 %3772, %v211_v34   ;;  %v3358_v46 = vsel %vm3350_vm9, %v3225_v4, 0.0  ;;  %v4051_v34 = vpop.eup %4050  ;;  %v2856_v4 = vmul.f32 0.6931472, %v4047_v13  ;;  %v4387_v63 = vld [vmem:[%s8510_s1 + $0x58] sm:$0xff] }
 0x333   :  { %v3357_v1 = vadd.f32 %v3356_v15, %v3355_v58  ;;  %v4053_v5 = vpop.eup %4052  ;;  %vm2464_vm15 = vcmp.ge.s32.totalorder %v4387_v63, 0  ;;  %v3648_v3 = vsel %vm2462_vm13, 1.0, %v4529_v16  ;;  %v222_v63 = vld [vmem:[%s8510_s1 + $0x260] sm:$0xff]  ;;  %vm2473_vm12 = vcmp.ge.s32.totalorder %v4397_v21, 0 }
 0x334   :  { %v3226_v39 = vmul.f32 %v3644_v23, %v3098_v55  ;;  %v2858_v22 = vmul.f32 0.6931472, %v4053_v5  ;;  %4082 = vlog2.f32 %v6253_v38  ;;  %v230_v38 = vld [vmem:[%s8510_s1 + $0x2a0] sm:$0xff] }
 0x335   :  { %v3359_v18 = vadd.f32 %v3358_v46, %v3357_v1  ;;  %v2089_v45 = vpop.xlane.xlu1 %2088  ;;  %1628 = vperm.xlu1 %3773, %v212_v62   ;;  %v218_v62 = vld [vmem:[%s8510_s1 + $0x240] sm:$0xff]  ;;  %v219_v1 = vld [vmem:[%s8510_s1 + $0x248] sm:$0xff]  ;;  %4084 = vlog2.f32 %v6255_v30  ;;  %v4399_v30 = vld [vmem:[%s8510_s1 + $0xb0] sm:$0xff] }
 0x336   :  { %v3360_v25 = vsel %vm3350_vm9, %v3226_v39, 0.0  ;;  %v3099_v35 = vsub.f32 %v2850_v60, %v2089_v45  ;;  %1631 = vperm.xlu0 %3772, %v213_v20   ;;  %v4055_v20 = vpop.eup %4054  ;;  %v2860_v60 = vmul.f32 0.6931472, %v4051_v34  ;;  %vm2475_vm14 = vcmp.ge.s32.totalorder %v4399_v30, 0 }
 0x337   :  { %v3361_v24 = vadd.f32 %v3360_v25, %v3359_v18  ;;  %v4057_v9 = vpop.eup %4056  ;;  %v4388_v18 = vld [vmem:[%s8510_s1 + $0x68] sm:$0xff]  ;;  %4086 = vlog2.f32 %v6273_v50 }
 0x338   :  { %v3227_v52 = vmul.f32 %v3645_v28, %v3099_v35  ;;  %vm2466_vm2 = vcmp.ge.s32.totalorder %v4388_v18, 0  ;;  %v3649_v28 = vsel %vm2463_vm1, 1.0, %v4529_v16  ;;  %v3650_v35 = vsel %vm2464_vm15, 1.0, %v4529_v16  ;;  %v4059_v36 = vpop.eup %4058 }
 0x339   :  { %1634 = vperm.xlu1 %3773, %v214_v33   ;;  %v2092_v19 = vpop.xlane.xlu0 %2091  ;;  %4088 = vlog2.f32 %v6275_v12 }
 0x33a   :  { %v3362_v29 = vsel %vm3350_vm9, %v3227_v52, 0.0  ;;  %v3100_v2 = vsub.f32 %v2852_v54, %v2092_v19  ;;  %1637 = vperm.xlu0 %3772, %v215_v57   ;;  %v220_v57 = vld [vmem:[%s8510_s1 + $0x250] sm:$0xff]  ;;  %v2864_v54 = vmul.f32 0.6931472, %v4055_v20  ;;  %4090 = vlog2.f32 %v6295_v42 }
 0x33b   :  { %v3363_v48 = vadd.f32 %v3362_v29, %v3361_v24  ;;  %v2862_v29 = vmul.f32 0.6931472, %v4057_v9  ;;  %v8958_v42 = vld [vmem:[#allocation67_spill] sm:$0xff] }
 0x33c   :  { %v3228_v8 = vmul.f32 %v3646_v44, %v3100_v2  ;;  %v4061_v2 = vpop.eup %4060  ;;  %4092 = vlog2.f32 %v6293_v27  ;;  %v263_v27 = vld [vmem:[%s8510_s1 + $0x3a8] sm:$0xff] }
 0x33d   :  { %v2095_v53 = vpop.xlane.xlu1 %2094  ;;  %1640 = vperm.xlu1 %3773, %v216_v49   ;;  %v2098_v58 = vpop.xlane.xlu0 %2097 }
 0x33e   :  { %v3364_v23 = vsel %vm3350_vm9, %v3228_v8, 0.0  ;;  %v3101_v15 = vsub.f32 %v2854_v40, %v2095_v53  ;;  %v3102_v55 = vsub.f32 %v2856_v4, %v2098_v58  ;;  %1643 = vperm.xlu0 %3772, %v217_v32   ;;  %v3651_v32 = vsel %vm2465_vm3, 1.0, %v4529_v16  ;;  %v4392_v53 = vld [vmem:[%s8510_s1 + $0x88] sm:$0xff] }
 0x33f   :  { %v3365_v6 = vadd.f32 %v3364_v23, %v3363_v48  ;;  %v3652_v8 = vsel %vm2466_vm2, 1.0, %v4529_v16  ;;  %vm2470_vm6 = vcmp.ge.s32.totalorder %v4392_v53, 0  ;;  %v2868_v58 = vmul.f32 0.6931472, %v4059_v36 }
 0x340   :  { %v3229_v46 = vmul.f32 %v3647_v14, %v3101_v15  ;;  %v3230_v39 = vmul.f32 %v3648_v3, %v3102_v55  ;;  %v4063_v3 = vpop.eup %4062  ;;  %4094 = vlog2.f32 %v6315_v26  ;;  %v4406_v26 = vld [vmem:[%s8510_s1 + $0xf0] sm:$0xff] }
 0x341   :  { %v2101_v45 = vpop.xlane.xlu1 %2100  ;;  %1646 = vperm.xlu1 %3773, %v218_v62   ;;  %v2104_v25 = vpop.xlane.xlu0 %2103  ;;  %v2866_v62 = vmul.f32 0.6931472, %v4061_v2  ;;  %v225_v2 = vld [vmem:[%s8510_s1 + $0x278] sm:$0xff] }
 0x342   :  { %v3366_v33 = vsel %vm3350_vm9, %v3229_v46, 0.0  ;;  %v3103_v13 = vsub.f32 %v2858_v22, %v2101_v45  ;;  %v3104_v24 = vsub.f32 %v2860_v60, %v2104_v25  ;;  %1649 = vperm.xlu0 %3772, %v219_v1   ;;  %v3368_v51 = vsel %vm3350_vm9, %v3230_v39, 0.0  ;;  %v4394_v45 = vld [vmem:[%s8510_s1 + $0x98] sm:$0xff] }
 0x343   :  { %v3367_v52 = vadd.f32 %v3366_v33, %v3365_v6  ;;  %v4065_v6 = vpop.eup %4064  ;;  %v3653_v46 = vsel %vm2467_vm5, 1.0, %v4529_v16  ;;  %v3654_v22 = vsel %vm2468_vm4, 1.0, %v4529_v16  ;;  %vm2472_vm8 = vcmp.ge.s32.totalorder %v4394_v45, 0 }
 0x344   :  { %v3231_v19 = vmul.f32 %v3649_v28, %v3103_v13  ;;  %v3232_v44 = vmul.f32 %v3650_v35, %v3104_v24  ;;  %v2872_v25 = vmul.f32 0.6931472, %v4063_v3  ;;  %v4067_v35 = vpop.eup %4066  ;;  %4096 = vlog2.f32 %v6313_v11 }
 0x345   :  { %v3369_v49 = vadd.f32 %v3368_v51, %v3367_v52  ;;  %v2107_v48 = vpop.xlane.xlu1 %2106  ;;  %1652 = vperm.xlu1 %3773, %v220_v57   ;;  %v2110_v34 = vpop.xlane.xlu0 %2109  ;;  %v2870_v57 = vmul.f32 0.6931472, %v4065_v6  ;;  %v3656_v51 = vsel %vm2470_vm6, 1.0, %v4529_v16  ;;  %4098 = vlog2.f32 %v6335_v10 }
 0x346   :  { %v3370_v40 = vsel %vm3350_vm9, %v3231_v19, 0.0  ;;  %v3105_v4 = vsub.f32 %v2862_v29, %v2107_v48  ;;  %v3106_v5 = vsub.f32 %v2864_v54, %v2110_v34  ;;  %1655 = vperm.xlu0 %3772, %v221_v31   ;;  %v3372_v23 = vsel %vm3350_vm9, %v3232_v44, 0.0  ;;  %v4069_v61 = vpop.eup %4068 }
 0x347   :  { %v3371_v14 = vadd.f32 %v3370_v40, %v3369_v49  ;;  %v3655_v31 = vsel %vm2469_vm7, 1.0, %v4529_v16  ;;  %v2876_v48 = vmul.f32 0.6931472, %v4067_v35  ;;  %4100 = vlog2.f32 %v6333_v17 }
 0x348   :  { %v3233_v15 = vmul.f32 %v3651_v32, %v3105_v4  ;;  %v3234_v55 = vmul.f32 %v3652_v8, %v3106_v5  ;;  %v4071_v32 = vpop.eup %4070  ;;  %v2874_v4 = vmul.f32 0.6931472, %v4069_v61 }
 0x349   :  { %v3373_v1 = vadd.f32 %v3372_v23, %v3371_v14  ;;  %v2113_v20 = vpop.xlane.xlu1 %2112  ;;  %1658 = vperm.xlu1 %3773, %v222_v63   ;;  %v2116_v39 = vpop.xlane.xlu0 %2115  ;;  %v3657_v14 = vsel %vm2471_vm10, 1.0, %v4529_v16  ;;  %v2880_v47 = vmul.f32 0.6931472, %v4071_v32 }
 0x34a   :  { %v3374_v60 = vsel %vm3350_vm9, %v3233_v15, 0.0  ;;  %v3107_v9 = vsub.f32 %v2866_v62, %v2113_v20  ;;  %v3108_v18 = vsub.f32 %v2868_v58, %v2116_v39  ;;  %1661 = vperm.xlu0 %3772, %v223_v7   ;;  %v3376_v33 = vsel %vm3350_vm9, %v3234_v55, 0.0  ;;  %v4073_v5 = vpop.eup %4072  ;;  %v227_v55 = vld [vmem:[%s8510_s1 + $0x288] sm:$0xff]  ;;  %v4398_v62 = vld [vmem:[%s8510_s1 + $0xb8] sm:$0xff] }
 0x34b   :  { %v3375_v28 = vadd.f32 %v3374_v60, %v3373_v1  ;;  %v3658_v7 = vsel %vm2472_vm8, 1.0, %v4529_v16  ;;  %vm2476_vm13 = vcmp.ge.s32.totalorder %v4398_v62, 0  ;;  %v4075_v1 = vpop.eup %4074 }
 0x34c   :  { %v3235_v13 = vmul.f32 %v3653_v46, %v3107_v9  ;;  %v3236_v24 = vmul.f32 %v3654_v22, %v3108_v18  ;;  %v2878_v22 = vmul.f32 0.6931472, %v4073_v5  ;;  %v4077_v60 = vpop.eup %4076 }
 0x34d   :  { %v3377_v52 = vadd.f32 %v3376_v33, %v3375_v28  ;;  %v2119_v54 = vpop.xlane.xlu1 %2118  ;;  %1664 = vperm.xlu1 %3773, %v224_v37   ;;  %v2122_v36 = vpop.xlane.xlu0 %2121  ;;  %v3659_v37 = vsel %vm2473_vm12, 1.0, %v4529_v16  ;;  %v3660_v28 = vsel %vm2474_vm11, 1.0, %v4529_v16  ;;  %v228_v33 = vld [vmem:[%s8510_s1 + $0x290] sm:$0xff] }
 0x34e   :  { %v3378_v19 = vsel %vm3350_vm9, %v3235_v13, 0.0  ;;  %v3109_v44 = vsub.f32 %v2870_v57, %v2119_v54  ;;  %v3110_v29 = vsub.f32 %v2872_v25, %v2122_v36  ;;  %1670 = vperm.xlu0 %3772, %v226_v59   ;;  %v3380_v34 = vsel %vm3350_vm9, %v3236_v24, 0.0  ;;  %v231_v57 = vld [vmem:[%s8510_s1 + $0x2a8] sm:$0xff]  ;;  %v4079_v61 = vpop.eup %4078 }
 0x34f   :  { %v3379_v49 = vadd.f32 %v3378_v19, %v3377_v52  ;;  %v2884_v24 = vmul.f32 0.6931472, %v4075_v1  ;;  %v2882_v54 = vmul.f32 0.6931472, %v4077_v60  ;;  %v4400_v36 = vld [vmem:[%s8510_s1 + $0xc8] sm:$0xff]  ;;  %v3661_v19 = vsel %vm2475_vm14, 1.0, %v4529_v16 }
 0x350   :  { %v3237_v8 = vmul.f32 %v3655_v31, %v3109_v44  ;;  %v3238_v40 = vmul.f32 %v3656_v51, %v3110_v29  ;;  %v4081_v31 = vpop.eup %4080  ;;  %vm2478_vm15 = vcmp.ge.s32.totalorder %v4400_v36, 0  ;;  %v3662_v29 = vsel %vm2476_vm13, 1.0, %v4529_v16  ;;  %v233_v1 = vld [vmem:[%s8510_s1 + $0x2b8] sm:$0xff] }
 0x351   :  { %v3381_v63 = vadd.f32 %v3380_v34, %v3379_v49  ;;  %v2125_v53 = vpop.xlane.xlu1 %2124  ;;  %1667 = vperm.xlu1 %3773, %v225_v2   ;;  %v2128_v58 = vpop.xlane.xlu0 %2127  ;;  %v4401_v2 = vld [vmem:[%s8510_s1 + $0xc0] sm:$0xff]  ;;  %v2888_v32 = vmul.f32 0.6931472, %v4079_v61  ;;  %v232_v34 = vld [vmem:[%s8510_s1 + $0x2b0] sm:$0xff]  ;;  %v2886_v21 = vmul.f32 0.6931472, %v4081_v31 }
 0x352   :  { %v3382_v3 = vsel %vm3350_vm9, %v3237_v8, 0.0  ;;  %v3111_v23 = vsub.f32 %v2874_v4, %v2125_v53  ;;  %v3112_v15 = vsub.f32 %v2876_v48, %v2128_v58  ;;  %1679 = vperm.xlu0 %3772, %v229_v0   ;;  %v3384_v20 = vsel %vm3350_vm9, %v3238_v40, 0.0  ;;  %v4083_v8 = vpop.eup %4082  ;;  %v4402_v53 = vld [vmem:[%s8510_s1 + $0xd8] sm:$0xff]  ;;  %v234_v61 = vld [vmem:[%s8510_s1 + $0x2c0] sm:$0xff] }
 0x353   :  { %v3383_v6 = vadd.f32 %v3382_v3, %v3381_v63  ;;  %vm2477_vm1 = vcmp.ge.s32.totalorder %v4401_v2, 0  ;;  %v4085_v63 = vpop.eup %4084  ;;  %vm2480_vm2 = vcmp.ge.s32.totalorder %v4402_v53, 0 }
 0x354   :  { %v3239_v46 = vmul.f32 %v3657_v14, %v3111_v23  ;;  %v3240_v39 = vmul.f32 %v3658_v7, %v3112_v15  ;;  %v3663_v7 = vsel %vm2477_vm1, 1.0, %v4529_v16  ;;  %v3664_v23 = vsel %vm2478_vm15, 1.0, %v4529_v16  ;;  %v4403_v15 = vld [vmem:[%s8510_s1 + $0xd0] sm:$0xff] }
 0x355   :  { %v3385_v9 = vadd.f32 %v3384_v20, %v3383_v6  ;;  %v2131_v18 = vpop.xlane.xlu1 %2130  ;;  %1673 = vperm.xlu1 %3773, %v227_v55   ;;  %v2134_v45 = vpop.xlane.xlu0 %2133  ;;  %vm2479_vm3 = vcmp.ge.s32.totalorder %v4403_v15, 0  ;;  %v2890_v60 = vmul.f32 0.6931472, %v4085_v63  ;;  %v238_v15 = vld [vmem:[%s8510_s1 + $0x2e0] sm:$0xff] }
 0x356   :  { %v3386_v25 = vsel %vm3350_vm9, %v3239_v46, 0.0  ;;  %v3113_v59 = vsub.f32 %v2878_v22, %v2131_v18  ;;  %v3114_v35 = vsub.f32 %v2880_v47, %v2134_v45  ;;  %1682 = vperm.xlu0 %3772, %v230_v38   ;;  %v3388_v50 = vsel %vm3350_vm9, %v3240_v39, 0.0  ;;  %v4087_v20 = vpop.eup %4086 }
 0x357   :  { %v3387_v13 = vadd.f32 %v3386_v25, %v3385_v9  ;;  %v2892_v38 = vmul.f32 0.6931472, %v4083_v8  ;;  %v4089_v30 = vpop.eup %4088  ;;  %v4404_v9 = vld [vmem:[%s8510_s1 + $0xe8] sm:$0xff]  ;;  %v3665_v45 = vsel %vm2479_vm3, 1.0, %v4529_v16  ;;  %v3666_v25 = vsel %vm2480_vm2, 1.0, %v4529_v16 }
 0x358   :  { %v3241_v56 = vmul.f32 %v3659_v37, %v3113_v59  ;;  %v3242_v52 = vmul.f32 %v3660_v28, %v3114_v35  ;;  %vm2482_vm4 = vcmp.ge.s32.totalorder %v4404_v9, 0  ;;  %v4405_v59 = vld [vmem:[%s8510_s1 + $0xe0] sm:$0xff] }
 0x359   :  { %v3389_v51 = vadd.f32 %v3388_v50, %v3387_v13  ;;  %v2137_v12 = vpop.xlane.xlu1 %2136  ;;  %1676 = vperm.xlu1 %3773, %v228_v33   ;;  %v2140_v44 = vpop.xlane.xlu0 %2139  ;;  %vm2481_vm5 = vcmp.ge.s32.totalorder %v4405_v59, 0  ;;  %v245_v59 = vld [vmem:[%s8510_s1 + $0x318] sm:$0xff] }
 0x35a   :  { %v3390_v41 = vsel %vm3350_vm9, %v3241_v56, 0.0  ;;  %v3115_v49 = vsub.f32 %v2882_v54, %v2137_v12  ;;  %v3116_v48 = vsub.f32 %v2884_v24, %v2140_v44  ;;  %1685 = vperm.xlu0 %3772, %v231_v57   ;;  %v3392_v40 = vsel %vm3350_vm9, %v3242_v52, 0.0 }
 0x35b   :  { %v3391_v0 = vadd.f32 %v3390_v41, %v3389_v51  ;;  %v2896_v57 = vmul.f32 0.6931472, %v4087_v20  ;;  %v2894_v54 = vmul.f32 0.6931472, %v4089_v30  ;;  %v3667_v51 = vsel %vm2481_vm5, 1.0, %v4529_v16 }
 0x35c   :  { %v3243_v4 = vmul.f32 %v3661_v19, %v3115_v49  ;;  %v3244_v5 = vmul.f32 %v3662_v29, %v3116_v48  ;;  %v3668_v19 = vsel %vm2482_vm4, 1.0, %v4529_v16  ;;  %v235_v49 = vld [vmem:[%s8510_s1 + $0x2c8] sm:$0xff] }
 0x35d   :  { %v3393_v14 = vadd.f32 %v3392_v40, %v3391_v0  ;;  %v2143_v58 = vpop.xlane.xlu1 %2142  ;;  %v2146_v3 = vpop.xlane.xlu0 %2145 }
 0x35e   :  { %v3394_v55 = vsel %vm3350_vm9, %v3243_v4, 0.0  ;;  %v3117_v62 = vsub.f32 %v2886_v21, %v2143_v58  ;;  %v3118_v6 = vsub.f32 %v2888_v32, %v2146_v3  ;;  %1688 = vperm.xlu0 %3772, %v232_v34   ;;  %v3396_v46 = vsel %vm3350_vm9, %v3244_v5, 0.0  ;;  %v236_v21 = vld [vmem:[%s8510_s1 + $0x2d0] sm:$0xff] }
 0x35f   :  { %v3395_v47 = vadd.f32 %v3394_v55, %v3393_v14 }
 0x360   :  { %v3245_v39 = vmul.f32 %v3663_v7, %v3117_v62  ;;  %v3246_v22 = vmul.f32 %v3664_v23, %v3118_v6  ;;  %v237_v7 = vld [vmem:[%s8510_s1 + $0x2d8] sm:$0xff]  ;;  %v239_v6 = vld [vmem:[%s8510_s1 + $0x2e8] sm:$0xff] }
 0x361   :  { %v3397_v18 = vadd.f32 %v3396_v46, %v3395_v47  ;;  %v2149_v37 = vpop.xlane.xlu1 %2148  ;;  %v2152_v28 = vpop.xlane.xlu0 %2151  ;;  %v241_v46 = vld [vmem:[%s8510_s1 + $0x2f8] sm:$0xff] }
 0x362   :  { %v3398_v35 = vsel %vm3350_vm9, %v3245_v39, 0.0  ;;  %v3119_v33 = vsub.f32 %v2890_v60, %v2149_v37  ;;  %v3120_v13 = vsub.f32 %v2892_v38, %v2152_v28  ;;  %1691 = vperm.xlu0 %3772, %v233_v1   ;;  %v3400_v50 = vsel %vm3350_vm9, %v3246_v22, 0.0  ;;  %v240_v38 = vld [vmem:[%s8510_s1 + $0x2f0] sm:$0xff]  ;;  %v242_v60 = vld [vmem:[%s8510_s1 + $0x300] sm:$0xff] }
 0x363   :  { %v3399_v24 = vadd.f32 %v3398_v35, %v3397_v18  ;;  %v243_v18 = vld [vmem:[%s8510_s1 + $0x308] sm:$0xff] }
 0x364   :  { %v3247_v56 = vmul.f32 %v3665_v45, %v3119_v33  ;;  %v3248_v52 = vmul.f32 %v3666_v25, %v3120_v13  ;;  %v244_v45 = vld [vmem:[%s8510_s1 + $0x310] sm:$0xff] }
 0x365   :  { %v3401_v31 = vadd.f32 %v3400_v50, %v3399_v24  ;;  %v2155_v36 = vpop.xlane.xlu1 %2154  ;;  %v2158_v12 = vpop.xlane.xlu0 %2157  ;;  %v8942_v13 = vld [vmem:[#allocation51_spill] sm:$0xff] }
 0x366   :  { %v3402_v44 = vsel %vm3350_vm9, %v3247_v56, 0.0  ;;  %v3121_v29 = vsub.f32 %v2894_v54, %v2155_v36  ;;  %v3122_v2 = vsub.f32 %v2896_v57, %v2158_v12  ;;  %1694 = vperm.xlu0 %3772, %v234_v61   ;;  %v3404_v48 = vsel %vm3350_vm9, %v3248_v52, 0.0  ;;  %v246_v57 = vld [vmem:[%s8510_s1 + $0x320] sm:$0xff]  ;;  %v8943_v52 = vld [vmem:[#allocation50_spill] sm:$0xff] }
 0x367   :  { %v3403_v41 = vadd.f32 %v3402_v44, %v3401_v31  ;;  %v247_v31 = vld [vmem:[%s8510_s1 + $0x328] sm:$0xff] }
 0x368   :  { %v3249_v0 = vmul.f32 %v3667_v51, %v3121_v29  ;;  %v3250_v32 = vmul.f32 %v3668_v19, %v3122_v2  ;;  %v8944_v12 = vld [vmem:[#allocation53_spill] sm:$0xff]  ;;  %v248_v29 = vld [vmem:[%s8510_s1 + $0x330] sm:$0xff] }
 0x369   :  { %v3405_v34 = vadd.f32 %v3404_v48, %v3403_v41  ;;  %v7259_v8 = vpop.xlane.xlu1 %2160  ;;  %v7261_v40 = vpop.xlane.xlu0 %2163 }
 0x36a   :  { %v3406_v4 = vsel %vm3350_vm9, %v3249_v0, 0.0  ;;  %1697 = vperm.xlu0 %3772, %v235_v49   ;;  %v3408_v63 = vsel %vm3350_vm9, %v3250_v32, 0.0  ;;  %v8945_v49 = vld [vmem:[#allocation52_spill] sm:$0xff] }
 0x36b   :  { %v3407_v5 = vadd.f32 %v3406_v4, %v3405_v34  ;;  %v249_v0 = vld [vmem:[%s8510_s1 + $0x338] sm:$0xff] }
 0x36c   :  { %v8946_v4 = vld [vmem:[#allocation55_spill] sm:$0xff] }
 0x36d   :  { %v7268_v53 = vadd.f32 %v3408_v63, %v3407_v5  ;;  %v7270_v14 = vpop.xlane.xlu1 %2166  ;;  %v7272_v58 = vpop.xlane.xlu0 %2169  ;;  %v250_v63 = vld [vmem:[%s8510_s1 + $0x340] sm:$0xff] }
 0x36e   :  { %1700 = vperm.xlu0 %3772, %v236_v21  }
 0x371   :  { %v7277_v3 = vpop.xlane.xlu1 %2172  ;;  %v7279_v23 = vpop.xlane.xlu0 %2175 }
 0x372   :  { %1703 = vperm.xlu0 %3772, %v237_v7  }
 0x375   :  { %v7284_v55 = vpop.xlane.xlu1 %2178  ;;  %v7286_v62 = vpop.xlane.xlu0 %2181 }
 0x376   :  { %1706 = vperm.xlu0 %3772, %v238_v15  }
 0x379   :  { %v7291_v47 = vpop.xlane.xlu1 %2184  ;;  %v7296_v1 = vpop.xlane.xlu0 %2187 }
 0x37a   :  { %1709 = vperm.xlu0 %3772, %v239_v6   ;;  %v8947_v6 = vld [vmem:[#allocation54_spill] sm:$0xff] }
 0x37d   :  { %v7298_v20 = vpop.xlane.xlu1 %2190  ;;  %v7305_v22 = vpop.xlane.xlu0 %2193 }
 0x37e   :  { %1712 = vperm.xlu0 %3772, %v240_v38  }
 0x381   :  { %v7303_v39 = vpop.xlane.xlu1 %2196 }
 0x382   :  { %1715 = vperm.xlu0 %3772, %v241_v46   ;;  %v251_v46 = vld [vmem:[%s8510_s1 + $0x348] sm:$0xff] }
 0x385   :  { %v7310_v30 = vpop.xlane.xlu1 %2199  ;;  %v7312_v9 = vpop.xlane.xlu0 %2202 }
 0x386   :  { %1718 = vperm.xlu0 %3772, %v242_v60  }
 0x389   :  { %v7317_v37 = vpop.xlane.xlu1 %2205  ;;  %v7322_v28 = vpop.xlane.xlu0 %2211 }
 0x38a   :  { %1721 = vperm.xlu0 %3772, %v243_v18  }
 0x38d   :  { %v7324_v25 = vpop.xlane.xlu1 %2208 }
 0x38e   :  { %1724 = vperm.xlu0 %3772, %v244_v45   ;;  %v8948_v45 = vld [vmem:[#allocation57_spill] sm:$0xff] }
 0x391   :  { %v1575_v35 = vpop.permute.xlu1 %1574  ;;  %v1578_v33 = vpop.permute.xlu0 %1577 }
 0x392   :  { %vm1861_vm6 = vcmp.eq.s32.totalorder %v6796_v43, %v1575_v35  ;;  %vm1862_vm7 = vcmp.eq.s32.totalorder %v6796_v43, %v1578_v33  ;;  %1727 = vperm.xlu0 %3772, %v245_v59   ;;  %v252_v33 = vld [vmem:[%s8510_s1 + $0x350] sm:$0xff] }
 0x393   :  { %v1989_v24 = vsel %vm1861_vm6, %v8942_v13, 0.0  ;;  %v1990_v54 = vsel %vm1862_vm7, %v8943_v52, 0.0 }
 0x394   :  { %v2213_v61 = vsel %vm274_vm0, %v1989_v24, 0.0  ;;  %v2216_v36 = vsel %vm274_vm0, %v1990_v54, 0.0  ;;  %v8950_v54 = vld [vmem:[#allocation59_spill] sm:$0xff] }
 0x395   :  { %2214 = vadd.xlane.f32.xlu1 %v2213_v61  ;;  %v1581_v50 = vpop.permute.xlu1 %1580  ;;  %v1584_v56 = vpop.permute.xlu0 %1583 }
 0x396   :  { %vm1863_vm8 = vcmp.eq.s32.totalorder %v6796_v43, %v1581_v50  ;;  %1730 = vperm.xlu0 %3772, %v246_v57   ;;  %vm1864_vm10 = vcmp.eq.s32.totalorder %v6796_v43, %v1584_v56  ;;  %v8949_v57 = vld [vmem:[#allocation56_spill] sm:$0xff] }
 0x397   :  { %v1991_v19 = vsel %vm1863_vm8, %v8944_v12, 0.0  ;;  %v1992_v48 = vsel %vm1864_vm10, %v8945_v49, 0.0  ;;  %v253_v50 = vld [vmem:[%s8510_s1 + $0x358] sm:$0xff] }
 0x398   :  { %v2219_v2 = vsel %vm274_vm0, %v1991_v19, 0.0  ;;  %v2222_v32 = vsel %vm274_vm0, %v1992_v48, 0.0  ;;  %v8952_v48 = vld [vmem:[#allocation61_spill] sm:$0xff] }
 0x399   :  { %2217 = vadd.xlane.f32.xlu1 %v2216_v36  ;;  %v1590_v51 = vpop.permute.xlu0 %1589  ;;  %v1587_v44 = vpop.permute.xlu1 %1586 }
 0x39a   :  { %1733 = vperm.xlu0 %3772, %v247_v31   ;;  %vm1865_vm11 = vcmp.eq.s32.totalorder %v6796_v43, %v1587_v44  ;;  %vm1866_vm12 = vcmp.eq.s32.totalorder %v6796_v43, %v1590_v51  ;;  %v254_v51 = vld [vmem:[%s8510_s1 + $0x360] sm:$0xff]  ;;  %v8951_v44 = vld [vmem:[#allocation58_spill] sm:$0xff] }
 0x39b   :  { %v1993_v5 = vsel %vm1865_vm11, %v8946_v4, 0.0  ;;  %v1994_v38 = vsel %vm1866_vm12, %v8947_v6, 0.0  ;;  %vm2483_vm12 = vcmp.ge.s32.totalorder %v4406_v26, 0 }
 0x39c   :  { %v2225_v7 = vsel %vm274_vm0, %v1993_v5, 0.0  ;;  %v2228_v60 = vsel %vm274_vm0, %v1994_v38, 0.0  ;;  %v8954_v38 = vld [vmem:[#allocation63_spill] sm:$0xff] }
 0x39d   :  { %2220 = vadd.xlane.f32.xlu1 %v2219_v2  ;;  %v1596_v41 = vpop.permute.xlu0 %1595  ;;  %v1593_v21 = vpop.permute.xlu1 %1592  ;;  %v255_v2 = vld [vmem:[%s8510_s1 + $0x368] sm:$0xff] }
 0x39e   :  { %1736 = vperm.xlu0 %3772, %v248_v29   ;;  %vm1867_vm13 = vcmp.eq.s32.totalorder %v6796_v43, %v1593_v21  ;;  %vm1868_vm14 = vcmp.eq.s32.totalorder %v6796_v43, %v1596_v41  ;;  %v8953_v21 = vld [vmem:[#allocation60_spill] sm:$0xff] }
 0x39f   :  { %v1995_v59 = vsel %vm1867_vm13, %v8948_v45, 0.0  ;;  %v1996_v61 = vsel %vm1868_vm14, %v8949_v57, 0.0  ;;  %v258_v45 = vld [vmem:[%s8510_s1 + $0x380] sm:$0xff] }
 0x3a0   :  { %v2231_v13 = vsel %vm274_vm0, %v1995_v59, 0.0  ;;  %v2234_v56 = vsel %vm274_vm0, %v1996_v61, 0.0 }
 0x3a1   :  { %2223 = vadd.xlane.f32.xlu1 %v2222_v32  ;;  %v1602_v34 = vpop.permute.xlu0 %1601  ;;  %v1599_v35 = vpop.permute.xlu1 %1598 }
 0x3a2   :  { %1739 = vperm.xlu0 %3772, %v249_v0   ;;  %vm1869_vm15 = vcmp.eq.s32.totalorder %v6796_v43, %v1599_v35  ;;  %vm1870_vm1 = vcmp.eq.s32.totalorder %v6796_v43, %v1602_v34  ;;  %v256_v34 = vld [vmem:[%s8510_s1 + $0x370] sm:$0xff] }
 0x3a3   :  { %v1997_v31 = vsel %vm1869_vm15, %v8950_v54, 0.0  ;;  %v1998_v29 = vsel %vm1870_vm1, %v8951_v44, 0.0 }
 0x3a4   :  { %v2237_v12 = vsel %vm274_vm0, %v1997_v31, 0.0  ;;  %v2240_v41 = vsel %vm274_vm0, %v1998_v29, 0.0  ;;  %v260_v31 = vld [vmem:[%s8510_s1 + $0x390] sm:$0xff] }
 0x3a5   :  { %2226 = vadd.xlane.f32.xlu1 %v2225_v7  ;;  %v1608_v15 = vpop.permute.xlu0 %1607  ;;  %v1605_v36 = vpop.permute.xlu1 %1604  ;;  %v257_v7 = vld [vmem:[%s8510_s1 + $0x378] sm:$0xff] }
 0x3a6   :  { %1742 = vperm.xlu0 %3772, %v250_v63   ;;  %vm1871_vm2 = vcmp.eq.s32.totalorder %v6796_v43, %v1605_v36  ;;  %vm1872_vm3 = vcmp.eq.s32.totalorder %v6796_v43, %v1608_v15 }
 0x3a7   :  { %v1999_v0 = vsel %vm1871_vm2, %v8952_v48, 0.0  ;;  %v2000_v63 = vsel %vm1872_vm3, %v8953_v21, 0.0 }
 0x3a8   :  { %v2243_v4 = vsel %vm274_vm0, %v1999_v0, 0.0  ;;  %v2246_v15 = vsel %vm274_vm0, %v2000_v63, 0.0  ;;  %v262_v0 = vld [vmem:[%s8510_s1 + $0x3a0] sm:$0xff]  ;;  %v4091_v63 = vpop.eup %4090 }
 0x3a9   :  { %2229 = vadd.xlane.f32.xlu1 %v2228_v60  ;;  %v1614_v18 = vpop.permute.xlu0 %1613  ;;  %v1611_v32 = vpop.permute.xlu1 %1610 }
 0x3aa   :  { %1745 = vperm.xlu0 %3772, %v251_v46   ;;  %vm1873_vm4 = vcmp.eq.s32.totalorder %v6796_v43, %v1611_v32  ;;  %vm1874_vm5 = vcmp.eq.s32.totalorder %v6796_v43, %v1614_v18  ;;  %v259_v18 = vld [vmem:[%s8510_s1 + $0x388] sm:$0xff] }
 0x3ab   :  { %v2001_v46 = vsel %vm1873_vm4, %v8954_v38, 0.0  ;;  %v8960_v38 = vld [vmem:[#allocation69_spill] sm:$0xff] }
 0x3ac   :  { %v2249_v59 = vsel %vm274_vm0, %v2001_v46, 0.0 }
 0x3ad   :  { %2232 = vadd.xlane.f32.xlu1 %v2231_v13  ;;  %v7372_v24 = vpop.permute.xlu0 %1619  ;;  %v1617_v60 = vpop.permute.xlu1 %1616 }
 0x3ae   :  { %1748 = vperm.xlu0 %3772, %v252_v33   ;;  %v8955_v33 = vld [vmem:[#allocation62_spill] sm:$0xff]  ;;  %vm1875_vm6 = vcmp.eq.s32.totalorder %v6796_v43, %v1617_v60  ;;  %vm1876_vm7 = vcmp.eq.s32.totalorder %v6796_v43, %v7372_v24  ;;  %v261_v24 = vld [vmem:[%s8510_s1 + $0x398] sm:$0xff] }
 0x3af   :  { %v2002_v13 = vsel %vm1874_vm5, %v8955_v33, 0.0  ;;  %v4093_v33 = vpop.eup %4092 }
 0x3b0   :  { %v2252_v57 = vsel %vm274_vm0, %v2002_v13, 0.0  ;;  %v3669_v13 = vsel %vm2483_vm12, 1.0, %v4529_v16  ;;  %v2900_v10 = vmul.f32 0.6931472, %v4093_v33 }
 0x3b1   :  { %2235 = vadd.xlane.f32.xlu1 %v2234_v56  ;;  %v7380_v52 = vpop.permute.xlu0 %1625  ;;  %v1623_v54 = vpop.permute.xlu1 %1622 }
 0x3b2   :  { %1751 = vperm.xlu0 %3772, %v253_v50   ;;  %v8956_v50 = vld [vmem:[#allocation65_spill] sm:$0xff]  ;;  %vm1877_vm8 = vcmp.eq.s32.totalorder %v6796_v43, %v1623_v54  ;;  %vm1878_vm10 = vcmp.eq.s32.totalorder %v6796_v43, %v7380_v52  ;;  %v265_v54 = vld [vmem:[%s8510_s1 + $0x3b8] sm:$0xff] }
 0x3b3   :  { %v2003_v56 = vsel %vm1875_vm6, %v8956_v50, 0.0  ;;  %v4095_v50 = vpop.eup %4094 }
 0x3b4   :  { %v2255_v36 = vsel %vm274_vm0, %v2003_v56, 0.0 }
 0x3b5   :  { %2238 = vadd.xlane.f32.xlu1 %v2237_v12  ;;  %v7388_v19 = vpop.permute.xlu0 %1631  ;;  %v8957_v12 = vld [vmem:[#allocation64_spill] sm:$0xff]  ;;  %v1629_v48 = vpop.permute.xlu1 %1628 }
 0x3b6   :  { %1754 = vperm.xlu0 %3772, %v254_v51   ;;  %v2004_v44 = vsel %vm1876_vm7, %v8957_v12, 0.0  ;;  %vm1879_vm11 = vcmp.eq.s32.totalorder %v6796_v43, %v1629_v48  ;;  %vm1880_vm13 = vcmp.eq.s32.totalorder %v6796_v43, %v7388_v19  ;;  %v3124_v12 = vsub.f32 %v2900_v10, %v7261_v40  ;;  %v266_v40 = vld [vmem:[%s8510_s1 + $0x3c0] sm:$0xff] }
 0x3b7   :  { %v2258_v29 = vsel %vm274_vm0, %v2004_v44, 0.0  ;;  %v2007_v46 = vsel %vm1879_vm11, %v8960_v38, 0.0  ;;  %v2902_v44 = vmul.f32 0.6931472, %v4095_v50  ;;  %v4409_v38 = vld [vmem:[%s8510_s1 + $0x108] sm:$0xff] }
 0x3b8   :  { %vm2486_vm4 = vcmp.ge.s32.totalorder %v4409_v38, 0  ;;  %v8969_v38 = vld [vmem:[#allocation75_spill] sm:$0xff] }
 0x3b9   :  { %2241 = vadd.xlane.f32.xlu1 %v2240_v41  ;;  %v7396_v49 = vpop.permute.xlu0 %1637  ;;  %v2005_v41 = vsel %vm1877_vm8, %v8958_v42, 0.0  ;;  %v3672_v10 = vsel %vm2486_vm4, 1.0, %v4529_v16 }
 0x3ba   :  { %1757 = vperm.xlu0 %3772, %v255_v2   ;;  %v2261_v32 = vsel %vm274_vm0, %v2005_v41, 0.0  ;;  %vm1882_vm2 = vcmp.eq.s32.totalorder %v6796_v43, %v7396_v49 }
 0x3bd   :  { %2244 = vadd.xlane.f32.xlu1 %v2243_v4  ;;  %v7404_v5 = vpop.permute.xlu0 %1643  ;;  %v8959_v4 = vld [vmem:[#allocation66_spill] sm:$0xff] }
 0x3be   :  { %1760 = vperm.xlu0 %3772, %v256_v34   ;;  %v2006_v21 = vsel %vm1878_vm10, %v8959_v4, 0.0  ;;  %v4097_v4 = vpop.eup %4096  ;;  %vm1884_vm6 = vcmp.eq.s32.totalorder %v6796_v43, %v7404_v5 }
 0x3bf   :  { %v2264_v52 = vsel %vm274_vm0, %v2006_v21, 0.0  ;;  %v8963_v21 = vld [vmem:[#allocation122_spill] sm:$0xff] }
 0x3c0   :  { %4102 = vlog2.f32 %v8963_v21 }
 0x3c1   :  { %2247 = vadd.xlane.f32.xlu1 %v2246_v15  ;;  %v7412_v6 = vpop.permute.xlu0 %1649 }
 0x3c2   :  { %1763 = vperm.xlu0 %3772, %v257_v7   ;;  %v2898_v7 = vmul.f32 0.6931472, %v4091_v63  ;;  %vm1886_vm11 = vcmp.eq.s32.totalorder %v6796_v43, %v7412_v6 }
 0x3c4   :  { %v3123_v60 = vsub.f32 %v2898_v7, %v7259_v8  ;;  %v4407_v8 = vld [vmem:[%s8510_s1 + $0xf8] sm:$0xff] }
 0x3c5   :  { %2250 = vadd.xlane.f32.xlu1 %v2249_v59  ;;  %v7420_v35 = vpop.permute.xlu0 %1655  ;;  %v264_v59 = vld [vmem:[%s8510_s1 + $0x3b0] sm:$0xff]  ;;  %vm2484_vm15 = vcmp.ge.s32.totalorder %v4407_v8, 0  ;;  %v8966_v8 = vld [vmem:[#allocation121_spill] sm:$0xff] }
 0x3c6   :  { %1766 = vperm.xlu0 %3772, %v258_v45   ;;  %v1635_v45 = vpop.permute.xlu1 %1634  ;;  %v3251_v56 = vmul.f32 %v3669_v13, %v3123_v60  ;;  %v3670_v41 = vsel %vm2484_vm15, 1.0, %v4529_v16  ;;  %v2904_v60 = vmul.f32 0.6931472, %v4097_v4  ;;  %4104 = vlog2.f32 %v8966_v8 }
 0x3c7   :  { %vm1881_vm14 = vcmp.eq.s32.totalorder %v6796_v43, %v1635_v45  ;;  %v267_v45 = vld [vmem:[%s8510_s1 + $0x3c8] sm:$0xff]  ;;  %vm1888_vm15 = vcmp.eq.s32.totalorder %v6796_v43, %v7420_v35 }
 0x3c8   :  { %v3410_v48 = vsel %vm3350_vm9, %v3251_v56, 0.0  ;;  %v3126_v13 = vsub.f32 %v2904_v60, %v7272_v58  ;;  %v8970_v60 = vld [vmem:[#allocation125_spill] sm:$0xff] }
 0x3c9   :  { %2253 = vadd.xlane.f32.xlu1 %v2252_v57  ;;  %v7428_v61 = vpop.permute.xlu0 %1661  ;;  %v8961_v57 = vld [vmem:[#allocation68_spill] sm:$0xff]  ;;  %v3411_v7 = vadd.f32 %v3410_v48, %v7268_v53 }
 0x3ca   :  { %1769 = vperm.xlu0 %3772, %v259_v18   ;;  %v2267_v18 = vsel %vm274_vm0, %v2007_v46, 0.0  ;;  %v2008_v19 = vsel %vm1880_vm13, %v8961_v57, 0.0  ;;  %v8968_v48 = vld [vmem:[#allocation72_spill] sm:$0xff]  ;;  %vm1890_vm4 = vcmp.eq.s32.totalorder %v6796_v43, %v7428_v61 }
 0x3cd   :  { %2256 = vadd.xlane.f32.xlu1 %v2255_v36  ;;  %v7438_v51 = vpop.permute.xlu0 %1670  ;;  %v4408_v36 = vld [vmem:[%s8510_s1 + $0x100] sm:$0xff] }
 0x3ce   :  { %1772 = vperm.xlu0 %3772, %v260_v31   ;;  %v2270_v31 = vsel %vm274_vm0, %v2008_v19, 0.0  ;;  %vm2485_vm1 = vcmp.ge.s32.totalorder %v4408_v36, 0  ;;  %v8965_v19 = vld [vmem:[#allocation73_spill] sm:$0xff]  ;;  %v268_v36 = vld [vmem:[%s8510_s1 + $0x3d0] sm:$0xff] }
 0x3cf   :  { %v3671_v17 = vsel %vm2485_vm1, 1.0, %v4529_v16 }
 0x3d1   :  { %2259 = vadd.xlane.f32.xlu1 %v2258_v29  ;;  %v7446_v2 = vpop.permute.xlu0 %1679  ;;  %v8962_v29 = vld [vmem:[#allocation71_spill] sm:$0xff] }
 0x3d2   :  { %1775 = vperm.xlu0 %3772, %v261_v24   ;;  %v2009_v42 = vsel %vm1881_vm14, %v8962_v29, 0.0 }
 0x3d3   :  { %v2273_v63 = vsel %vm274_vm0, %v2009_v42, 0.0 }
 0x3d5   :  { %2262 = vadd.xlane.f32.xlu1 %v2261_v32  ;;  %v7457_v34 = vpop.permute.xlu0 %1682  ;;  %v1641_v32 = vpop.permute.xlu1 %1640 }
 0x3d6   :  { %1778 = vperm.xlu0 %3772, %v262_v0   ;;  %v3125_v0 = vsub.f32 %v2902_v44, %v7270_v14  ;;  %v4099_v14 = vpop.eup %4098  ;;  %vm1883_vm3 = vcmp.eq.s32.totalorder %v6796_v43, %v1641_v32  ;;  %v8967_v44 = vld [vmem:[#allocation126_spill] sm:$0xff] }
 0x3d7   :  { %v2011_v50 = vsel %vm1883_vm3, %v8965_v19, 0.0  ;;  %4106 = vlog2.f32 %v8967_v44  ;;  %v8971_v19 = vld [vmem:[#allocation130_spill] sm:$0xff] }
 0x3d8   :  { %v3253_v46 = vmul.f32 %v3671_v17, %v3125_v0  ;;  %v2279_v42 = vsel %vm274_vm0, %v2011_v50, 0.0  ;;  %v2012_v0 = vsel %vm1884_vm6, %v8968_v48, 0.0  ;;  %v269_v17 = vld [vmem:[%s8510_s1 + $0x3d8] sm:$0xff]  ;;  %4108 = vlog2.f32 %v8970_v60  ;;  %v271_v44 = vld [vmem:[%s8510_s1 + $0x3e8] sm:$0xff] }
 0x3d9   :  { %2265 = vadd.xlane.f32.xlu1 %v2264_v52  ;;  %v7468_v15 = vpop.permute.xlu0 %1685  ;;  %v8964_v52 = vld [vmem:[#allocation70_spill] sm:$0xff]  ;;  %v1647_v58 = vpop.permute.xlu1 %1646  ;;  %4110 = vlog2.f32 %v8971_v19  ;;  %v273_v19 = vld [vmem:[%s8510_s1 + $0x3f8] sm:$0xff] }
 0x3da   :  { %1781 = vperm.xlu0 %3772, %v263_v27   ;;  %v3252_v27 = vmul.f32 %v3670_v41, %v3124_v12  ;;  %v2010_v26 = vsel %vm1882_vm2, %v8964_v52, 0.0  ;;  %v4101_v12 = vpop.eup %4100  ;;  %v3254_v41 = vmul.f32 %v3672_v10, %v3126_v13  ;;  %vm1885_vm7 = vcmp.eq.s32.totalorder %v6796_v43, %v1647_v58  ;;  %v270_v13 = vld [vmem:[%s8510_s1 + $0x3e0] sm:$0xff]  ;;  %v8972_v10 = vld [vmem:[#allocation74_spill] sm:$0xff] }
 0x3db   :  { %v2276_v53 = vsel %vm274_vm0, %v2010_v26, 0.0  ;;  %v2908_v21 = vmul.f32 0.6931472, %v4101_v12  ;;  %v4413_v58 = vld [vmem:[%s8510_s1 + $0x128] sm:$0xff] }
 0x3dc   :  { %v3412_v33 = vsel %vm3350_vm9, %v3252_v27, 0.0  ;;  %v2282_v27 = vsel %vm274_vm0, %v2012_v0, 0.0  ;;  %v3416_v52 = vsel %vm3350_vm9, %v3254_v41, 0.0  ;;  %vm2490_vm13 = vcmp.ge.s32.totalorder %v4413_v58, 0  ;;  %v8978_v58 = vld [vmem:[#allocation79_spill] sm:$0xff] }
 0x3dd   :  { %2268 = vadd.xlane.f32.xlu1 %v2267_v18  ;;  %v7481_v11 = vpop.permute.xlu0 %1688  ;;  %v2906_v18 = vmul.f32 0.6931472, %v4099_v14  ;;  %v3413_v56 = vadd.f32 %v3412_v33, %v3411_v7  ;;  %v3128_v26 = vsub.f32 %v2908_v21, %v7279_v23  ;;  %v1653_v23 = vpop.permute.xlu1 %1652 }
 0x3de   :  { %1784 = vperm.xlu0 %3772, %v264_v59   ;;  %v4410_v59 = vld [vmem:[%s8510_s1 + $0x110] sm:$0xff]  ;;  %vm1887_vm12 = vcmp.eq.s32.totalorder %v6796_v43, %v1653_v23  ;;  %v4415_v23 = vld [vmem:[%s8510_s1 + $0x138] sm:$0xff] }
 0x3df   :  { %vm2487_vm5 = vcmp.ge.s32.totalorder %v4410_v59, 0  ;;  %vm2492_vm2 = vcmp.ge.s32.totalorder %v4415_v23, 0 }
 0x3e0   :  { %v3673_v29 = vsel %vm2487_vm5, 1.0, %v4529_v16 }
 0x3e1   :  { %2271 = vadd.xlane.f32.xlu1 %v2270_v31  ;;  %v7496_v24 = vpop.permute.xlu0 %1691  ;;  %v3127_v31 = vsub.f32 %v2906_v18, %v7277_v3  ;;  %v4103_v3 = vpop.eup %4102 }
 0x3e2   :  { %1787 = vperm.xlu0 %3772, %v265_v54   ;;  %v3414_v54 = vsel %vm3350_vm9, %v3253_v46, 0.0  ;;  %v2910_v14 = vmul.f32 0.6931472, %v4103_v3  ;;  %v2013_v46 = vsel %vm1885_vm7, %v8969_v38, 0.0  ;;  %v4105_v18 = vpop.eup %4104 }
 0x3e3   :  { %v3415_v32 = vadd.f32 %v3414_v54, %v3413_v56  ;;  %v3255_v4 = vmul.f32 %v3673_v29, %v3127_v31  ;;  %v2285_v8 = vsel %vm274_vm0, %v2013_v46, 0.0  ;;  %v2014_v54 = vsel %vm1886_vm11, %v8972_v10, 0.0  ;;  %v4414_v29 = vld [vmem:[%s8510_s1 + $0x130] sm:$0xff] }
 0x3e4   :  { %v3129_v33 = vsub.f32 %v2910_v14, %v7284_v55  ;;  %v4107_v55 = vpop.eup %4106  ;;  %v2912_v12 = vmul.f32 0.6931472, %v4105_v18  ;;  %vm2491_vm14 = vcmp.ge.s32.totalorder %v4414_v29, 0  ;;  %v8975_v14 = vld [vmem:[#allocation134_spill] sm:$0xff]  ;;  %vm1893_vm11 = vcmp.eq.s32.totalorder %v6796_v43, %v7438_v51 }
 0x3e5   :  { %2274 = vadd.xlane.f32.xlu1 %v2273_v63  ;;  %v7512_v49 = vpop.permute.xlu0 %1694  ;;  %v4412_v63 = vld [vmem:[%s8510_s1 + $0x120] sm:$0xff]  ;;  %v2914_v0 = vmul.f32 0.6931472, %v4107_v55  ;;  %v3677_v38 = vsel %vm2491_vm14, 1.0, %v4529_v16 }
 0x3e6   :  { %1790 = vperm.xlu0 %3772, %v266_v40   ;;  %v4411_v40 = vld [vmem:[%s8510_s1 + $0x118] sm:$0xff]  ;;  %vm2489_vm10 = vcmp.ge.s32.totalorder %v4412_v63, 0  ;;  %v3130_v48 = vsub.f32 %v2912_v12, %v7286_v62  ;;  %v1659_v62 = vpop.permute.xlu1 %1658 }
 0x3e7   :  { %vm2488_vm8 = vcmp.ge.s32.totalorder %v4411_v40, 0  ;;  %v3675_v50 = vsel %vm2489_vm10, 1.0, %v4529_v16  ;;  %vm1889_vm1 = vcmp.eq.s32.totalorder %v6796_v43, %v1659_v62 }
 0x3e8   :  { %v3674_v59 = vsel %vm2488_vm8, 1.0, %v4529_v16 }
 0x3e9   :  { %2277 = vadd.xlane.f32.xlu1 %v2276_v53  ;;  %v7529_v57 = vpop.permute.xlu0 %1697  ;;  %v3418_v53 = vsel %vm3350_vm9, %v3255_v4, 0.0  ;;  %v3256_v56 = vmul.f32 %v3674_v59, %v3128_v26  ;;  %v8974_v4 = vld [vmem:[#allocation129_spill] sm:$0xff]  ;;  %v4109_v26 = vpop.eup %4108 }
 0x3ea   :  { %1793 = vperm.xlu0 %3772, %v267_v45   ;;  %v3417_v45 = vadd.f32 %v3416_v52, %v3415_v32  ;;  %v8973_v32 = vld [vmem:[#allocation77_spill] sm:$0xff]  ;;  %4112 = vlog2.f32 %v8974_v4  ;;  %v272_v52 = vld [vmem:[%s8510_s1 + $0x3f0] sm:$0xff]  ;;  %v2916_v18 = vmul.f32 0.6931472, %v4109_v26  ;;  %v1665_v55 = vpop.permute.xlu1 %1664 }
 0x3eb   :  { %v3420_v41 = vsel %vm3350_vm9, %v3256_v56, 0.0  ;;  %v2015_v40 = vsel %vm1887_vm12, %v8973_v32, 0.0  ;;  %4114 = vlog2.f32 %v8975_v14  ;;  %v8980_v4 = vld [vmem:[#allocation78_spill] sm:$0xff]  ;;  %vm1891_vm5 = vcmp.eq.s32.totalorder %v6796_v43, %v1665_v55  ;;  %v8982_v14 = vld [vmem:[#allocation141_spill] sm:$0xff] }
 0x3ec   :  { %v3419_v31 = vadd.f32 %v3418_v53, %v3417_v45  ;;  %v2291_v46 = vsel %vm274_vm0, %v2015_v40, 0.0  ;;  %v8976_v45 = vld [vmem:[#allocation76_spill] sm:$0xff]  ;;  %v8977_v53 = vld [vmem:[#allocation133_spill] sm:$0xff]  ;;  %v3132_v10 = vsub.f32 %v2916_v18, %v7296_v1 }
 0x3ed   :  { %2280 = vadd.xlane.f32.xlu1 %v2279_v42  ;;  %v7545_v5 = vpop.permute.xlu0 %1700  ;;  %v2288_v42 = vsel %vm274_vm0, %v2014_v54, 0.0  ;;  %v2016_v59 = vsel %vm1888_vm15, %v8976_v45, 0.0  ;;  %4116 = vlog2.f32 %v8977_v53  ;;  %v8983_v53 = vld [vmem:[#allocation81_spill] sm:$0xff]  ;;  %v4419_v18 = vld [vmem:[%s8510_s1 + $0x158] sm:$0xff] }
 0x3ee   :  { %1796 = vperm.xlu0 %3772, %v268_v36   ;;  %v3257_v36 = vmul.f32 %v3675_v50, %v3129_v33  ;;  %v3421_v21 = vadd.f32 %v3420_v41, %v3419_v31  ;;  %v4416_v50 = vld [vmem:[%s8510_s1 + $0x140] sm:$0xff]  ;;  %v8979_v41 = vld [vmem:[#allocation138_spill] sm:$0xff]  ;;  %vm2496_vm10 = vcmp.ge.s32.totalorder %v4419_v18, 0 }
 0x3ef   :  { %vm2493_vm3 = vcmp.ge.s32.totalorder %v4416_v50, 0  ;;  %4118 = vlog2.f32 %v8979_v41 }
 0x3f0   :  { %v3422_v63 = vsel %vm3350_vm9, %v3257_v36, 0.0  ;;  %v2017_v36 = vsel %vm1889_vm1, %v8978_v58, 0.0 }
 0x3f1   :  { %2283 = vadd.xlane.f32.xlu1 %v2282_v27  ;;  %v7561_v7 = vpop.permute.xlu0 %1703  ;;  %v3131_v27 = vsub.f32 %v2914_v0, %v7291_v47  ;;  %v4111_v47 = vpop.eup %4110  ;;  %v3423_v33 = vadd.f32 %v3422_v63, %v3421_v21  ;;  %v2297_v0 = vsel %vm274_vm0, %v2017_v36, 0.0  ;;  %v2018_v21 = vsel %vm1890_vm4, %v8980_v4, 0.0  ;;  %v8984_v36 = vld [vmem:[#allocation80_spill] sm:$0xff] }
 0x3f2   :  { %1799 = vperm.xlu0 %3772, %v269_v17   ;;  %v3676_v17 = vsel %vm2490_vm13, 1.0, %v4529_v16  ;;  %v2918_v54 = vmul.f32 0.6931472, %v4111_v47 }
 0x3f3   :  { %v3258_v60 = vmul.f32 %v3676_v17, %v3130_v48  ;;  %v3679_v48 = vsel %vm2493_vm3, 1.0, %v4529_v16  ;;  %v8981_v17 = vld [vmem:[#allocation137_spill] sm:$0xff] }
 0x3f4   :  { %v3133_v1 = vsub.f32 %v2918_v54, %v7298_v20  ;;  %4120 = vlog2.f32 %v8981_v17  ;;  %v4417_v20 = vld [vmem:[%s8510_s1 + $0x148] sm:$0xff] }
 0x3f5   :  { %2286 = vadd.xlane.f32.xlu1 %v2285_v8  ;;  %v7577_v6 = vpop.permute.xlu0 %1706  ;;  %v2294_v8 = vsel %vm274_vm0, %v2016_v59, 0.0  ;;  %v3424_v56 = vsel %vm3350_vm9, %v3258_v60, 0.0  ;;  %vm2494_vm6 = vcmp.ge.s32.totalorder %v4417_v20, 0  ;;  %4122 = vlog2.f32 %v8982_v14  ;;  %v4421_v20 = vld [vmem:[%s8510_s1 + $0x168] sm:$0xff]  ;;  %v8987_v14 = vld [vmem:[#allocation143_spill] sm:$0xff] }
 0x3f6   :  { %1802 = vperm.xlu0 %3772, %v270_v13   ;;  %v3259_v13 = vmul.f32 %v3677_v38, %v3131_v27  ;;  %v3425_v12 = vadd.f32 %v3424_v56, %v3423_v33  ;;  %v3261_v27 = vmul.f32 %v3679_v48, %v3133_v1  ;;  %v4418_v38 = vld [vmem:[%s8510_s1 + $0x150] sm:$0xff]  ;;  %v2019_v33 = vsel %vm1891_vm5, %v8983_v53, 0.0 }
 0x3f7   :  { %vm2495_vm7 = vcmp.ge.s32.totalorder %v4418_v38, 0  ;;  %v2303_v56 = vsel %vm274_vm0, %v2019_v33, 0.0  ;;  %vm2498_vm14 = vcmp.ge.s32.totalorder %v4421_v20, 0  ;;  %v4422_v38 = vld [vmem:[%s8510_s1 + $0x170] sm:$0xff]  ;;  %vm1897_vm5 = vcmp.eq.s32.totalorder %v6796_v43, %v7457_v34 }
 0x3f8   :  { %v3426_v29 = vsel %vm3350_vm9, %v3259_v13, 0.0  ;;  %v3680_v13 = vsel %vm2494_vm6, 1.0, %v4529_v16  ;;  %vm2499_vm15 = vcmp.ge.s32.totalorder %v4422_v38, 0  ;;  %v8988_v33 = vld [vmem:[#allocation82_spill] sm:$0xff]  ;;  %v3684_v18 = vsel %vm2498_vm14, 1.0, %v4529_v16  ;;  %v8995_v34 = vld [vmem:[#allocation87_spill] sm:$0xff] }
 0x3f9   :  { %2289 = vadd.xlane.f32.xlu1 %v2288_v42  ;;  %v7593_v3 = vpop.permute.xlu0 %1709  ;;  %v4113_v42 = vpop.eup %4112  ;;  %v3427_v63 = vadd.f32 %v3426_v29, %v3425_v12  ;;  %v8985_v29 = vld [vmem:[#allocation140_spill] sm:$0xff]  ;;  %v2025_v38 = vsel %vm1897_vm5, %v8995_v34, 0.0 }
 0x3fa   :  { %1805 = vperm.xlu0 %3772, %v271_v44   ;;  %v3678_v44 = vsel %vm2492_vm2, 1.0, %v4529_v16  ;;  %v4115_v61 = vpop.eup %4114  ;;  %v2920_v62 = vmul.f32 0.6931472, %v4113_v42  ;;  %4124 = vlog2.f32 %v8985_v29  ;;  %vm1896_vm2 = vcmp.eq.s32.totalorder %v6796_v43, %v7446_v2 }
 0x3fb   :  { %v3260_v32 = vmul.f32 %v3678_v44, %v3132_v10  ;;  %v4117_v26 = vpop.eup %4116  ;;  %v2922_v59 = vmul.f32 0.6931472, %v4115_v61  ;;  %v8986_v61 = vld [vmem:[#allocation83_spill] sm:$0xff]  ;;  %4126 = vlog2.f32 %v8987_v14 }
 0x3fc   :  { %v3134_v45 = vsub.f32 %v2920_v62, %v7305_v22  ;;  %v3430_v22 = vsel %vm3350_vm9, %v3261_v27, 0.0  ;;  %v2924_v50 = vmul.f32 0.6931472, %v4117_v26  ;;  %v4119_v44 = vpop.eup %4118  ;;  %v2021_v17 = vsel %vm1893_vm11, %v8986_v61, 0.0 }
 0x3fd   :  { %2292 = vadd.xlane.f32.xlu1 %v2291_v46  ;;  %v7609_v35 = vpop.permute.xlu0 %1712  ;;  %v2300_v46 = vsel %vm274_vm0, %v2018_v21, 0.0  ;;  %v3428_v60 = vsel %vm3350_vm9, %v3260_v32, 0.0  ;;  %v2926_v4 = vmul.f32 0.6931472, %v4119_v44  ;;  %vm1899_vm11 = vcmp.eq.s32.totalorder %v6796_v43, %v7481_v11 }
 0x3fe   :  { %1808 = vperm.xlu0 %3772, %v272_v52   ;;  %v1668_v52 = vpop.permute.xlu1 %1667  ;;  %v3429_v23 = vadd.f32 %v3428_v60, %v3427_v63  ;;  %v3262_v10 = vmul.f32 %v3680_v13, %v3134_v45  ;;  %v3136_v54 = vsub.f32 %v2924_v50, %v7310_v30  ;;  %v4121_v41 = vpop.eup %4120  ;;  %v4420_v30 = vld [vmem:[%s8510_s1 + $0x160] sm:$0xff]  ;;  %v2309_v60 = vsel %vm274_vm0, %v2021_v17, 0.0 }
 0x3ff   :  { %vm1892_vm8 = vcmp.eq.s32.totalorder %v6796_v43, %v1668_v52  ;;  %vm2497_vm12 = vcmp.ge.s32.totalorder %v4420_v30, 0  ;;  %v4123_v63 = vpop.eup %4122  ;;  %v3137_v62 = vsub.f32 %v2926_v4, %v7312_v9  ;;  %v2928_v52 = vmul.f32 0.6931472, %v4121_v41 }
 0x400   :  { %v2020_v12 = vsel %vm1892_vm8, %v8984_v36, 0.0  ;;  %v3431_v1 = vadd.f32 %v3430_v22, %v3429_v23  ;;  %v2930_v53 = vmul.f32 0.6931472, %v4123_v63  ;;  %v8990_v36 = vld [vmem:[#allocation85_spill] sm:$0xff]  ;;  %vm1907_vm3 = vcmp.eq.s32.totalorder %v6796_v43, %v7609_v35 }
 0x401   :  { %2295 = vadd.xlane.f32.xlu1 %v2294_v8  ;;  %v7626_v31 = vpop.permute.xlu0 %1715  ;;  %v3681_v8 = vsel %vm2495_vm7, 1.0, %v4529_v16  ;;  %v2306_v48 = vsel %vm274_vm0, %v2020_v12, 0.0  ;;  %v4424_v63 = vld [vmem:[%s8510_s1 + $0x180] sm:$0xff]  ;;  %vm1898_vm7 = vcmp.eq.s32.totalorder %v6796_v43, %v7468_v15 }
 0x402   :  { %1811 = vperm.xlu0 %3772, %v273_v19   ;;  %v3135_v19 = vsub.f32 %v2922_v59, %v7303_v39  ;;  %v1674_v55 = vpop.permute.xlu1 %1673  ;;  %v3682_v39 = vsel %vm2496_vm10, 1.0, %v4529_v16  ;;  %v3138_v59 = vsub.f32 %v2928_v52, %v7317_v37  ;;  %vm2501_vm6 = vcmp.ge.s32.totalorder %v4424_v63, 0 }
 0x403   :  { %v3264_v32 = vmul.f32 %v3682_v39, %v3136_v54  ;;  %vm1894_vm13 = vcmp.eq.s32.totalorder %v6796_v43, %v1674_v55  ;;  %v8991_v39 = vld [vmem:[#allocation145_spill] sm:$0xff] }
 0x404   :  { %v3263_v42 = vmul.f32 %v3681_v8, %v3135_v19  ;;  %v2022_v23 = vsel %vm1894_vm13, %v8988_v33, 0.0  ;;  %v3139_v19 = vsub.f32 %v2930_v53, %v7324_v25  ;;  %v4125_v50 = vpop.eup %4124  ;;  %v8989_v8 = vld [vmem:[#allocation142_spill] sm:$0xff]  ;;  %v3266_v54 = vmul.f32 %v3684_v18, %v3138_v59  ;;  %v4423_v25 = vld [vmem:[%s8510_s1 + $0x178] sm:$0xff] }
 0x405   :  { %2298 = vadd.xlane.f32.xlu1 %v2297_v0  ;;  %v7640_v40 = vpop.permute.xlu0 %1718  ;;  %v3432_v0 = vsel %vm3350_vm9, %v3262_v10, 0.0  ;;  %v3436_v45 = vsel %vm3350_vm9, %v3264_v32, 0.0  ;;  %4128 = vlog2.f32 %v8989_v8  ;;  %v2312_v10 = vsel %vm274_vm0, %v2022_v23, 0.0  ;;  %v8993_v32 = vld [vmem:[#allocation84_spill] sm:$0xff]  ;;  %v4127_v61 = vpop.eup %4126  ;;  %v4425_v53 = vld [vmem:[%s8510_s1 + $0x188] sm:$0xff]  ;;  %v8997_v18 = vld [vmem:[#allocation147_spill] sm:$0xff] }
 0x406   :  { %v3433_v51 = vadd.f32 %v3432_v0, %v3431_v1  ;;  %v3434_v27 = vsel %vm3350_vm9, %v3263_v42, 0.0  ;;  %v1677_v26 = vpop.permute.xlu1 %1676  ;;  %vm2500_vm4 = vcmp.ge.s32.totalorder %v4423_v25, 0  ;;  %v2932_v29 = vmul.f32 0.6931472, %v4125_v50  ;;  %v8996_v33 = vld [vmem:[#allocation104_spill] sm:$0xff] }
 0x407   :  { %vm1895_vm1 = vcmp.eq.s32.totalorder %v6796_v43, %v1677_v26  ;;  %4130 = vlog2.f32 %v8991_v39  ;;  %v3440_v30 = vsel %vm3350_vm9, %v3266_v54, 0.0  ;;  %v2024_v4 = vsel %vm1896_vm2, %v8993_v32, 0.0 }
 0x408   :  { %v3435_v13 = vadd.f32 %v3434_v27, %v3433_v51  ;;  %v2023_v12 = vsel %vm1895_vm1, %v8990_v36, 0.0  ;;  %v3140_v2 = vsub.f32 %v2932_v29, %v7322_v28  ;;  %v3686_v17 = vsel %vm2500_vm4, 1.0, %v4529_v16  ;;  %v8994_v51 = vld [vmem:[#allocation144_spill] sm:$0xff]  ;;  %v4426_v29 = vld [vmem:[%s8510_s1 + $0x190] sm:$0xff] }
 0x409   :  { %2301 = vadd.xlane.f32.xlu1 %v2300_v46  ;;  %v7655_v47 = vpop.permute.xlu0 %1721  ;;  %v3683_v46 = vsel %vm2497_vm12, 1.0, %v4529_v16  ;;  %v2315_v41 = vsel %vm274_vm0, %v2023_v12, 0.0  ;;  %4132 = vlog2.f32 %v8994_v51  ;;  %v2318_v27 = vsel %vm274_vm0, %v2024_v4, 0.0 }
 0x40a   :  { %v3265_v22 = vmul.f32 %v3683_v46, %v3137_v62  ;;  %v3437_v37 = vadd.f32 %v3436_v45, %v3435_v13  ;;  %v3268_v52 = vmul.f32 %v3686_v17, %v3140_v2  ;;  %v2934_v14 = vmul.f32 0.6931472, %v4127_v61  ;;  %v4427_v17 = vld [vmem:[%s8510_s1 + $0x198] sm:$0xff] }
 0x40b   :  { %v3687_v59 = vsel %vm2501_vm6, 1.0, %v4529_v16  ;;  %vm2502_vm10 = vcmp.ge.s32.totalorder %v4425_v53, 0  ;;  %4134 = vlog2.f32 %v8997_v18  ;;  %vm2503_vm12 = vcmp.ge.s32.totalorder %v4426_v29, 0  ;;  %v9004_v18 = vld [vmem:[#allocation148_spill] sm:$0xff] }
 0x40c   :  { %v3438_v44 = vsel %vm3350_vm9, %v3265_v22, 0.0  ;;  %v2321_v22 = vsel %vm274_vm0, %v2025_v38, 0.0  ;;  %v3444_v50 = vsel %vm3350_vm9, %v3268_v52, 0.0  ;;  %vm1900_vm13 = vcmp.eq.s32.totalorder %v6796_v43, %v7496_v24 }
 0x40d   :  { %2304 = vadd.xlane.f32.xlu1 %v2303_v56  ;;  %v7672_v58 = vpop.permute.xlu0 %1724  ;;  %v3685_v56 = vsel %vm2499_vm15, 1.0, %v4529_v16  ;;  %v3439_v42 = vadd.f32 %v3438_v44, %v3437_v37  ;;  %v3688_v44 = vsel %vm2502_vm10, 1.0, %v4529_v16  ;;  %v3689_v61 = vsel %vm2503_vm12, 1.0, %v4529_v16 }
 0x40e   :  { %v3267_v1 = vmul.f32 %v3685_v56, %v3139_v19  ;;  %vm2504_vm15 = vcmp.ge.s32.totalorder %v4427_v17, 0  ;;  %vm1901_vm1 = vcmp.eq.s32.totalorder %v6796_v43, %v7512_v49  ;;  %vm1903_vm6 = vcmp.eq.s32.totalorder %v6796_v43, %v7545_v5  ;;  %v4430_v17 = vld [vmem:[%s8510_s1 + $0x1b0] sm:$0xff] }
 0x40f   :  { %v3441_v20 = vadd.f32 %v3440_v30, %v3439_v42  ;;  %v4129_v46 = vpop.eup %4128  ;;  %v8999_v42 = vld [vmem:[#allocation146_spill] sm:$0xff]  ;;  %v3690_v53 = vsel %vm2504_vm15, 1.0, %v4529_v16  ;;  %vm1905_vm12 = vcmp.eq.s32.totalorder %v6796_v43, %v7577_v6 }
 0x410   :  { %v3442_v28 = vsel %vm3350_vm9, %v3267_v1, 0.0  ;;  %v2936_v56 = vmul.f32 0.6931472, %v4129_v46  ;;  %4136 = vlog2.f32 %v8999_v42  ;;  %v9003_v46 = vld [vmem:[#allocation88_spill] sm:$0xff] }
 0x411   :  { %2307 = vadd.xlane.f32.xlu1 %v2306_v48  ;;  %v7684_v21 = vpop.permute.xlu0 %1727  ;;  %v8992_v48 = vld [vmem:[#allocation97_spill] sm:$0xff]  ;;  %v4131_v36 = vpop.eup %4130 }
 0x412   :  { %v2035_v35 = vsel %vm1907_vm3, %v8992_v48, 0.0  ;;  %v2938_v2 = vmul.f32 0.6931472, %v4131_v36  ;;  %v9000_v48 = vld [vmem:[#allocation89_spill] sm:$0xff]  ;;  %vm1902_vm3 = vcmp.eq.s32.totalorder %v6796_v43, %v7529_v57 }
 0x413   :  { %v2351_v62 = vsel %vm274_vm0, %v2035_v35, 0.0  ;;  %v2027_v35 = vsel %vm1899_vm11, %v9000_v48, 0.0  ;;  %v4133_v32 = vpop.eup %4132  ;;  %v9008_v48 = vld [vmem:[#allocation90_spill] sm:$0xff] }
 0x414   :  { %v2327_v52 = vsel %vm274_vm0, %v2027_v35, 0.0  ;;  %v2940_v38 = vmul.f32 0.6931472, %v4133_v32  ;;  %v2030_v35 = vsel %vm1902_vm3, %v9008_v48, 0.0  ;;  %v4433_v48 = vld [vmem:[%s8510_s1 + $0x1c8] sm:$0xff] }
 0x415   :  { %2310 = vadd.xlane.f32.xlu1 %v2309_v60  ;;  %v7702_v9 = vpop.permute.xlu0 %1730  ;;  %v3443_v60 = vadd.f32 %v3442_v28, %v3441_v20  ;;  %v9001_v28 = vld [vmem:[#allocation106_spill] sm:$0xff] }
 0x417   :  { %v3445_v12 = vadd.f32 %v3444_v50, %v3443_v60  ;;  %v2028_v60 = vsel %vm1900_vm13, %v9003_v46, 0.0 }
 0x419   :  { %2313 = vadd.xlane.f32.xlu1 %v2312_v10  ;;  %v7715_v55 = vpop.permute.xlu0 %1733  ;;  %v8998_v10 = vld [vmem:[#allocation86_spill] sm:$0xff] }
 0x41a   :  { %v2026_v54 = vsel %vm1898_vm7, %v8998_v10, 0.0  ;;  %vm2507_vm7 = vcmp.ge.s32.totalorder %v4430_v17, 0  ;;  %v9017_v17 = vld [vmem:[#allocation155_spill] sm:$0xff] }
 0x41b   :  { %v3693_v46 = vsel %vm2507_vm7, 1.0, %v4529_v16  ;;  %vm1910_vm7 = vcmp.eq.s32.totalorder %v6796_v43, %v7655_v47 }
 0x41d   :  { %2316 = vadd.xlane.f32.xlu1 %v2315_v41  ;;  %v7731_v0 = vpop.permute.xlu0 %1736  ;;  %v2324_v41 = vsel %vm274_vm0, %v2026_v54, 0.0 }
 0x421   :  { %2319 = vadd.xlane.f32.xlu1 %v2318_v27  ;;  %2352 = vadd.xlane.f32.xlu0 %v2351_v62  ;;  %v1740_v26 = vpop.permute.xlu0 %1739  ;;  %v9002_v27 = vld [vmem:[#allocation149_spill] sm:$0xff] }
 0x422   :  { %vm1916_vm8 = vcmp.eq.s32.totalorder %v6796_v43, %v1740_v26  ;;  %v2215_v45 = vpop.xlane.xlu1 %2214  ;;  %4138 = vlog2.f32 %v9002_v27 }
 0x423   :  { %v2044_v23 = vsel %vm1916_vm8, %v8996_v33, 0.0  ;;  %v3141_v13 = vsub.f32 %v2934_v14, %v2215_v45  ;;  %v4135_v45 = vpop.eup %4134  ;;  %v4428_v33 = vld [vmem:[%s8510_s1 + $0x1a0] sm:$0xff]  ;;  %4140 = vlog2.f32 %v9004_v18  ;;  %vm1904_vm8 = vcmp.eq.s32.totalorder %v6796_v43, %v7561_v7 }
 0x424   :  { %v2378_v19 = vsel %vm274_vm0, %v2044_v23, 0.0  ;;  %vm2505_vm2 = vcmp.ge.s32.totalorder %v4428_v33, 0  ;;  %v2942_v50 = vmul.f32 0.6931472, %v4135_v45  ;;  %v4137_v10 = vpop.eup %4136 }
 0x425   :  { %v3269_v8 = vmul.f32 %v3687_v59, %v3141_v13  ;;  %2322 = vadd.xlane.f32.xlu1 %v2321_v22  ;;  %2379 = vadd.xlane.f32.xlu0 %v2378_v19  ;;  %v7758_v37 = vpop.permute.xlu0 %1742  ;;  %v2330_v22 = vsel %vm274_vm0, %v2028_v60, 0.0  ;;  %v3691_v36 = vsel %vm2505_vm2, 1.0, %v4529_v16  ;;  %v4431_v60 = vld [vmem:[%s8510_s1 + $0x1b8] sm:$0xff]  ;;  %vm1908_vm2 = vcmp.eq.s32.totalorder %v6796_v43, %v7626_v31 }
 0x426   :  { %v2218_v25 = vpop.xlane.xlu1 %2217  ;;  %vm2508_vm11 = vcmp.ge.s32.totalorder %v4431_v60, 0  ;;  %v9019_v60 = vld [vmem:[#allocation154_spill] sm:$0xff] }
 0x427   :  { %v3446_v1 = vsel %vm3350_vm9, %v3269_v8, 0.0  ;;  %v3142_v39 = vsub.f32 %v2936_v56, %v2218_v25  ;;  %v9005_v8 = vld [vmem:[#allocation91_spill] sm:$0xff] }
 0x428   :  { %v3447_v15 = vadd.f32 %v3446_v1, %v3445_v12  ;;  %v2029_v56 = vsel %vm1901_vm1, %v9005_v8, 0.0  ;;  %v4429_v12 = vld [vmem:[%s8510_s1 + $0x1a8] sm:$0xff]  ;;  %vm2510_vm1 = vcmp.ge.s32.totalorder %v4433_v48, 0 }
 0x429   :  { %v3270_v30 = vmul.f32 %v3688_v44, %v3142_v39  ;;  %2325 = vadd.xlane.f32.xlu1 %v2324_v41  ;;  %v1746_v11 = vpop.permute.xlu0 %1745  ;;  %vm2506_vm5 = vcmp.ge.s32.totalorder %v4429_v12, 0  ;;  %v9006_v44 = vld [vmem:[#allocation108_spill] sm:$0xff]  ;;  %v9007_v39 = vld [vmem:[#allocation151_spill] sm:$0xff] }
 0x42a   :  { %vm1918_vm14 = vcmp.eq.s32.totalorder %v6796_v43, %v1746_v11  ;;  %v2221_v4 = vpop.xlane.xlu1 %2220  ;;  %4142 = vlog2.f32 %v9007_v39 }
 0x42b   :  { %v3448_v63 = vsel %vm3350_vm9, %v3270_v30, 0.0  ;;  %v2046_v51 = vsel %vm1918_vm14, %v9001_v28, 0.0  ;;  %v3143_v20 = vsub.f32 %v2938_v2, %v2221_v4  ;;  %v2944_v2 = vmul.f32 0.6931472, %v4137_v10 }
 0x42c   :  { %v3449_v62 = vadd.f32 %v3448_v63, %v3447_v15  ;;  %v2384_v26 = vsel %vm274_vm0, %v2046_v51, 0.0  ;;  %v2333_v15 = vsel %vm274_vm0, %v2029_v56, 0.0  ;;  %v4139_v32 = vpop.eup %4138  ;;  %v9009_v51 = vld [vmem:[#allocation150_spill] sm:$0xff]  ;;  %vm1906_vm14 = vcmp.eq.s32.totalorder %v6796_v43, %v7593_v3 }
 0x42d   :  { %v3271_v14 = vmul.f32 %v3689_v61, %v3143_v20  ;;  %2328 = vadd.xlane.f32.xlu1 %v2327_v52  ;;  %2385 = vadd.xlane.f32.xlu0 %v2384_v26  ;;  %v7787_v34 = vpop.permute.xlu0 %1748  ;;  %v3692_v61 = vsel %vm2506_vm5, 1.0, %v4529_v16  ;;  %4144 = vlog2.f32 %v9009_v51  ;;  %v2336_v20 = vsel %vm274_vm0, %v2030_v35, 0.0  ;;  %v9010_v52 = vld [vmem:[#allocation93_spill] sm:$0xff]  ;;  %v9018_v51 = vld [vmem:[#allocation94_spill] sm:$0xff] }
 0x42e   :  { %v2224_v59 = vpop.xlane.xlu1 %2223  ;;  %v2031_v26 = vsel %vm1903_vm6, %v9010_v52, 0.0 }
 0x42f   :  { %v3450_v23 = vsel %vm3350_vm9, %v3271_v14, 0.0  ;;  %v3144_v13 = vsub.f32 %v2940_v38, %v2224_v59  ;;  %v4141_v14 = vpop.eup %4140  ;;  %v9011_v59 = vld [vmem:[#allocation110_spill] sm:$0xff]  ;;  %v2339_v18 = vsel %vm274_vm0, %v2031_v26, 0.0  ;;  %v3696_v26 = vsel %vm2510_vm1, 1.0, %v4529_v16 }
 0x430   :  { %v3451_v24 = vadd.f32 %v3450_v23, %v3449_v62  ;;  %v2946_v62 = vmul.f32 0.6931472, %v4139_v32  ;;  %v9012_v23 = vld [vmem:[#allocation153_spill] sm:$0xff]  ;;  %v9016_v32 = vld [vmem:[#allocation112_spill] sm:$0xff] }
 0x431   :  { %v3272_v19 = vmul.f32 %v3690_v53, %v3144_v13  ;;  %2331 = vadd.xlane.f32.xlu1 %v2330_v22  ;;  %v1752_v49 = vpop.permute.xlu0 %1751  ;;  %4146 = vlog2.f32 %v9012_v23 }
 0x432   :  { %vm1920_vm4 = vcmp.eq.s32.totalorder %v6796_v43, %v1752_v49  ;;  %v2227_v54 = vpop.xlane.xlu1 %2226  ;;  %v2948_v49 = vmul.f32 0.6931472, %v4141_v14  ;;  %v4434_v14 = vld [vmem:[%s8510_s1 + $0x1d0] sm:$0xff] }
 0x433   :  { %v3452_v25 = vsel %vm3350_vm9, %v3272_v19, 0.0  ;;  %v2048_v29 = vsel %vm1920_vm4, %v9006_v44, 0.0  ;;  %v3145_v1 = vsub.f32 %v2942_v50, %v2227_v54  ;;  %v9013_v50 = vld [vmem:[#allocation92_spill] sm:$0xff]  ;;  %v3694_v54 = vsel %vm2508_vm11, 1.0, %v4529_v16 }
 0x434   :  { %v3453_v42 = vadd.f32 %v3452_v25, %v3451_v24  ;;  %v2390_v41 = vsel %vm274_vm0, %v2048_v29, 0.0  ;;  %v2032_v8 = vsel %vm1904_vm8, %v9013_v50, 0.0  ;;  %v4143_v56 = vpop.eup %4142  ;;  %v9014_v44 = vld [vmem:[#allocation152_spill] sm:$0xff]  ;;  %vm2511_vm3 = vcmp.ge.s32.totalorder %v4434_v14, 0 }
 0x435   :  { %v3273_v30 = vmul.f32 %v3691_v36, %v3145_v1  ;;  %2334 = vadd.xlane.f32.xlu1 %v2333_v15  ;;  %2391 = vadd.xlane.f32.xlu0 %v2390_v41  ;;  %v7816_v11 = vpop.permute.xlu0 %1754  ;;  %v4432_v36 = vld [vmem:[%s8510_s1 + $0x1c0] sm:$0xff]  ;;  %4148 = vlog2.f32 %v9014_v44  ;;  %v2342_v29 = vsel %vm274_vm0, %v2032_v8, 0.0  ;;  %v2950_v39 = vmul.f32 0.6931472, %v4143_v56  ;;  %v9021_v8 = vld [vmem:[#allocation114_spill] sm:$0xff] }
 0x436   :  { %v2230_v4 = vpop.xlane.xlu1 %2229  ;;  %vm2509_vm13 = vcmp.ge.s32.totalorder %v4432_v36, 0  ;;  %4150 = vlog2.f32 %v9017_v17  ;;  %vm1909_vm4 = vcmp.eq.s32.totalorder %v6796_v43, %v7640_v40 }
 0x437   :  { %v3454_v63 = vsel %vm3350_vm9, %v3273_v30, 0.0  ;;  %v3146_v28 = vsub.f32 %v2944_v2, %v2230_v4  ;;  %v4145_v41 = vpop.eup %4144  ;;  %v3695_v2 = vsel %vm2509_vm13, 1.0, %v4529_v16  ;;  %4152 = vlog2.f32 %v9019_v60 }
 0x438   :  { %v3455_v57 = vadd.f32 %v3454_v63, %v3453_v42  ;;  %v9015_v42 = vld [vmem:[#allocation95_spill] sm:$0xff]  ;;  %vm1912_vm13 = vcmp.eq.s32.totalorder %v6796_v43, %v7684_v21 }
 0x439   :  { %v3274_v27 = vmul.f32 %v3692_v61, %v3146_v28  ;;  %2337 = vadd.xlane.f32.xlu1 %v2336_v20  ;;  %v1758_v5 = vpop.permute.xlu0 %1757  ;;  %v2033_v15 = vsel %vm1905_vm12, %v9015_v42, 0.0 }
 0x43a   :  { %vm1922_vm10 = vcmp.eq.s32.totalorder %v6796_v43, %v1758_v5  ;;  %v2233_v38 = vpop.xlane.xlu1 %2232  ;;  %v2345_v3 = vsel %vm274_vm0, %v2033_v15, 0.0  ;;  %v2952_v5 = vmul.f32 0.6931472, %v4145_v41  ;;  %v4436_v15 = vld [vmem:[%s8510_s1 + $0x1e0] sm:$0xff] }
 0x43b   :  { %v3456_v45 = vsel %vm3350_vm9, %v3274_v27, 0.0  ;;  %v2050_v53 = vsel %vm1922_vm10, %v9011_v59, 0.0  ;;  %v3147_v33 = vsub.f32 %v2946_v62, %v2233_v38  ;;  %v4147_v62 = vpop.eup %4146  ;;  %vm2513_vm8 = vcmp.ge.s32.totalorder %v4436_v15, 0  ;;  %v9033_v15 = vld [vmem:[#allocation103_spill] sm:$0xff] }
 0x43c   :  { %v3457_v13 = vadd.f32 %v3456_v45, %v3455_v57  ;;  %v2396_v24 = vsel %vm274_vm0, %v2050_v53, 0.0  ;;  %v2034_v57 = vsel %vm1906_vm14, %v9018_v51, 0.0  ;;  %v9020_v53 = vld [vmem:[#allocation96_spill] sm:$0xff]  ;;  %vm1911_vm10 = vcmp.eq.s32.totalorder %v6796_v43, %v7672_v58  ;;  %v4437_v51 = vld [vmem:[%s8510_s1 + $0x1e8] sm:$0xff] }
 0x43d   :  { %v3275_v22 = vmul.f32 %v3693_v46, %v3147_v33  ;;  %2340 = vadd.xlane.f32.xlu1 %v2339_v18  ;;  %2397 = vadd.xlane.f32.xlu0 %v2396_v24  ;;  %v7845_v19 = vpop.permute.xlu0 %1760  ;;  %v2348_v59 = vsel %vm274_vm0, %v2034_v57, 0.0  ;;  %v2036_v33 = vsel %vm1908_vm2, %v9020_v53, 0.0  ;;  %vm2514_vm12 = vcmp.ge.s32.totalorder %v4437_v51, 0  ;;  %v9035_v51 = vld [vmem:[#allocation102_spill] sm:$0xff] }
 0x43e   :  { %v2236_v10 = vpop.xlane.xlu1 %2235  ;;  %v2354_v40 = vsel %vm274_vm0, %v2036_v33, 0.0 }
 0x43f   :  { %v3458_v12 = vsel %vm3350_vm9, %v3275_v22, 0.0  ;;  %v3148_v25 = vsub.f32 %v2948_v49, %v2236_v10  ;;  %v4149_v18 = vpop.eup %4148  ;;  %v3697_v22 = vsel %vm2511_vm3, 1.0, %v4529_v16  ;;  %v4435_v49 = vld [vmem:[%s8510_s1 + $0x1d8] sm:$0xff]  ;;  %vm1914_vm3 = vcmp.eq.s32.totalorder %v6796_v43, %v7715_v55 }
 0x440   :  { %v3459_v7 = vadd.f32 %v3458_v12, %v3457_v13  ;;  %v2954_v13 = vmul.f32 0.6931472, %v4147_v62  ;;  %vm2512_vm6 = vcmp.ge.s32.totalorder %v4435_v49, 0 }
 0x441   :  { %v3276_v1 = vmul.f32 %v3694_v54, %v3148_v25  ;;  %2343 = vadd.xlane.f32.xlu1 %v2342_v29  ;;  %v1764_v6 = vpop.permute.xlu0 %1763  ;;  %v9022_v54 = vld [vmem:[#allocation157_spill] sm:$0xff]  ;;  %v9023_v25 = vld [vmem:[#allocation99_spill] sm:$0xff]  ;;  %v3698_v42 = vsel %vm2512_vm6, 1.0, %v4529_v16 }
 0x442   :  { %vm1924_vm15 = vcmp.eq.s32.totalorder %v6796_v43, %v1764_v6  ;;  %v2239_v30 = vpop.xlane.xlu1 %2238  ;;  %4154 = vlog2.f32 %v9022_v54  ;;  %v2037_v44 = vsel %vm1909_vm4, %v9023_v25, 0.0  ;;  %v4151_v6 = vpop.eup %4150 }
 0x443   :  { %v3460_v35 = vsel %vm3350_vm9, %v3276_v1, 0.0  ;;  %v2052_v4 = vsel %vm1924_vm15, %v9016_v32, 0.0  ;;  %v3149_v61 = vsub.f32 %v2950_v39, %v2239_v30  ;;  %v2956_v1 = vmul.f32 0.6931472, %v4149_v18  ;;  %v9025_v32 = vld [vmem:[#allocation98_spill] sm:$0xff] }
 0x444   :  { %v3461_v63 = vadd.f32 %v3460_v35, %v3459_v7  ;;  %v2402_v28 = vsel %vm274_vm0, %v2052_v4, 0.0  ;;  %v2357_v35 = vsel %vm274_vm0, %v2037_v44, 0.0  ;;  %v2038_v4 = vsel %vm1910_vm7, %v9025_v32, 0.0  ;;  %v9031_v44 = vld [vmem:[#allocation118_spill] sm:$0xff] }
 0x445   :  { %v3277_v20 = vmul.f32 %v3695_v2, %v3149_v61  ;;  %2346 = vadd.xlane.f32.xlu1 %v2345_v3  ;;  %2403 = vadd.xlane.f32.xlu0 %v2402_v28  ;;  %v7875_v27 = vpop.permute.xlu0 %1766  ;;  %v9024_v2 = vld [vmem:[#allocation156_spill] sm:$0xff]  ;;  %v2958_v17 = vmul.f32 0.6931472, %v4151_v6  ;;  %v3699_v28 = vsel %vm2513_vm8, 1.0, %v4529_v16  ;;  %v2360_v58 = vsel %vm274_vm0, %v2038_v4, 0.0  ;;  %v9032_v6 = vld [vmem:[#allocation161_spill] sm:$0xff] }
 0x446   :  { %v2242_v52 = vpop.xlane.xlu1 %2241  ;;  %4156 = vlog2.f32 %v9024_v2  ;;  %vm1913_vm15 = vcmp.eq.s32.totalorder %v6796_v43, %v7702_v9  ;;  %vm1917_vm8 = vcmp.eq.s32.totalorder %v6796_v43, %v7758_v37 }
 0x447   :  { %v3462_v38 = vsel %vm3350_vm9, %v3277_v20, 0.0  ;;  %v3150_v46 = vsub.f32 %v2952_v5, %v2242_v52  ;;  %v9026_v20 = vld [vmem:[#allocation116_spill] sm:$0xff]  ;;  %v9027_v52 = vld [vmem:[#allocation159_spill] sm:$0xff] }
 0x448   :  { %v3463_v45 = vadd.f32 %v3462_v38, %v3461_v63  ;;  %v4153_v63 = vpop.eup %4152  ;;  %4158 = vlog2.f32 %v9027_v52  ;;  %v9028_v38 = vld [vmem:[#allocation101_spill] sm:$0xff] }
 0x449   :  { %v3278_v31 = vmul.f32 %v3696_v26, %v3150_v46  ;;  %2349 = vadd.xlane.f32.xlu1 %v2348_v59  ;;  %v1770_v23 = vpop.permute.xlu0 %1769  ;;  %v2039_v46 = vsel %vm1911_vm10, %v9028_v38, 0.0  ;;  %v2960_v59 = vmul.f32 0.6931472, %v4153_v63  ;;  %v9034_v63 = vld [vmem:[#allocation160_spill] sm:$0xff] }
 0x44a   :  { %vm1926_vm5 = vcmp.eq.s32.totalorder %v6796_v43, %v1770_v23  ;;  %v2245_v24 = vpop.xlane.xlu1 %2244  ;;  %v4438_v23 = vld [vmem:[%s8510_s1 + $0x1f0] sm:$0xff]  ;;  %v2363_v49 = vsel %vm274_vm0, %v2039_v46, 0.0  ;;  %v9036_v38 = vld [vmem:[#allocation120_spill] sm:$0xff] }
 0x44b   :  { %v3464_v50 = vsel %vm3350_vm9, %v3278_v31, 0.0  ;;  %v2054_v56 = vsel %vm1926_vm5, %v9021_v8, 0.0  ;;  %v3151_v10 = vsub.f32 %v2954_v13, %v2245_v24  ;;  %v3700_v31 = vsel %vm2514_vm12, 1.0, %v4529_v16  ;;  %v9029_v24 = vld [vmem:[#allocation158_spill] sm:$0xff] }
 0x44c   :  { %v3465_v36 = vadd.f32 %v3464_v50, %v3463_v45  ;;  %v2408_v12 = vsel %vm274_vm0, %v2054_v56, 0.0  ;;  %v4155_v53 = vpop.eup %4154  ;;  %vm2515_vm14 = vcmp.ge.s32.totalorder %v4438_v23, 0  ;;  %4160 = vlog2.f32 %v9029_v24  ;;  %v9030_v50 = vld [vmem:[#allocation100_spill] sm:$0xff] }
 0x44d   :  { %v3279_v7 = vmul.f32 %v3697_v22, %v3151_v10  ;;  %2355 = vadd.xlane.f32.xlu1 %v2354_v40  ;;  %2409 = vadd.xlane.f32.xlu0 %v2408_v12  ;;  %v7901_v29 = vpop.permute.xlu0 %1772  ;;  %v2040_v8 = vsel %vm1912_vm13, %v9030_v50, 0.0  ;;  %v2962_v10 = vmul.f32 0.6931472, %v4155_v53  ;;  %v3701_v40 = vsel %vm2515_vm14, 1.0, %v4529_v16  ;;  %v4439_v12 = vld [vmem:[%s8510_s1 + $0x1f8] sm:$0xff] }
 0x44e   :  { %v2248_v39 = vpop.xlane.xlu1 %2247  ;;  %vm2516_vm2 = vcmp.ge.s32.totalorder %v4439_v12, 0  ;;  %4162 = vlog2.f32 %v9032_v6  ;;  %v2366_v9 = vsel %vm274_vm0, %v2040_v8, 0.0  ;;  %vm1915_vm5 = vcmp.eq.s32.totalorder %v6796_v43, %v7731_v0 }
 0x44f   :  { %v3466_v41 = vsel %vm3350_vm9, %v3279_v7, 0.0  ;;  %v3152_v30 = vsub.f32 %v2956_v1, %v2248_v39  ;;  %v3702_v4 = vsel %vm2516_vm2, 1.0, %v4529_v16  ;;  %4164 = vlog2.f32 %v9034_v63 }
 0x450   :  { %v3467_v48 = vadd.f32 %v3466_v41, %v3465_v36  ;;  %v4157_v54 = vpop.eup %4156  ;;  %v2041_v41 = vsel %vm1913_vm15, %v9033_v15, 0.0  ;;  %v4443_v15 = vld [vmem:[%s8510_s1 + $0x218] sm:$0xff]  ;;  %vm1921_vm14 = vcmp.eq.s32.totalorder %v6796_v43, %v7816_v11 }
 0x451   :  { %v3280_v47 = vmul.f32 %v3698_v42, %v3152_v30  ;;  %2358 = vadd.xlane.f32.xlu1 %v2357_v35  ;;  %v1776_v61 = vpop.permute.xlu0 %1775  ;;  %vm2520_vm13 = vcmp.ge.s32.totalorder %v4443_v15, 0  ;;  %v9050_v15 = vld [vmem:[#allocation123_spill] sm:$0xff] }
 0x452   :  { %vm1928_vm11 = vcmp.eq.s32.totalorder %v6796_v43, %v1776_v61  ;;  %v2251_v3 = vpop.xlane.xlu1 %2250  ;;  %v4159_v35 = vpop.eup %4158  ;;  %v3706_v63 = vsel %vm2520_vm13, 1.0, %v4529_v16 }
 0x453   :  { %v3468_v57 = vsel %vm3350_vm9, %v3280_v47, 0.0  ;;  %v2056_v5 = vsel %vm1928_vm11, %v9026_v20, 0.0  ;;  %v3153_v62 = vsub.f32 %v2958_v17, %v2251_v3  ;;  %v4440_v47 = vld [vmem:[%s8510_s1 + $0x200] sm:$0xff]  ;;  %vm1919_vm11 = vcmp.eq.s32.totalorder %v6796_v43, %v7787_v34 }
 0x454   :  { %v3469_v26 = vadd.f32 %v3468_v57, %v3467_v48  ;;  %v2414_v14 = vsel %vm274_vm0, %v2056_v5, 0.0  ;;  %v2964_v48 = vmul.f32 0.6931472, %v4157_v54  ;;  %vm2517_vm4 = vcmp.ge.s32.totalorder %v4440_v47, 0  ;;  %v9041_v34 = vld [vmem:[#allocation109_spill] sm:$0xff] }
 0x455   :  { %v3281_v60 = vmul.f32 %v3699_v28, %v3153_v62  ;;  %2361 = vadd.xlane.f32.xlu1 %v2360_v58  ;;  %2415 = vadd.xlane.f32.xlu0 %v2414_v14  ;;  %v7927_v45 = vpop.permute.xlu0 %1778  ;;  %v2369_v28 = vsel %vm274_vm0, %v2041_v41, 0.0  ;;  %v2042_v57 = vsel %vm1914_vm3, %v9035_v51, 0.0  ;;  %v2966_v5 = vmul.f32 0.6931472, %v4159_v35  ;;  %v4441_v58 = vld [vmem:[%s8510_s1 + $0x208] sm:$0xff]  ;;  %v4444_v51 = vld [vmem:[%s8510_s1 + $0x220] sm:$0xff] }
 0x456   :  { %v2254_v33 = vpop.xlane.xlu1 %2253  ;;  %v4161_v62 = vpop.eup %4160  ;;  %vm2518_vm7 = vcmp.ge.s32.totalorder %v4441_v58, 0  ;;  %v2372_v0 = vsel %vm274_vm0, %v2042_v57, 0.0  ;;  %vm2521_vm15 = vcmp.ge.s32.totalorder %v4444_v51, 0  ;;  %vm1925_vm3 = vcmp.eq.s32.totalorder %v6796_v43, %v7875_v27  ;;  %v9046_v27 = vld [vmem:[#allocation132_spill] sm:$0xff]  ;;  %v9054_v51 = vld [vmem:[#allocation139_spill] sm:$0xff] }
 0x457   :  { %v3470_v13 = vsel %vm3350_vm9, %v3281_v60, 0.0  ;;  %v3154_v18 = vsub.f32 %v2960_v59, %v2254_v33  ;;  %v9037_v59 = vld [vmem:[#allocation163_spill] sm:$0xff]  ;;  %v2968_v24 = vmul.f32 0.6931472, %v4161_v62  ;;  %v3704_v50 = vsel %vm2518_vm7, 1.0, %v4529_v16 }
 0x458   :  { %v3471_v22 = vadd.f32 %v3470_v13, %v3469_v26  ;;  %v3703_v26 = vsel %vm2517_vm4, 1.0, %v4529_v16  ;;  %4166 = vlog2.f32 %v9037_v59  ;;  %v3707_v58 = vsel %vm2521_vm15, 1.0, %v4529_v16 }
 0x459   :  { %v3282_v21 = vmul.f32 %v3700_v31, %v3154_v18  ;;  %2364 = vadd.xlane.f32.xlu1 %v2363_v49  ;;  %v1782_v56 = vpop.permute.xlu0 %1781  ;;  %v9038_v31 = vld [vmem:[#allocation105_spill] sm:$0xff]  ;;  %vm1927_vm4 = vcmp.eq.s32.totalorder %v6796_v43, %v7901_v29 }
 0x45a   :  { %vm1930_vm1 = vcmp.eq.s32.totalorder %v6796_v43, %v1782_v56  ;;  %v2257_v36 = vpop.xlane.xlu1 %2256  ;;  %v2043_v23 = vsel %vm1915_vm5, %v9038_v31, 0.0  ;;  %v4442_v56 = vld [vmem:[%s8510_s1 + $0x210] sm:$0xff] }
 0x45b   :  { %v3472_v25 = vsel %vm3350_vm9, %v3282_v21, 0.0  ;;  %v2058_v7 = vsel %vm1930_vm1, %v9031_v44, 0.0  ;;  %v3155_v1 = vsub.f32 %v2962_v10, %v2257_v36  ;;  %vm2519_vm10 = vcmp.ge.s32.totalorder %v4442_v56, 0  ;;  %v9039_v36 = vld [vmem:[#allocation107_spill] sm:$0xff] }
 0x45c   :  { %v3473_v39 = vadd.f32 %v3472_v25, %v3471_v22  ;;  %v2420_v42 = vsel %vm274_vm0, %v2058_v7, 0.0  ;;  %v4163_v22 = vpop.eup %4162  ;;  %v2375_v54 = vsel %vm274_vm0, %v2043_v23, 0.0  ;;  %vm1923_vm1 = vcmp.eq.s32.totalorder %v6796_v43, %v7845_v19 }
 0x45d   :  { %v3283_v30 = vmul.f32 %v3701_v40, %v3155_v1  ;;  %2367 = vadd.xlane.f32.xlu1 %v2366_v9  ;;  %2421 = vadd.xlane.f32.xlu0 %v2420_v42  ;;  %v7953_v2 = vpop.permute.xlu0 %1784  ;;  %v2045_v40 = vsel %vm1917_vm8, %v9039_v36, 0.0  ;;  %v2970_v25 = vmul.f32 0.6931472, %v4163_v22  ;;  %v4165_v44 = vpop.eup %4164  ;;  %v3705_v1 = vsel %vm2519_vm10, 1.0, %v4529_v16 }
 0x45e   :  { %v2260_v32 = vpop.xlane.xlu1 %2259  ;;  %v2381_v41 = vsel %vm274_vm0, %v2045_v40, 0.0  ;;  %v9047_v40 = vld [vmem:[#allocation117_spill] sm:$0xff]  ;;  %vm1931_vm7 = vcmp.eq.s32.totalorder %v6796_v43, %v7953_v2 }
 0x45f   :  { %v3474_v61 = vsel %vm3350_vm9, %v3283_v30, 0.0  ;;  %v3156_v17 = vsub.f32 %v2964_v48, %v2260_v32  ;;  %v2047_v48 = vsel %vm1919_vm11, %v9041_v34, 0.0  ;;  %v9051_v34 = vld [vmem:[#allocation127_spill] sm:$0xff] }
 0x460   :  { %v3475_v3 = vadd.f32 %v3474_v61, %v3473_v39  ;;  %v9040_v39 = vld [vmem:[#allocation124_spill] sm:$0xff] }
 0x461   :  { %v3284_v55 = vmul.f32 %v3702_v4, %v3156_v17  ;;  %2370 = vadd.xlane.f32.xlu1 %v2369_v28  ;;  %v1788_v20 = vpop.permute.xlu0 %1787  ;;  %v2972_v4 = vmul.f32 0.6931472, %v4165_v44  ;;  %v9048_v44 = vld [vmem:[#allocation119_spill] sm:$0xff] }
 0x462   :  { %vm1932_vm6 = vcmp.eq.s32.totalorder %v6796_v43, %v1788_v20  ;;  %v2263_v52 = vpop.xlane.xlu1 %2262  ;;  %v4167_v47 = vpop.eup %4166  ;;  %v9042_v20 = vld [vmem:[#allocation111_spill] sm:$0xff] }
 0x463   :  { %v3476_v14 = vsel %vm3350_vm9, %v3284_v55, 0.0  ;;  %v2060_v46 = vsel %vm1932_vm6, %v9036_v38, 0.0  ;;  %v3157_v60 = vsub.f32 %v2966_v5, %v2263_v52  ;;  %v2387_v55 = vsel %vm274_vm0, %v2047_v48, 0.0  ;;  %v9043_v38 = vld [vmem:[#allocation128_spill] sm:$0xff] }
 0x464   :  { %v3477_v53 = vadd.f32 %v3476_v14, %v3475_v3  ;;  %v2426_v33 = vsel %vm274_vm0, %v2060_v46, 0.0  ;;  %v2049_v5 = vsel %vm1921_vm14, %v9042_v20, 0.0  ;;  %v2974_v52 = vmul.f32 0.6931472, %v4167_v47  ;;  %v9052_v47 = vld [vmem:[#allocation131_spill] sm:$0xff] }
 0x465   :  { %v3285_v13 = vmul.f32 %v3703_v26, %v3157_v60  ;;  %2373 = vadd.xlane.f32.xlu1 %v2372_v0  ;;  %2427 = vadd.xlane.f32.xlu0 %v2426_v33  ;;  %v7979_v18 = vpop.permute.xlu0 %1790  ;;  %v9044_v33 = vld [vmem:[#allocation113_spill] sm:$0xff]  ;;  %vm1929_vm6 = vcmp.eq.s32.totalorder %v6796_v43, %v7927_v45 }
 0x466   :  { %v2266_v49 = vpop.xlane.xlu1 %2265  ;;  %v2051_v31 = vsel %vm1923_vm1, %v9044_v33, 0.0  ;;  %vm1933_vm10 = vcmp.eq.s32.totalorder %v6796_v43, %v7979_v18  ;;  %v4445_v33 = vld [vmem:[%s8510_s1 + $0x228] sm:$0xff] }
 0x467   :  { %v3478_v8 = vsel %vm3350_vm9, %v3285_v13, 0.0  ;;  %v3158_v21 = vsub.f32 %v2968_v24, %v2266_v49  ;;  %v2399_v49 = vsel %vm274_vm0, %v2051_v31, 0.0  ;;  %v2061_v48 = vsel %vm1933_vm10, %v9051_v34, 0.0  ;;  %v4449_v34 = vld [vmem:[%s8510_s1 + $0x248] sm:$0xff] }
 0x468   :  { %v3479_v10 = vadd.f32 %v3478_v8, %v3477_v53  ;;  %v2393_v53 = vsel %vm274_vm0, %v2049_v5, 0.0 }
 0x469   :  { %v3286_v12 = vmul.f32 %v3704_v50, %v3158_v21  ;;  %2376 = vadd.xlane.f32.xlu1 %v2375_v54  ;;  %v1794_v37 = vpop.permute.xlu0 %1793  ;;  %v9045_v50 = vld [vmem:[#allocation115_spill] sm:$0xff] }
 0x46a   :  { %vm1934_vm12 = vcmp.eq.s32.totalorder %v6796_v43, %v1794_v37  ;;  %v2269_v7 = vpop.xlane.xlu1 %2268  ;;  %v2053_v8 = vsel %vm1925_vm3, %v9045_v50, 0.0  ;;  %v4446_v50 = vld [vmem:[%s8510_s1 + $0x230] sm:$0xff] }
 0x46b   :  { %v3480_v6 = vsel %vm3350_vm9, %v3286_v12, 0.0  ;;  %v2062_v9 = vsel %vm1934_vm12, %v9040_v39, 0.0  ;;  %v3159_v42 = vsub.f32 %v2970_v25, %v2269_v7  ;;  %v2405_v54 = vsel %vm274_vm0, %v2053_v8, 0.0  ;;  %v9049_v39 = vld [vmem:[#allocation136_spill] sm:$0xff] }
 0x46c   :  { %v2432_v30 = vsel %vm274_vm0, %v2062_v9, 0.0  ;;  %v3481_v61 = vadd.f32 %v3480_v6, %v3479_v10  ;;  %v2055_v12 = vsel %vm1927_vm4, %v9047_v40, 0.0  ;;  %v2057_v7 = vsel %vm1929_vm6, %v9048_v44, 0.0  ;;  %v4447_v40 = vld [vmem:[%s8510_s1 + $0x238] sm:$0xff] }
 0x46d   :  { %v3287_v35 = vmul.f32 %v3705_v1, %v3159_v42  ;;  %2382 = vadd.xlane.f32.xlu1 %v2381_v41  ;;  %2433 = vadd.xlane.f32.xlu0 %v2432_v30  ;;  %v8003_v32 = vpop.permute.xlu0 %1796  ;;  %v2411_v29 = vsel %vm274_vm0, %v2055_v12, 0.0  ;;  %v2417_v42 = vsel %vm274_vm0, %v2057_v7, 0.0  ;;  %v2059_v41 = vsel %vm1931_vm7, %v9050_v15, 0.0  ;;  %v9065_v12 = vld [vmem:[#allocation172_spill] sm:$0xff]  ;;  %v9066_v15 = vld [vmem:[#allocation175_spill] sm:$0xff] }
 0x46e   :  { %v2272_v17 = vpop.xlane.xlu1 %2271  ;;  %v2423_v2 = vsel %vm274_vm0, %v2059_v41, 0.0  ;;  %vm1935_vm11 = vcmp.eq.s32.totalorder %v6796_v43, %v8003_v32  ;;  %vm2523_vm14 = vcmp.ge.s32.totalorder %v4446_v50, 0  ;;  %vm2524_vm15 = vcmp.ge.s32.totalorder %v4447_v40, 0 }
 0x46f   :  { %v3482_v3 = vsel %vm3350_vm9, %v3287_v35, 0.0  ;;  %v3160_v28 = vsub.f32 %v2972_v4, %v2272_v17  ;;  %v2429_v4 = vsel %vm274_vm0, %v2061_v48, 0.0 }
 0x470   :  { %v3483_v57 = vadd.f32 %v3482_v3, %v3481_v61  ;;  %v2063_v61 = vsel %vm1935_vm11, %v9052_v47, 0.0 }
 0x471   :  { %v3288_v62 = vmul.f32 %v3706_v63, %v3160_v28  ;;  %2388 = vadd.xlane.f32.xlu1 %v2387_v55  ;;  %v1800_v11 = vpop.permute.xlu0 %1799  ;;  %v2435_v17 = vsel %vm274_vm0, %v2063_v61, 0.0  ;;  %v9053_v63 = vld [vmem:[#allocation135_spill] sm:$0xff] }
 0x472   :  { %vm1936_vm2 = vcmp.eq.s32.totalorder %v6796_v43, %v1800_v11  ;;  %v2275_v26 = vpop.xlane.xlu1 %2274  ;;  %v9056_v11 = vld [vmem:[#allocation165_spill] sm:$0xff] }
 0x473   :  { %v3484_v14 = vsel %vm3350_vm9, %v3288_v62, 0.0  ;;  %v2064_v46 = vsel %vm1936_vm2, %v9043_v38, 0.0  ;;  %v3161_v60 = vsub.f32 %v2974_v52, %v2275_v26  ;;  %v9055_v62 = vld [vmem:[#allocation162_spill] sm:$0xff]  ;;  %v9058_v26 = vld [vmem:[#allocation167_spill] sm:$0xff]  ;;  %v9060_v38 = vld [vmem:[#allocation169_spill] sm:$0xff]  ;;  %vm2526_vm2 = vcmp.ge.s32.totalorder %v4449_v34, 0 }
 0x474   :  { %v3485_v59 = vadd.f32 %v3484_v14, %v3483_v57  ;;  %v2438_v0 = vsel %vm274_vm0, %v2064_v46, 0.0  ;;  %4168 = vlog2.f32 %v9055_v62  ;;  %v9059_v14 = vld [vmem:[#allocation166_spill] sm:$0xff]  ;;  %v9073_v34 = vld [vmem:[#allocation180_spill] sm:$0xff] }
 0x475   :  { %v3289_v23 = vmul.f32 %v3707_v58, %v3161_v60  ;;  %2394 = vadd.xlane.f32.xlu1 %v2393_v53  ;;  %2439 = vadd.xlane.f32.xlu0 %v2438_v0  ;;  %v1803_v19 = vpop.permute.xlu0 %1802  ;;  %4170 = vlog2.f32 %v9056_v11  ;;  %v9062_v0 = vld [vmem:[#allocation171_spill] sm:$0xff] }
 0x476   :  { %v8025_v13 = vpop.xlane.xlu1 %2277  ;;  %vm1937_vm12 = vcmp.eq.s32.totalorder %v6796_v43, %v1803_v19 }
 0x477   :  { %v3486_v24 = vsel %vm3350_vm9, %v3289_v23, 0.0  ;;  %v2065_v3 = vsel %vm1937_vm12, %v9053_v63, 0.0 }
 0x478   :  { %v8028_v22 = vadd.f32 %v3486_v24, %v3485_v59  ;;  %v2441_v32 = vsel %vm274_vm0, %v2065_v3, 0.0  ;;  %v9061_v59 = vld [vmem:[#allocation168_spill] sm:$0xff]  ;;  %v9063_v24 = vld [vmem:[#allocation170_spill] sm:$0xff] }
 0x479   :  { %2400 = vadd.xlane.f32.xlu1 %v2399_v49  ;;  %v1806_v21 = vpop.permute.xlu0 %1805 }
 0x47a   :  { %vm1938_vm5 = vcmp.eq.s32.totalorder %v6796_v43, %v1806_v21  ;;  %v8035_v56 = vpop.xlane.xlu1 %2280 }
 0x47b   :  { %v2066_v10 = vsel %vm1938_vm5, %v9046_v27, 0.0 }
 0x47c   :  { %v2444_v36 = vsel %vm274_vm0, %v2066_v10, 0.0 }
 0x47d   :  { %2406 = vadd.xlane.f32.xlu1 %v2405_v54  ;;  %2445 = vadd.xlane.f32.xlu0 %v2444_v36  ;;  %v1809_v37 = vpop.permute.xlu0 %1808  ;;  %v9064_v54 = vld [vmem:[#allocation173_spill] sm:$0xff] }
 0x47e   :  { %v8043_v25 = vpop.xlane.xlu1 %2283  ;;  %vm1939_vm13 = vcmp.eq.s32.totalorder %v6796_v43, %v1809_v37  ;;  %v4169_v46 = vpop.eup %4168  ;;  %v3709_v37 = vsel %vm2523_vm14, 1.0, %v4529_v16 }
 0x47f   :  { %v2067_v57 = vsel %vm1939_vm13, %v9054_v51, 0.0  ;;  %v4171_v53 = vpop.eup %4170  ;;  %v2976_v31 = vmul.f32 0.6931472, %v4169_v46  ;;  %v3712_v51 = vsel %vm2526_vm2, 1.0, %v4529_v16 }
 0x480   :  { %v2447_v20 = vsel %vm274_vm0, %v2067_v57, 0.0  ;;  %v2978_v8 = vmul.f32 0.6931472, %v4171_v53 }
 0x481   :  { %2412 = vadd.xlane.f32.xlu1 %v2411_v29  ;;  %v1812_v1 = vpop.permute.xlu0 %1811  ;;  %v3162_v49 = vsub.f32 %v2976_v31, %v8025_v13  ;;  %v4452_v31 = vld [vmem:[%s8510_s1 + $0x260] sm:$0xff] }
 0x482   :  { %vm1940_vm8 = vcmp.eq.s32.totalorder %v6796_v43, %v1812_v1  ;;  %v8050_v6 = vpop.xlane.xlu1 %2286  ;;  %v9057_v43 = vld [vmem:[#allocation164_spill] sm:$0xff]  ;;  %v3163_v36 = vsub.f32 %v2978_v8, %v8035_v56  ;;  %vm2529_vm5 = vcmp.ge.s32.totalorder %v4452_v31, 0 }
 0x483   :  { %v2068_v9 = vsel %vm1940_vm8, %v9049_v39, 0.0  ;;  %4172 = vlog2.f32 %v9057_v43  ;;  %v4448_v56 = vld [vmem:[%s8510_s1 + $0x240] sm:$0xff] }
 0x484   :  { %v2450_v45 = vsel %vm274_vm0, %v2068_v9, 0.0  ;;  %4174 = vlog2.f32 %v9058_v26  ;;  %vm2522_vm0 = vcmp.ge.s32.totalorder %v4445_v33, 0  ;;  %vm2525_vm1 = vcmp.ge.s32.totalorder %v4448_v56, 0  ;;  %v9069_v26 = vld [vmem:[#allocation176_spill] sm:$0xff]  ;;  %v9072_v56 = vld [vmem:[#allocation181_spill] sm:$0xff] }
 0x485   :  { %2418 = vadd.xlane.f32.xlu1 %v2417_v42  ;;  %2451 = vadd.xlane.f32.xlu0 %v2450_v45  ;;  %4176 = vlog2.f32 %v9059_v14  ;;  %v3708_v27 = vsel %vm2522_vm0, 1.0, %v4529_v16  ;;  %v3710_v9 = vsel %vm2524_vm15, 1.0, %v4529_v16  ;;  %v3291_v41 = vmul.f32 %v3709_v37, %v3163_v36 }
 0x486   :  { %v8058_v30 = vpop.xlane.xlu1 %2289  ;;  %4178 = vlog2.f32 %v9060_v38  ;;  %v3290_v7 = vmul.f32 %v3708_v27, %v3162_v49  ;;  %v3711_v48 = vsel %vm2525_vm1, 1.0, %v4529_v16  ;;  %v3715_v36 = vsel %vm2529_vm5, 1.0, %v4529_v16 }
 0x487   :  { %4180 = vlog2.f32 %v9061_v59  ;;  %v3490_v62 = vsel %vm3350_vm9, %v3291_v41, 0.0 }
 0x488   :  { %4182 = vlog2.f32 %v9062_v0 }
 0x489   :  { %2424 = vadd.xlane.f32.xlu1 %v2423_v2  ;;  %4184 = vlog2.f32 %v9063_v24  ;;  %v9070_v24 = vld [vmem:[#allocation179_spill] sm:$0xff] }
 0x48a   :  { %v8064_v35 = vpop.xlane.xlu1 %2292  ;;  %4186 = vlog2.f32 %v9064_v54 }
 0x48b   :  { %4188 = vlog2.f32 %v9065_v12 }
 0x48c   :  { %4190 = vlog2.f32 %v9066_v15 }
 0x48d   :  { %2430 = vadd.xlane.f32.xlu1 %v2429_v4  ;;  %v4173_v23 = vpop.eup %4172 }
 0x48e   :  { %v8069_v18 = vpop.xlane.xlu1 %2295  ;;  %v4175_v21 = vpop.eup %4174  ;;  %v2980_v13 = vmul.f32 0.6931472, %v4173_v23 }
 0x48f   :  { %v4177_v10 = vpop.eup %4176  ;;  %v2982_v39 = vmul.f32 0.6931472, %v4175_v21 }
 0x490   :  { %v4179_v44 = vpop.eup %4178  ;;  %v3164_v1 = vsub.f32 %v2980_v13, %v8043_v25  ;;  %v2984_v42 = vmul.f32 0.6931472, %v4177_v10  ;;  %v9067_v25 = vld [vmem:[#allocation174_spill] sm:$0xff] }
 0x491   :  { %2436 = vadd.xlane.f32.xlu1 %v2435_v17  ;;  %v4181_v45 = vpop.eup %4180  ;;  %v3165_v2 = vsub.f32 %v2982_v39, %v8050_v6  ;;  %4192 = vlog2.f32 %v9067_v25  ;;  %v2986_v4 = vmul.f32 0.6931472, %v4179_v44  ;;  %v3488_v17 = vsel %vm3350_vm9, %v3290_v7, 0.0  ;;  %v4450_v6 = vld [vmem:[%s8510_s1 + $0x250] sm:$0xff] }
 0x492   :  { %v8074_v28 = vpop.xlane.xlu1 %2298  ;;  %v4183_v61 = vpop.eup %4182  ;;  %v3292_v63 = vmul.f32 %v3710_v9, %v3164_v1  ;;  %v3166_v3 = vsub.f32 %v2984_v42, %v8058_v30  ;;  %vm2527_vm3 = vcmp.ge.s32.totalorder %v4450_v6, 0  ;;  %v2988_v57 = vmul.f32 0.6931472, %v4181_v45  ;;  %v4451_v30 = vld [vmem:[%s8510_s1 + $0x258] sm:$0xff]  ;;  %v9071_v10 = vld [vmem:[#allocation178_spill] sm:$0xff] }
 0x493   :  { %v3293_v11 = vmul.f32 %v3711_v48, %v3165_v2  ;;  %v3167_v43 = vsub.f32 %v2986_v4, %v8064_v35  ;;  %vm2528_vm4 = vcmp.ge.s32.totalorder %v4451_v30, 0  ;;  %v3489_v14 = vadd.f32 %v3488_v17, %v8028_v22 }
 0x494   :  { %v3713_v38 = vsel %vm2527_vm3, 1.0, %v4529_v16  ;;  %v2990_v46 = vmul.f32 0.6931472, %v4183_v61  ;;  %v3492_v0 = vsel %vm3350_vm9, %v3292_v63, 0.0  ;;  %v3294_v33 = vmul.f32 %v3712_v51, %v3166_v3 }
 0x495   :  { %2442 = vadd.xlane.f32.xlu1 %v2441_v32  ;;  %v9068_v32 = vld [vmem:[#allocation177_spill] sm:$0xff]  ;;  %v3168_v35 = vsub.f32 %v2988_v57, %v8069_v18  ;;  %v3491_v22 = vadd.f32 %v3490_v62, %v3489_v14  ;;  %v3714_v49 = vsel %vm2528_vm4, 1.0, %v4529_v16  ;;  %v3494_v8 = vsel %vm3350_vm9, %v3293_v11, 0.0 }
 0x496   :  { %v8078_v55 = vpop.xlane.xlu1 %2301  ;;  %4194 = vlog2.f32 %v9068_v32  ;;  %v3295_v21 = vmul.f32 %v3713_v38, %v3167_v43  ;;  %v3169_v27 = vsub.f32 %v2990_v46, %v8074_v28  ;;  %v4453_v18 = vld [vmem:[%s8510_s1 + $0x268] sm:$0xff]  ;;  %v3496_v37 = vsel %vm3350_vm9, %v3294_v33, 0.0  ;;  %v4454_v28 = vld [vmem:[%s8510_s1 + $0x270] sm:$0xff] }
 0x497   :  { %4196 = vlog2.f32 %v9069_v26  ;;  %vm2530_vm6 = vcmp.ge.s32.totalorder %v4453_v18, 0  ;;  %v3493_v54 = vadd.f32 %v3492_v0, %v3491_v22  ;;  %v3296_v44 = vmul.f32 %v3714_v49, %v3168_v35  ;;  %v9074_v32 = vld [vmem:[#allocation183_spill] sm:$0xff]  ;;  %v9075_v26 = vld [vmem:[#allocation182_spill] sm:$0xff]  ;;  %v9077_v18 = vld [vmem:[#allocation184_spill] sm:$0xff] }
 0x498   :  { %4198 = vlog2.f32 %v9070_v24  ;;  %vm2531_vm7 = vcmp.ge.s32.totalorder %v4454_v28, 0  ;;  %v3716_v9 = vsel %vm2530_vm6, 1.0, %v4529_v16  ;;  %v3498_v45 = vsel %vm3350_vm9, %v3295_v21, 0.0  ;;  %v9078_v28 = vld [vmem:[#allocation187_spill] sm:$0xff] }
 0x499   :  { %2448 = vadd.xlane.f32.xlu1 %v2447_v20  ;;  %v4185_v20 = vpop.eup %4184  ;;  %4200 = vlog2.f32 %v9071_v10  ;;  %v3495_v39 = vadd.f32 %v3494_v8, %v3493_v54  ;;  %v3297_v15 = vmul.f32 %v3715_v36, %v3169_v27  ;;  %v3717_v48 = vsel %vm2531_vm7, 1.0, %v4529_v16 }
 0x49a   :  { %v8081_v5 = vpop.xlane.xlu1 %2304  ;;  %v4187_v53 = vpop.eup %4186  ;;  %v2992_v50 = vmul.f32 0.6931472, %v4185_v20  ;;  %4202 = vlog2.f32 %v9072_v56  ;;  %v3500_v17 = vsel %vm3350_vm9, %v3296_v44, 0.0 }
 0x49b   :  { %v4189_v23 = vpop.eup %4188  ;;  %v2994_v40 = vmul.f32 0.6931472, %v4187_v53  ;;  %4204 = vlog2.f32 %v9073_v34  ;;  %v3497_v25 = vadd.f32 %v3496_v37, %v3495_v39  ;;  %v3502_v62 = vsel %vm3350_vm9, %v3297_v15, 0.0 }
 0x49c   :  { %v4191_v12 = vpop.eup %4190  ;;  %v3170_v7 = vsub.f32 %v2992_v50, %v8078_v55  ;;  %v2996_v42 = vmul.f32 0.6931472, %v4189_v23  ;;  %v4455_v55 = vld [vmem:[%s8510_s1 + $0x278] sm:$0xff]  ;;  %4206 = vlog2.f32 %v9074_v32  ;;  %v9076_v23 = vld [vmem:[#allocation185_spill] sm:$0xff] }
 0x49d   :  { %v4193_v1 = vpop.eup %4192  ;;  %v3171_v41 = vsub.f32 %v2994_v40, %v8081_v5  ;;  %vm2532_vm8 = vcmp.ge.s32.totalorder %v4455_v55, 0  ;;  %v2998_v4 = vmul.f32 0.6931472, %v4191_v12  ;;  %v4456_v5 = vld [vmem:[%s8510_s1 + $0x280] sm:$0xff]  ;;  %v3499_v51 = vadd.f32 %v3498_v45, %v3497_v25 }
 0x49e   :  { %v8085_v52 = vpop.xlane.xlu1 %2307  ;;  %v3298_v63 = vmul.f32 %v3716_v9, %v3170_v7  ;;  %vm2533_vm10 = vcmp.ge.s32.totalorder %v4456_v5, 0  ;;  %v3718_v57 = vsel %vm2532_vm8, 1.0, %v4529_v16  ;;  %v3000_v20 = vmul.f32 0.6931472, %v4193_v1 }
 0x49f   :  { %v3172_v3 = vsub.f32 %v2996_v42, %v8085_v52  ;;  %v3299_v11 = vmul.f32 %v3717_v48, %v3171_v41  ;;  %v4457_v52 = vld [vmem:[%s8510_s1 + $0x288] sm:$0xff]  ;;  %4208 = vlog2.f32 %v9075_v26  ;;  %v3501_v14 = vadd.f32 %v3500_v17, %v3499_v51 }
 0x4a0   :  { %v4195_v2 = vpop.eup %4194  ;;  %vm2534_vm11 = vcmp.ge.s32.totalorder %v4457_v52, 0  ;;  %v3719_v38 = vsel %vm2533_vm10, 1.0, %v4529_v16  ;;  %v3504_v0 = vsel %vm3350_vm9, %v3298_v63, 0.0  ;;  %4210 = vlog2.f32 %v9076_v23  ;;  %v9079_v41 = vld [vmem:[#allocation186_spill] sm:$0xff] }
 0x4a1   :  { %v4197_v6 = vpop.eup %4196  ;;  %v3002_v46 = vmul.f32 0.6931472, %v4195_v2  ;;  %v3300_v33 = vmul.f32 %v3718_v57, %v3172_v3  ;;  %v3503_v24 = vadd.f32 %v3502_v62, %v3501_v14  ;;  %v3720_v22 = vsel %vm2534_vm11, 1.0, %v4529_v16 }
 0x4a2   :  { %v8089_v58 = vpop.xlane.xlu1 %2310  ;;  %v4199_v30 = vpop.eup %4198  ;;  %v3004_v49 = vmul.f32 0.6931472, %v4197_v6  ;;  %v3506_v50 = vsel %vm3350_vm9, %v3299_v11, 0.0  ;;  %4212 = vlog2.f32 %v9077_v18 }
 0x4a3   :  { %v3173_v43 = vsub.f32 %v2998_v4, %v8089_v58  ;;  %v4458_v58 = vld [vmem:[%s8510_s1 + $0x290] sm:$0xff]  ;;  %v4201_v31 = vpop.eup %4200  ;;  %v3505_v10 = vadd.f32 %v3504_v0, %v3503_v24  ;;  %v3006_v36 = vmul.f32 0.6931472, %v4199_v30  ;;  %v3508_v12 = vsel %vm3350_vm9, %v3300_v33, 0.0 }
 0x4a4   :  { %vm2535_vm12 = vcmp.ge.s32.totalorder %v4458_v58, 0  ;;  %v4203_v27 = vpop.eup %4202  ;;  %4214 = vlog2.f32 %v9078_v28  ;;  %v3008_v39 = vmul.f32 0.6931472, %v4201_v31  ;;  %v9083_v28 = vld [vmem:[#allocation191_spill] sm:$0xff] }
 0x4a5   :  { %v3301_v8 = vmul.f32 %v3719_v38, %v3173_v43  ;;  %v3721_v54 = vsel %vm2535_vm12, 1.0, %v4529_v16  ;;  %v4205_v7 = vpop.eup %4204  ;;  %v3507_v1 = vadd.f32 %v3506_v50, %v3505_v10  ;;  %4216 = vlog2.f32 %v9079_v41 }
 0x4a6   :  { %v8093_v60 = vpop.xlane.xlu1 %2313  ;;  %v4207_v15 = vpop.eup %4206  ;;  %v3010_v34 = vmul.f32 0.6931472, %v4203_v27  ;;  %v3012_v6 = vmul.f32 0.6931472, %v4205_v7 }
 0x4a7   :  { %v3174_v35 = vsub.f32 %v3000_v20, %v8093_v60  ;;  %v4459_v60 = vld [vmem:[%s8510_s1 + $0x298] sm:$0xff]  ;;  %v3510_v9 = vsel %vm3350_vm9, %v3301_v8, 0.0  ;;  %v3509_v55 = vadd.f32 %v3508_v12, %v3507_v1  ;;  %v3014_v43 = vmul.f32 0.6931472, %v4207_v15  ;;  %v4468_v15 = vld [vmem:[%s8510_s1 + $0x2e0] sm:$0xff] }
 0x4a8   :  { %vm2536_vm13 = vcmp.ge.s32.totalorder %v4459_v60, 0  ;;  %v4463_v20 = vld [vmem:[%s8510_s1 + $0x2b8] sm:$0xff]  ;;  %vm2545_vm6 = vcmp.ge.s32.totalorder %v4468_v15, 0 }
 0x4a9   :  { %v3302_v37 = vmul.f32 %v3720_v22, %v3174_v35  ;;  %v3722_v56 = vsel %vm2536_vm13, 1.0, %v4529_v16  ;;  %v4209_v63 = vpop.eup %4208  ;;  %v3511_v3 = vadd.f32 %v3510_v9, %v3509_v55  ;;  %vm2540_vm1 = vcmp.ge.s32.totalorder %v4463_v20, 0  ;;  %v9081_v22 = vld [vmem:[#allocation189_spill] sm:$0xff]  ;;  %v9091_v15 = vld [vmem:[#allocation199_spill] sm:$0xff] }
 0x4aa   :  { %v8100_v19 = vpop.xlane.xlu1 %2316  ;;  %v3726_v33 = vsel %vm2540_vm1, 1.0, %v4529_v16  ;;  %v3016_v35 = vmul.f32 0.6931472, %v4209_v63 }
 0x4ab   :  { %v3175_v21 = vsub.f32 %v3002_v46, %v8100_v19  ;;  %v4460_v19 = vld [vmem:[%s8510_s1 + $0x2a0] sm:$0xff]  ;;  %v3512_v48 = vsel %vm3350_vm9, %v3302_v37, 0.0 }
 0x4ac   :  { %vm2537_vm0 = vcmp.ge.s32.totalorder %v4460_v19, 0  ;;  %v3513_v62 = vadd.f32 %v3512_v48, %v3511_v3  ;;  %v9080_v46 = vld [vmem:[#allocation188_spill] sm:$0xff]  ;;  %v3731_v3 = vsel %vm2545_vm6, 1.0, %v4529_v16 }
 0x4ad   :  { %v3303_v42 = vmul.f32 %v3721_v54, %v3175_v21  ;;  %v3723_v2 = vsel %vm2537_vm0, 1.0, %v4529_v16  ;;  %4218 = vlog2.f32 %v9080_v46  ;;  %v9082_v54 = vld [vmem:[#allocation190_spill] sm:$0xff] }
 0x4ae   :  { %v8115_v29 = vpop.xlane.xlu1 %2319  ;;  %4220 = vlog2.f32 %v9081_v22  ;;  %v9087_v22 = vld [vmem:[#allocation194_spill] sm:$0xff] }
 0x4af   :  { %v3176_v44 = vsub.f32 %v3004_v49, %v8115_v29  ;;  %v4461_v29 = vld [vmem:[%s8510_s1 + $0x2a8] sm:$0xff]  ;;  %v3514_v32 = vsel %vm3350_vm9, %v3303_v42, 0.0  ;;  %4222 = vlog2.f32 %v9082_v54 }
 0x4b0   :  { %vm2538_vm14 = vcmp.ge.s32.totalorder %v4461_v29, 0  ;;  %v3515_v0 = vadd.f32 %v3514_v32, %v3513_v62  ;;  %4224 = vlog2.f32 %v9083_v28  ;;  %v9090_v28 = vld [vmem:[#allocation198_spill] sm:$0xff] }
 0x4b1   :  { %v3304_v4 = vmul.f32 %v3722_v56, %v3176_v44  ;;  %v3724_v5 = vsel %vm2538_vm14, 1.0, %v4529_v16 }
 0x4b2   :  { %v8129_v47 = vpop.xlane.xlu1 %2322 }
 0x4b3   :  { %v3177_v45 = vsub.f32 %v3006_v36, %v8129_v47  ;;  %v4462_v47 = vld [vmem:[%s8510_s1 + $0x2b0] sm:$0xff]  ;;  %v3516_v30 = vsel %vm3350_vm9, %v3304_v4, 0.0  ;;  %v4469_v4 = vld [vmem:[%s8510_s1 + $0x2e8] sm:$0xff] }
 0x4b4   :  { %vm2539_vm15 = vcmp.ge.s32.totalorder %v4462_v47, 0  ;;  %v3517_v49 = vadd.f32 %v3516_v30, %v3515_v0  ;;  %vm2546_vm7 = vcmp.ge.s32.totalorder %v4469_v4, 0  ;;  %v9084_v47 = vld [vmem:[#allocation193_spill] sm:$0xff]  ;;  %v2353_v30 = vpop.xlane.xlu0 %2352 }
 0x4b5   :  { %v3305_v51 = vmul.f32 %v3723_v2, %v3177_v45  ;;  %v3725_v11 = vsel %vm2539_vm15, 1.0, %v4529_v16  ;;  %4226 = vlog2.f32 %v9084_v47  ;;  %v3732_v62 = vsel %vm2546_vm7, 1.0, %v4529_v16 }
 0x4b6   :  { %v8146_v59 = vpop.xlane.xlu1 %2325 }
 0x4b7   :  { %v3178_v17 = vsub.f32 %v3008_v39, %v8146_v59  ;;  %v4211_v59 = vpop.eup %4210  ;;  %v3518_v58 = vsel %vm3350_vm9, %v3305_v51, 0.0 }
 0x4b8   :  { %v4213_v38 = vpop.eup %4212  ;;  %v3018_v8 = vmul.f32 0.6931472, %v4211_v59  ;;  %v3519_v36 = vadd.f32 %v3518_v58, %v3517_v49 }
 0x4b9   :  { %v3306_v26 = vmul.f32 %v3724_v5, %v3178_v17  ;;  %v4215_v24 = vpop.eup %4214  ;;  %v3020_v37 = vmul.f32 0.6931472, %v4213_v38 }
 0x4ba   :  { %v8162_v13 = vpop.xlane.xlu1 %2328  ;;  %v4217_v10 = vpop.eup %4216  ;;  %v3022_v39 = vmul.f32 0.6931472, %v4215_v24 }
 0x4bb   :  { %v3179_v57 = vsub.f32 %v3010_v34, %v8162_v13  ;;  %v4464_v13 = vld [vmem:[%s8510_s1 + $0x2c0] sm:$0xff]  ;;  %v3520_v60 = vsel %vm3350_vm9, %v3306_v26, 0.0  ;;  %v3024_v2 = vmul.f32 0.6931472, %v4217_v10  ;;  %v4219_v17 = vpop.eup %4218 }
 0x4bc   :  { %vm2541_vm2 = vcmp.ge.s32.totalorder %v4464_v13, 0  ;;  %v3521_v1 = vadd.f32 %v3520_v60, %v3519_v36  ;;  %v4221_v20 = vpop.eup %4220  ;;  %v4470_v13 = vld [vmem:[%s8510_s1 + $0x2f0] sm:$0xff]  ;;  %v3028_v24 = vmul.f32 0.6931472, %v4219_v17  ;;  %v9088_v10 = vld [vmem:[#allocation196_spill] sm:$0xff] }
 0x4bd   :  { %v3307_v31 = vmul.f32 %v3725_v11, %v3179_v57  ;;  %v3727_v50 = vsel %vm2541_vm2, 1.0, %v4529_v16  ;;  %vm2547_vm8 = vcmp.ge.s32.totalorder %v4470_v13, 0  ;;  %v3026_v38 = vmul.f32 0.6931472, %v4221_v20  ;;  %v9092_v17 = vld [vmem:[#allocation200_spill] sm:$0xff] }
 0x4be   :  { %v8178_v61 = vpop.xlane.xlu1 %2331  ;;  %v3733_v49 = vsel %vm2547_vm8, 1.0, %v4529_v16 }
 0x4bf   :  { %v3180_v14 = vsub.f32 %v3012_v6, %v8178_v61  ;;  %v4465_v61 = vld [vmem:[%s8510_s1 + $0x2c8] sm:$0xff]  ;;  %v3522_v44 = vsel %vm3350_vm9, %v3307_v31, 0.0  ;;  %v9085_v6 = vld [vmem:[#allocation192_spill] sm:$0xff]  ;;  %v3187_v31 = vsub.f32 %v3026_v38, %v2353_v30 }
 0x4c0   :  { %vm2542_vm3 = vcmp.ge.s32.totalorder %v4465_v61, 0  ;;  %v3523_v41 = vadd.f32 %v3522_v44, %v3521_v1  ;;  %4228 = vlog2.f32 %v9085_v6  ;;  %v4471_v61 = vld [vmem:[%s8510_s1 + $0x2f8] sm:$0xff]  ;;  %v9089_v44 = vld [vmem:[#allocation197_spill] sm:$0xff]  ;;  %v9094_v30 = vld [vmem:[#allocation202_spill] sm:$0xff] }
 0x4c1   :  { %v3308_v27 = vmul.f32 %v3726_v33, %v3180_v14  ;;  %v3728_v12 = vsel %vm2542_vm3, 1.0, %v4529_v16  ;;  %vm2548_vm10 = vcmp.ge.s32.totalorder %v4471_v61, 0 }
 0x4c2   :  { %v8194_v53 = vpop.xlane.xlu1 %2334  ;;  %v3734_v36 = vsel %vm2548_vm10, 1.0, %v4529_v16 }
 0x4c3   :  { %v3181_v23 = vsub.f32 %v3014_v43, %v8194_v53  ;;  %v4466_v53 = vld [vmem:[%s8510_s1 + $0x2d0] sm:$0xff]  ;;  %v3524_v42 = vsel %vm3350_vm9, %v3308_v27, 0.0  ;;  %v4472_v27 = vld [vmem:[%s8510_s1 + $0x300] sm:$0xff] }
 0x4c4   :  { %vm2543_vm4 = vcmp.ge.s32.totalorder %v4466_v53, 0  ;;  %v3525_v63 = vadd.f32 %v3524_v42, %v3523_v41  ;;  %vm2549_vm11 = vcmp.ge.s32.totalorder %v4472_v27, 0 }
 0x4c5   :  { %v3309_v19 = vmul.f32 %v3727_v50, %v3181_v23  ;;  %v3729_v56 = vsel %vm2543_vm4, 1.0, %v4529_v16 }
 0x4c6   :  { %v8210_v40 = vpop.xlane.xlu1 %2337 }
 0x4c7   :  { %v3182_v18 = vsub.f32 %v3016_v35, %v8210_v40  ;;  %v4467_v40 = vld [vmem:[%s8510_s1 + $0x2d8] sm:$0xff]  ;;  %v3526_v34 = vsel %vm3350_vm9, %v3309_v19, 0.0  ;;  %v3315_v19 = vmul.f32 %v3733_v49, %v3187_v31 }
 0x4c8   :  { %vm2544_vm5 = vcmp.ge.s32.totalorder %v4467_v40, 0  ;;  %v3527_v59 = vadd.f32 %v3526_v34, %v3525_v63  ;;  %v9086_v35 = vld [vmem:[#allocation195_spill] sm:$0xff]  ;;  %v4473_v40 = vld [vmem:[%s8510_s1 + $0x308] sm:$0xff] }
 0x4c9   :  { %v3310_v45 = vmul.f32 %v3728_v12, %v3182_v18  ;;  %v3730_v55 = vsel %vm2544_vm5, 1.0, %v4529_v16  ;;  %4230 = vlog2.f32 %v9086_v35  ;;  %vm2550_vm12 = vcmp.ge.s32.totalorder %v4473_v40, 0  ;;  %v4477_v35 = vld [vmem:[%s8510_s1 + $0x328] sm:$0xff] }
 0x4ca   :  { %v8226_v25 = vpop.xlane.xlu1 %2340  ;;  %4232 = vlog2.f32 %v9087_v22  ;;  %v3736_v41 = vsel %vm2550_vm12, 1.0, %v4529_v16  ;;  %vm2554_vm15 = vcmp.ge.s32.totalorder %v4477_v35, 0 }
 0x4cb   :  { %v3183_v7 = vsub.f32 %v3018_v8, %v8226_v25  ;;  %v3528_v32 = vsel %vm3350_vm9, %v3310_v45, 0.0  ;;  %4234 = vlog2.f32 %v9088_v10  ;;  %v4474_v45 = vld [vmem:[%s8510_s1 + $0x310] sm:$0xff] }
 0x4cc   :  { %v3529_v26 = vadd.f32 %v3528_v32, %v3527_v59  ;;  %4236 = vlog2.f32 %v9089_v44  ;;  %vm2551_vm13 = vcmp.ge.s32.totalorder %v4474_v45, 0  ;;  %v9093_v59 = vld [vmem:[#allocation201_spill] sm:$0xff] }
 0x4cd   :  { %v3311_v25 = vmul.f32 %v3729_v56, %v3183_v7  ;;  %4238 = vlog2.f32 %v9090_v28  ;;  %v3735_v56 = vsel %vm2549_vm11, 1.0, %v4529_v16  ;;  %v3737_v63 = vsel %vm2551_vm13, 1.0, %v4529_v16 }
 0x4ce   :  { %v8240_v52 = vpop.xlane.xlu1 %2343  ;;  %4240 = vlog2.f32 %v9091_v15 }
 0x4cf   :  { %v3184_v29 = vsub.f32 %v3020_v37, %v8240_v52  ;;  %v3530_v11 = vsel %vm3350_vm9, %v3311_v25, 0.0  ;;  %v4223_v52 = vpop.eup %4222  ;;  %4242 = vlog2.f32 %v9092_v17 }
 0x4d0   :  { %v4225_v33 = vpop.eup %4224  ;;  %v3531_v58 = vadd.f32 %v3530_v11, %v3529_v26  ;;  %v3032_v12 = vmul.f32 0.6931472, %v4223_v52  ;;  %4244 = vlog2.f32 %v9093_v59 }
 0x4d1   :  { %v3312_v51 = vmul.f32 %v3730_v55, %v3184_v29  ;;  %v3030_v18 = vmul.f32 0.6931472, %v4225_v33  ;;  %v4227_v53 = vpop.eup %4226  ;;  %4246 = vlog2.f32 %v9094_v30  ;;  %v4483_v30 = vld [vmem:[%s8510_s1 + $0x350] sm:$0xff] }
 0x4d2   :  { %v2347_v21 = vpop.xlane.xlu1 %2346  ;;  %v4229_v37 = vpop.eup %4228  ;;  %v3034_v29 = vmul.f32 0.6931472, %v4227_v53  ;;  %v4478_v53 = vld [vmem:[%s8510_s1 + $0x338] sm:$0xff]  ;;  %vm2559_vm6 = vcmp.ge.s32.totalorder %v4483_v30, 0 }
 0x4d3   :  { %v3185_v48 = vsub.f32 %v3022_v39, %v2347_v21  ;;  %v3532_v46 = vsel %vm3350_vm9, %v3312_v51, 0.0  ;;  %v3036_v55 = vmul.f32 0.6931472, %v4229_v37  ;;  %v4231_v4 = vpop.eup %4230  ;;  %v4476_v51 = vld [vmem:[%s8510_s1 + $0x320] sm:$0xff]  ;;  %vm2556_vm1 = vcmp.ge.s32.totalorder %v4478_v53, 0  ;;  %v9103_v53 = vld [vmem:[#allocation211_spill] sm:$0xff] }
 0x4d4   :  { %v3533_v50 = vadd.f32 %v3532_v46, %v3531_v58  ;;  %vm2553_vm14 = vcmp.ge.s32.totalorder %v4476_v51, 0 }
 0x4d5   :  { %v3313_v43 = vmul.f32 %v3731_v3, %v3185_v48  ;;  %v4475_v48 = vld [vmem:[%s8510_s1 + $0x318] sm:$0xff]  ;;  %v3739_v13 = vsel %vm2553_vm14, 1.0, %v4529_v16 }
 0x4d6   :  { %v2350_v9 = vpop.xlane.xlu1 %2349  ;;  %vm2552_vm0 = vcmp.ge.s32.totalorder %v4475_v48, 0 }
 0x4d7   :  { %v3186_v57 = vsub.f32 %v3024_v2, %v2350_v9  ;;  %v3534_v23 = vsel %vm3350_vm9, %v3313_v43, 0.0  ;;  %v3538_v2 = vsel %vm3350_vm9, %v3315_v19, 0.0  ;;  %v3738_v20 = vsel %vm2552_vm0, 1.0, %v4529_v16 }
 0x4d8   :  { %v3535_v54 = vadd.f32 %v3534_v23, %v3533_v50  ;;  %v3038_v43 = vmul.f32 0.6931472, %v4231_v4  ;;  %v9095_v23 = vld [vmem:[#allocation203_spill] sm:$0xff]  ;;  %v9096_v50 = vld [vmem:[#allocation204_spill] sm:$0xff] }
 0x4d9   :  { %v3314_v0 = vmul.f32 %v3732_v62, %v3186_v57  ;;  %v4233_v57 = vpop.eup %4232  ;;  %4248 = vlog2.f32 %v9095_v23 }
 0x4da   :  { %v2356_v5 = vpop.xlane.xlu1 %2355  ;;  %v4235_v52 = vpop.eup %4234  ;;  %v3040_v22 = vmul.f32 0.6931472, %v4233_v57  ;;  %4250 = vlog2.f32 %v9096_v50 }
 0x4db   :  { %v3536_v21 = vsel %vm3350_vm9, %v3314_v0, 0.0  ;;  %v3188_v60 = vsub.f32 %v3028_v24, %v2356_v5  ;;  %v4237_v38 = vpop.eup %4236 }
 0x4dc   :  { %v3537_v1 = vadd.f32 %v3536_v21, %v3535_v54  ;;  %v4239_v58 = vpop.eup %4238  ;;  %v2380_v21 = vpop.xlane.xlu0 %2379  ;;  %v3042_v19 = vmul.f32 0.6931472, %v4237_v38 }
 0x4dd   :  { %v3316_v9 = vmul.f32 %v3734_v36, %v3188_v60  ;;  %v4241_v49 = vpop.eup %4240  ;;  %v4479_v36 = vld [vmem:[%s8510_s1 + $0x330] sm:$0xff]  ;;  %v3048_v37 = vmul.f32 0.6931472, %v4239_v58 }
 0x4de   :  { %v2359_v14 = vpop.xlane.xlu1 %2358  ;;  %v3539_v47 = vadd.f32 %v3538_v2, %v3537_v1  ;;  %vm2555_vm2 = vcmp.ge.s32.totalorder %v4479_v36, 0  ;;  %v3046_v17 = vmul.f32 0.6931472, %v4241_v49  ;;  %v3745_v49 = vsel %vm2559_vm6, 1.0, %v4529_v16 }
 0x4df   :  { %v3189_v7 = vsub.f32 %v3030_v18, %v2359_v14  ;;  %v3540_v5 = vsel %vm3350_vm9, %v3316_v9, 0.0  ;;  %v3740_v18 = vsel %vm2554_vm15, 1.0, %v4529_v16 }
 0x4e0   :  { %v3541_v26 = vadd.f32 %v3540_v5, %v3539_v47  ;;  %v2386_v9 = vpop.xlane.xlu0 %2385  ;;  %v9099_v47 = vld [vmem:[#allocation207_spill] sm:$0xff] }
 0x4e1   :  { %v3317_v34 = vmul.f32 %v3735_v56, %v3189_v7  ;;  %v9097_v7 = vld [vmem:[#allocation205_spill] sm:$0xff]  ;;  %v9098_v56 = vld [vmem:[#allocation206_spill] sm:$0xff] }
 0x4e2   :  { %v2362_v8 = vpop.xlane.xlu1 %2361  ;;  %4252 = vlog2.f32 %v9097_v7  ;;  %v9104_v7 = vld [vmem:[#allocation212_spill] sm:$0xff] }
 0x4e3   :  { %v3190_v42 = vsub.f32 %v3032_v12, %v2362_v8  ;;  %v3542_v62 = vsel %vm3350_vm9, %v3317_v34, 0.0  ;;  %v3044_v8 = vmul.f32 0.6931472, %v4235_v52  ;;  %v4243_v12 = vpop.eup %4242  ;;  %4254 = vlog2.f32 %v9098_v56  ;;  %v4481_v34 = vld [vmem:[%s8510_s1 + $0x340] sm:$0xff] }
 0x4e4   :  { %v3543_v31 = vadd.f32 %v3542_v62, %v3541_v26  ;;  %v4245_v15 = vpop.eup %4244  ;;  %vm2557_vm4 = vcmp.ge.s32.totalorder %v4481_v34, 0  ;;  %v3052_v48 = vmul.f32 0.6931472, %v4243_v12  ;;  %4256 = vlog2.f32 %v9099_v47  ;;  %v2392_v51 = vpop.xlane.xlu0 %2391 }
 0x4e5   :  { %v3318_v6 = vmul.f32 %v3736_v41, %v3190_v42  ;;  %v3196_v40 = vsub.f32 %v3044_v8, %v2380_v21  ;;  %v4480_v41 = vld [vmem:[%s8510_s1 + $0x348] sm:$0xff]  ;;  %v3743_v59 = vsel %vm2557_vm4, 1.0, %v4529_v16 }
 0x4e6   :  { %v2365_v39 = vpop.xlane.xlu1 %2364  ;;  %vm2558_vm3 = vcmp.ge.s32.totalorder %v4480_v41, 0  ;;  %v3200_v35 = vsub.f32 %v3052_v48, %v2392_v51  ;;  %v4484_v8 = vld [vmem:[%s8510_s1 + $0x368] sm:$0xff] }
 0x4e7   :  { %v3191_v25 = vsub.f32 %v3034_v29, %v2365_v39  ;;  %v3544_v46 = vsel %vm3350_vm9, %v3318_v6, 0.0  ;;  %v3742_v39 = vsel %vm2556_vm1, 1.0, %v4529_v16  ;;  %v3741_v29 = vsel %vm2555_vm2, 1.0, %v4529_v16  ;;  %v9100_v6 = vld [vmem:[#allocation208_spill] sm:$0xff] }
 0x4e8   :  { %v3545_v60 = vadd.f32 %v3544_v46, %v3543_v31  ;;  %4258 = vlog2.f32 %v9100_v6  ;;  %v3050_v46 = vmul.f32 0.6931472, %v4245_v15  ;;  %v9102_v31 = vld [vmem:[#allocation210_spill] sm:$0xff]  ;;  %vm2562_vm7 = vcmp.ge.s32.totalorder %v4484_v8, 0 }
 0x4e9   :  { %v3319_v11 = vmul.f32 %v3737_v63, %v3191_v25  ;;  %v4247_v25 = vpop.eup %4246  ;;  %v3324_v63 = vmul.f32 %v3742_v39, %v3196_v40  ;;  %v3748_v40 = vsel %vm2562_vm7, 1.0, %v4529_v16  ;;  %v4487_v15 = vld [vmem:[%s8510_s1 + $0x370] sm:$0xff] }
 0x4ea   :  { %v2368_v3 = vpop.xlane.xlu1 %2367  ;;  %v4249_v62 = vpop.eup %4248  ;;  %vm2563_vm11 = vcmp.ge.s32.totalorder %v4487_v15, 0 }
 0x4eb   :  { %v3192_v32 = vsub.f32 %v3036_v55, %v2368_v3  ;;  %v3546_v61 = vsel %vm3350_vm9, %v3319_v11, 0.0  ;;  %v3198_v3 = vsub.f32 %v3048_v37, %v2386_v9  ;;  %v4482_v11 = vld [vmem:[%s8510_s1 + $0x358] sm:$0xff]  ;;  %v4251_v26 = vpop.eup %4250  ;;  %v3054_v36 = vmul.f32 0.6931472, %v4249_v62 }
 0x4ec   :  { %v3547_v44 = vadd.f32 %v3546_v61, %v3545_v60  ;;  %vm2560_vm5 = vcmp.ge.s32.totalorder %v4482_v11, 0  ;;  %v2398_v61 = vpop.xlane.xlu0 %2397  ;;  %v4253_v50 = vpop.eup %4252  ;;  %v4489_v11 = vld [vmem:[%s8510_s1 + $0x380] sm:$0xff] }
 0x4ed   :  { %v3320_v0 = vmul.f32 %v3738_v20, %v3192_v32  ;;  %v3744_v32 = vsel %vm2558_vm3, 1.0, %v4529_v16  ;;  %v3746_v23 = vsel %vm2560_vm5, 1.0, %v4529_v16  ;;  %vm2565_vm13 = vcmp.ge.s32.totalorder %v4489_v11, 0 }
 0x4ee   :  { %v2371_v14 = vpop.xlane.xlu1 %2370  ;;  %v3328_v37 = vmul.f32 %v3746_v23, %v3200_v35 }
 0x4ef   :  { %v3193_v33 = vsub.f32 %v3038_v43, %v2371_v14  ;;  %v3548_v10 = vsel %vm3350_vm9, %v3320_v0, 0.0  ;;  %v9101_v14 = vld [vmem:[#allocation209_spill] sm:$0xff]  ;;  %v3556_v0 = vsel %vm3350_vm9, %v3324_v63, 0.0 }
 0x4f0   :  { %v3549_v42 = vadd.f32 %v3548_v10, %v3547_v44  ;;  %4260 = vlog2.f32 %v9101_v14  ;;  %v3060_v10 = vmul.f32 0.6931472, %v4251_v26  ;;  %v3564_v48 = vsel %vm3350_vm9, %v3328_v37, 0.0  ;;  %v9109_v37 = vld [vmem:[#allocation217_spill] sm:$0xff] }
 0x4f1   :  { %v3321_v24 = vmul.f32 %v3739_v13, %v3193_v33  ;;  %v3056_v13 = vmul.f32 0.6931472, %v4247_v25  ;;  %v3326_v33 = vmul.f32 %v3744_v32, %v3198_v3  ;;  %4262 = vlog2.f32 %v9102_v31  ;;  %v9106_v3 = vld [vmem:[#allocation214_spill] sm:$0xff] }
 0x4f2   :  { %v2374_v27 = vpop.xlane.xlu1 %2373  ;;  %4264 = vlog2.f32 %v9103_v53  ;;  %v3058_v25 = vmul.f32 0.6931472, %v4253_v50  ;;  %v4491_v50 = vld [vmem:[%s8510_s1 + $0x390] sm:$0xff] }
 0x4f3   :  { %v3194_v54 = vsub.f32 %v3040_v22, %v2374_v27  ;;  %v3550_v28 = vsel %vm3350_vm9, %v3321_v24, 0.0  ;;  %v4485_v27 = vld [vmem:[%s8510_s1 + $0x360] sm:$0xff]  ;;  %v3560_v12 = vsel %vm3350_vm9, %v3326_v33, 0.0  ;;  %v3202_v44 = vsub.f32 %v3056_v13, %v2398_v61  ;;  %v9107_v33 = vld [vmem:[#allocation215_spill] sm:$0xff] }
 0x4f4   :  { %v3551_v4 = vadd.f32 %v3550_v28, %v3549_v42  ;;  %vm2561_vm8 = vcmp.ge.s32.totalorder %v4485_v27, 0  ;;  %4266 = vlog2.f32 %v9104_v7  ;;  %v2404_v28 = vpop.xlane.xlu0 %2403  ;;  %v4486_v42 = vld [vmem:[%s8510_s1 + $0x378] sm:$0xff]  ;;  %v3751_v61 = vsel %vm2565_vm13, 1.0, %v4529_v16 }
 0x4f5   :  { %v3322_v1 = vmul.f32 %v3740_v18, %v3194_v54  ;;  %v4255_v18 = vpop.eup %4254  ;;  %v3747_v39 = vsel %vm2561_vm8, 1.0, %v4529_v16  ;;  %vm2564_vm10 = vcmp.ge.s32.totalorder %v4486_v42, 0  ;;  %vm2567_vm14 = vcmp.ge.s32.totalorder %v4491_v50, 0 }
 0x4f6   :  { %v2377_v45 = vpop.xlane.xlu1 %2376  ;;  %v4257_v9 = vpop.eup %4256  ;;  %vm16_vm13 = vcmask 0  }
 0x4f7   :  { %v3552_v55 = vsel %vm3350_vm9, %v3322_v1, 0.0  ;;  %v3195_v2 = vsub.f32 %v3042_v19, %v2377_v45  ;;  %v4259_v41 = vpop.eup %4258  ;;  %v3062_v26 = vmul.f32 0.6931472, %v4257_v9  ;;  %v4493_v9 = vld [vmem:[%s8510_s1 + $0x3a0] sm:$0xff]  ;;  %17 = vst.msk [vmem:[#allocation2] sm:$0x1] %vm16_vm13, %v4529_v16 }
 0x4f8   :  { %v3553_v57 = vadd.f32 %v3552_v55, %v3551_v4  ;;  %v9105_v55 = vld [vmem:[#allocation213_spill] sm:$0xff]  ;;  %v3330_v4 = vmul.f32 %v3748_v40, %v3202_v44  ;;  %v2410_v6 = vpop.xlane.xlu0 %2409  ;;  %vm2569_vm1 = vcmp.ge.s32.totalorder %v4493_v9, 0 }
 0x4f9   :  { %v3323_v5 = vmul.f32 %v3741_v29, %v3195_v2  ;;  %4268 = vlog2.f32 %v9105_v55  ;;  %v3064_v2 = vmul.f32 0.6931472, %v4255_v18 }
 0x4fa   :  { %v2383_v20 = vpop.xlane.xlu1 %2382  ;;  %v4261_v63 = vpop.eup %4260  ;;  %4270 = vlog2.f32 %v9106_v3  ;;  %v3568_v14 = vsel %vm3350_vm9, %v3330_v4, 0.0  ;;  %v3755_v3 = vsel %vm2569_vm1, 1.0, %v4529_v16 }
 0x4fb   :  { %v3554_v43 = vsel %vm3350_vm9, %v3323_v5, 0.0  ;;  %v3197_v52 = vsub.f32 %v3046_v17, %v2383_v20  ;;  %v3204_v17 = vsub.f32 %v3060_v10, %v2404_v28  ;;  %v3750_v5 = vsel %vm2564_vm10, 1.0, %v4529_v16  ;;  %v4488_v20 = vld [vmem:[%s8510_s1 + $0x388] sm:$0xff] }
 0x4fc   :  { %v3555_v38 = vadd.f32 %v3554_v43, %v3553_v57  ;;  %v3749_v57 = vsel %vm2563_vm11, 1.0, %v4529_v16  ;;  %vm2566_vm12 = vcmp.ge.s32.totalorder %v4488_v20, 0  ;;  %v4263_v43 = vpop.eup %4262  ;;  %4272 = vlog2.f32 %v9107_v33  ;;  %v9112_v20 = vld [vmem:[#allocation220_spill] sm:$0xff] }
 0x4fd   :  { %v3325_v58 = vmul.f32 %v3743_v59, %v3197_v52  ;;  %v3068_v52 = vmul.f32 0.6931472, %v4259_v41  ;;  %v3332_v13 = vmul.f32 %v3750_v5, %v3204_v17  ;;  %v3752_v35 = vsel %vm2566_vm12, 1.0, %v4529_v16  ;;  %v4494_v5 = vld [vmem:[%s8510_s1 + $0x3b8] sm:$0xff] }
 0x4fe   :  { %v3557_v24 = vadd.f32 %v3556_v0, %v3555_v38  ;;  %v2389_v22 = vpop.xlane.xlu1 %2388  ;;  %v3206_v38 = vsub.f32 %v3064_v2, %v2410_v6  ;;  %v4265_v0 = vpop.eup %4264  ;;  %v3066_v18 = vmul.f32 0.6931472, %v4261_v63  ;;  %v3753_v28 = vsel %vm2567_vm14, 1.0, %v4529_v16 }
 0x4ff   :  { %v3558_v21 = vsel %vm3350_vm9, %v3325_v58, 0.0  ;;  %v3199_v60 = vsub.f32 %v3050_v46, %v2389_v22  ;;  %v2416_v58 = vpop.xlane.xlu0 %2415  ;;  %v4267_v8 = vpop.eup %4266  ;;  %v3572_v53 = vsel %vm3350_vm9, %v3332_v13, 0.0  ;;  %v3070_v41 = vmul.f32 0.6931472, %v4265_v0  ;;  %v9113_v13 = vld [vmem:[#allocation221_spill] sm:$0xff] }
 0x500   :  { %v3559_v54 = vadd.f32 %v3558_v21, %v3557_v24  ;;  %v4490_v24 = vld [vmem:[%s8510_s1 + $0x398] sm:$0xff]  ;;  %v3334_v10 = vmul.f32 %v3752_v35, %v3206_v38  ;;  %vm2572_vm2 = vcmp.ge.s32.totalorder %v4494_v5, 0 }
 0x501   :  { %v3327_v19 = vmul.f32 %v3745_v49, %v3199_v60  ;;  %vm2568_vm0 = vcmp.ge.s32.totalorder %v4490_v24, 0  ;;  %v9108_v21 = vld [vmem:[#allocation216_spill] sm:$0xff]  ;;  %v3072_v60 = vmul.f32 0.6931472, %v4263_v43  ;;  %v3758_v38 = vsel %vm2572_vm2, 1.0, %v4529_v16 }
 0x502   :  { %v3561_v1 = vadd.f32 %v3560_v12, %v3559_v54  ;;  %v2395_v56 = vpop.xlane.xlu1 %2394  ;;  %4274 = vlog2.f32 %v9108_v21  ;;  %v3208_v54 = vsub.f32 %v3068_v52, %v2416_v58  ;;  %v3754_v44 = vsel %vm2568_vm0, 1.0, %v4529_v16  ;;  %v4496_v58 = vld [vmem:[%s8510_s1 + $0x3c8] sm:$0xff] }
 0x503   :  { %v3562_v45 = vsel %vm3350_vm9, %v3327_v19, 0.0  ;;  %v3201_v29 = vsub.f32 %v3054_v36, %v2395_v56  ;;  %v4269_v12 = vpop.eup %4268  ;;  %4276 = vlog2.f32 %v9109_v37  ;;  %v2422_v19 = vpop.xlane.xlu0 %2421  ;;  %v3576_v55 = vsel %vm3350_vm9, %v3334_v10, 0.0  ;;  %v4498_v37 = vld [vmem:[%s8510_s1 + $0x3d8] sm:$0xff] }
 0x504   :  { %v3563_v34 = vadd.f32 %v3562_v45, %v3561_v1  ;;  %v4492_v1 = vld [vmem:[%s8510_s1 + $0x3a8] sm:$0xff]  ;;  %v4271_v42 = vpop.eup %4270  ;;  %v3336_v2 = vmul.f32 %v3754_v44, %v3208_v54  ;;  %v3074_v11 = vmul.f32 0.6931472, %v4269_v12  ;;  %vm2574_vm4 = vcmp.ge.s32.totalorder %v4496_v58, 0 }
 0x505   :  { %v3329_v47 = vmul.f32 %v3747_v39, %v3201_v29  ;;  %vm2570_vm15 = vcmp.ge.s32.totalorder %v4492_v1, 0  ;;  %v9110_v45 = vld [vmem:[#allocation218_spill] sm:$0xff]  ;;  %v3076_v29 = vmul.f32 0.6931472, %v4267_v8  ;;  %vm2576_vm6 = vcmp.ge.s32.totalorder %v4498_v37, 0 }
 0x506   :  { %v3565_v32 = vadd.f32 %v3564_v48, %v3563_v34  ;;  %v2401_v51 = vpop.xlane.xlu1 %2400  ;;  %4278 = vlog2.f32 %v9110_v45  ;;  %v3210_v34 = vsub.f32 %v3072_v60, %v2422_v19  ;;  %v9111_v48 = vld [vmem:[#allocation219_spill] sm:$0xff]  ;;  %v3756_v4 = vsel %vm2570_vm15, 1.0, %v4529_v16 }
 0x507   :  { %v3566_v59 = vsel %vm3350_vm9, %v3329_v47, 0.0  ;;  %v3203_v62 = vsub.f32 %v3058_v25, %v2401_v51  ;;  %4280 = vlog2.f32 %v9111_v48  ;;  %v2428_v17 = vpop.xlane.xlu0 %2427  ;;  %v4495_v51 = vld [vmem:[%s8510_s1 + $0x3b0] sm:$0xff]  ;;  %v3580_v43 = vsel %vm3350_vm9, %v3336_v2, 0.0 }
 0x508   :  { %v3567_v30 = vadd.f32 %v3566_v59, %v3565_v32  ;;  %vm2571_vm3 = vcmp.ge.s32.totalorder %v4495_v51, 0  ;;  %4282 = vlog2.f32 %v9112_v20  ;;  %v3080_v59 = vmul.f32 0.6931472, %v4271_v42 }
 0x509   :  { %v3331_v46 = vmul.f32 %v3749_v57, %v3203_v62  ;;  %v4273_v57 = vpop.eup %4272  ;;  %v3338_v52 = vmul.f32 %v3756_v4, %v3210_v34  ;;  %4284 = vlog2.f32 %v9113_v13  ;;  %v3757_v35 = vsel %vm2571_vm3, 1.0, %v4529_v16 }
 0x50a   :  { %v3569_v31 = vadd.f32 %v3568_v14, %v3567_v30  ;;  %v2407_v23 = vpop.xlane.xlu1 %2406  ;;  %v3212_v30 = vsub.f32 %v3076_v29, %v2428_v17  ;;  %v3762_v29 = vsel %vm2576_vm6, 1.0, %v4529_v16  ;;  %v4501_v17 = vld [vmem:[%s8510_s1 + $0x3e0] sm:$0xff] }
 0x50b   :  { %v3570_v22 = vsel %vm3350_vm9, %v3331_v46, 0.0  ;;  %v3205_v49 = vsub.f32 %v3062_v26, %v2407_v23  ;;  %v2434_v46 = vpop.xlane.xlu0 %2433  ;;  %v3584_v50 = vsel %vm3350_vm9, %v3338_v52, 0.0  ;;  %vm2577_vm10 = vcmp.ge.s32.totalorder %v4501_v17, 0  ;;  %v4502_v52 = vld [vmem:[%s8510_s1 + $0x3f8] sm:$0xff] }
 0x50c   :  { %v3571_v27 = vadd.f32 %v3570_v22, %v3569_v31  ;;  %v4275_v14 = vpop.eup %4274  ;;  %v3340_v8 = vmul.f32 %v3758_v38, %v3212_v30  ;;  %v3214_v21 = vsub.f32 %v3080_v59, %v2434_v46  ;;  %vm2580_vm11 = vcmp.ge.s32.totalorder %v4502_v52, 0 }
 0x50d   :  { %v3333_v36 = vmul.f32 %v3751_v61, %v3205_v49  ;;  %v4497_v61 = vld [vmem:[%s8510_s1 + $0x3c0] sm:$0xff]  ;;  %v4277_v24 = vpop.eup %4276  ;;  %v3078_v49 = vmul.f32 0.6931472, %v4273_v57  ;;  %v3766_v58 = vsel %vm2580_vm11, 1.0, %v4529_v16 }
 0x50e   :  { %v3573_v7 = vadd.f32 %v3572_v53, %v3571_v27  ;;  %v2413_v40 = vpop.xlane.xlu1 %2412  ;;  %vm2573_vm5 = vcmp.ge.s32.totalorder %v4497_v61, 0  ;;  %v3084_v53 = vmul.f32 0.6931472, %v4275_v14  ;;  %v3082_v1 = vmul.f32 0.6931472, %v4277_v24  ;;  %v4503_v14 = vld [vmem:[%s8510_s1 + $0x3f0] sm:$0xff] }
 0x50f   :  { %v3574_v56 = vsel %vm3350_vm9, %v3333_v36, 0.0  ;;  %v3207_v39 = vsub.f32 %v3066_v18, %v2413_v40  ;;  %v3760_v18 = vsel %vm2574_vm4, 1.0, %v4529_v16  ;;  %v2440_v10 = vpop.xlane.xlu0 %2439  ;;  %v3759_v12 = vsel %vm2573_vm5, 1.0, %v4529_v16 }
 0x510   :  { %v3575_v15 = vadd.f32 %v3574_v56, %v3573_v7  ;;  %v4279_v27 = vpop.eup %4278  ;;  %v4499_v7 = vld [vmem:[%s8510_s1 + $0x3d0] sm:$0xff]  ;;  %v3588_v56 = vsel %vm3350_vm9, %v3340_v8, 0.0  ;;  %v3216_v9 = vsub.f32 %v3084_v53, %v2440_v10  ;;  %vm2579_vm12 = vcmp.ge.s32.totalorder %v4503_v14, 0 }
 0x511   :  { %v3335_v25 = vmul.f32 %v3753_v28, %v3207_v39  ;;  %vm2575_vm7 = vcmp.ge.s32.totalorder %v4499_v7, 0  ;;  %v4281_v40 = vpop.eup %4280  ;;  %v3342_v39 = vmul.f32 %v3760_v18, %v3214_v21  ;;  %v3765_v61 = vsel %vm2579_vm12, 1.0, %v4529_v16 }
 0x512   :  { %v3577_v47 = vadd.f32 %v3576_v55, %v3575_v15  ;;  %v2419_v63 = vpop.xlane.xlu1 %2418  ;;  %v4283_v45 = vpop.eup %4282  ;;  %v3088_v15 = vmul.f32 0.6931472, %v4279_v27  ;;  %v3761_v34 = vsel %vm2575_vm7, 1.0, %v4529_v16 }
 0x513   :  { %v3578_v6 = vsel %vm3350_vm9, %v3335_v25, 0.0  ;;  %v3209_v32 = vsub.f32 %v3070_v41, %v2419_v63  ;;  %v2446_v41 = vpop.xlane.xlu0 %2445  ;;  %v4500_v25 = vld [vmem:[%s8510_s1 + $0x3e8] sm:$0xff]  ;;  %v3592_v5 = vsel %vm3350_vm9, %v3342_v39, 0.0  ;;  %v3092_v20 = vmul.f32 0.6931472, %v4283_v45 }
 0x514   :  { %v3579_v62 = vadd.f32 %v3578_v6, %v3577_v47  ;;  %vm2578_vm8 = vcmp.ge.s32.totalorder %v4500_v25, 0  ;;  %v4285_v47 = vpop.eup %4284  ;;  %v3344_v6 = vmul.f32 %v3762_v29, %v3216_v9 }
 0x515   :  { %v3337_v26 = vmul.f32 %v3755_v3, %v3209_v32  ;;  %v3086_v3 = vmul.f32 0.6931472, %v4281_v40  ;;  %v3218_v32 = vsub.f32 %v3088_v15, %v2446_v41  ;;  %v3764_v57 = vsel %vm2578_vm8, 1.0, %v4529_v16  ;;  %v3349_v40 = vld [vmem:[#allocation2] sm:$0x1] }
 0x516   :  { %v3581_v0 = vadd.f32 %v3580_v43, %v3579_v62  ;;  %v2425_v33 = vpop.xlane.xlu1 %2424  ;;  %v3763_v43 = vsel %vm2577_vm10, 1.0, %v4529_v16  ;;  %v3090_v38 = vmul.f32 0.6931472, %v4285_v47  ;;  %v3596_v46 = vsel %vm3350_vm9, %v3344_v6, 0.0 }
 0x517   :  { %v3582_v31 = vsel %vm3350_vm9, %v3337_v26, 0.0  ;;  %v3211_v23 = vsub.f32 %v3074_v11, %v2425_v33  ;;  %v2452_v59 = vpop.xlane.xlu0 %2451 }
 0x518   :  { %v3583_v22 = vadd.f32 %v3582_v31, %v3581_v0  ;;  %v3346_v0 = vmul.f32 %v3764_v57, %v3218_v32  ;;  %v3220_v33 = vsub.f32 %v3092_v20, %v2452_v59 }
 0x519   :  { %v3339_v60 = vmul.f32 %v3757_v35, %v3211_v23 }
 0x51a   :  { %v3585_v54 = vadd.f32 %v3584_v50, %v3583_v22  ;;  %v2431_v36 = vpop.xlane.xlu1 %2430  ;;  %v3600_v50 = vsel %vm3350_vm9, %v3346_v0, 0.0  ;;  %v3348_v8 = vmul.f32 %v3766_v58, %v3220_v33 }
 0x51b   :  { %v3586_v44 = vsel %vm3350_vm9, %v3339_v60, 0.0  ;;  %v3213_v19 = vsub.f32 %v3078_v49, %v2431_v36 }
 0x51c   :  { %v3587_v28 = vadd.f32 %v3586_v44, %v3585_v54  ;;  %v3604_v53 = vsel %vm3350_vm9, %v3348_v8, 0.0 }
 0x51d   :  { %v3341_v42 = vmul.f32 %v3759_v12, %v3213_v19 }
 0x51e   :  { %v3589_v55 = vadd.f32 %v3588_v56, %v3587_v28  ;;  %v2437_v2 = vpop.xlane.xlu1 %2436 }
 0x51f   :  { %v3590_v48 = vsel %vm3350_vm9, %v3341_v42, 0.0  ;;  %v3215_v4 = vsub.f32 %v3082_v1, %v2437_v2 }
 0x520   :  { %v3591_v63 = vadd.f32 %v3590_v48, %v3589_v55 }
 0x521   :  { %v3343_v51 = vmul.f32 %v3761_v34, %v3215_v4 }
 0x522   :  { %v3593_v62 = vadd.f32 %v3592_v5, %v3591_v63  ;;  %v2443_v11 = vpop.xlane.xlu1 %2442 }
 0x523   :  { %v3594_v30 = vsel %vm3350_vm9, %v3343_v51, 0.0  ;;  %v3217_v26 = vsub.f32 %v3086_v3, %v2443_v11 }
 0x524   :  { %v3595_v13 = vadd.f32 %v3594_v30, %v3593_v62 }
 0x525   :  { %v3345_v35 = vmul.f32 %v3763_v43, %v3217_v26 }
 0x526   :  { %v3597_v31 = vadd.f32 %v3596_v46, %v3595_v13  ;;  %v2449_v23 = vpop.xlane.xlu1 %2448 }
 0x527   :  { %v3598_v24 = vsel %vm3350_vm9, %v3345_v35, 0.0  ;;  %v3219_v22 = vsub.f32 %v3090_v38, %v2449_v23 }
 0x528   :  { %v3599_v49 = vadd.f32 %v3598_v24, %v3597_v31 }
 0x529   :  { %v3347_v21 = vmul.f32 %v3765_v61, %v3219_v22 }
 0x52a   :  { %v3601_v60 = vadd.f32 %v3600_v50, %v3599_v49 }
 0x52b   :  { %v3602_v27 = vsel %vm3350_vm9, %v3347_v21, 0.0 }
 0x52c   :  { %v3603_v18 = vadd.f32 %v3602_v27, %v3601_v60 }
 0x52e   :  { %v3605_v10 = vadd.f32 %v3604_v53, %v3603_v18 }
 0x530   :  { %3606 = vadd.xlane.f32.xlu1 %v3605_v10 }
 0x5bd   :  { %v3607_v54 = vpop.xlane.xlu1 %3606 }
 0x5be   :  { %v3608_v36 = vrot.slane %v3607_v54, 4 }
 0x5c0   :  { %v3609_v12 = vadd.f32 %v3608_v36, %v3607_v54 }
 0x5c2   :  { %v3610_v37 = vrot.slane %v3609_v12, 2 }
 0x5c4   :  { %v3611_v44 = vadd.f32 %v3610_v37, %v3609_v12 }
 0x5c6   :  { %v3612_v19 = vrot.slane %v3611_v44, 1 }
 0x5c8   :  { %v3613_v7 = vadd.f32 %v3612_v19, %v3611_v44 }
 0x5ca   :  { %3767 = vpush %v3613_v7 }
 0x5fb   :  { %s3768_s1 = spop %3767 }
 0x5fc   :  { %v3615_v28 = vstv %s3768_s1 }
 0x5fd   :  { %v3616_v1 = vadd.f32 %v3615_v28, %v3349_v40 }
 0x5ff   :  { %3618 = vst.msk [vmem:[#allocation2] sm:$0x1] %vm16_vm13, %v3616_v1 }
 0x606   :  { %v3622_v56 = vld [vmem:[#allocation2] sm:$0x1] }
 0x607   :  { %v3623_v39 = vmul.f32 0.125, %v3622_v56 }
 0x609   :  { %3624 = vst.msk [vmem:[#allocation2] sm:$0x1] %vm16_vm13, %v3623_v39 }
 0x60a   :  { %4515 = shalt.err (!%p4512_p4)
}
 0x60b   :  { %s4516_s21 = scalar_lea.hbm %s8511_s2, 16 }
 0x60c   :  { %p4517_p5 = scmp.ne.s32.totalorder %s8511_s2, %s4516_s21  ;;  %p4520_p6 = scmp.lt.u32.totalorder %s4516_s21, %s8511_s2 }
 0x60e   :  { %p4522_p7 = pnand %p4520_p6, %p4517_p5 }
 0x610   :  { %4525 = shalt.err (!%p4522_p7)
}
 0x611   :  { %3634 = dma.vmem_to_hbm [thread:$0]  %s3632_s0, 16, %s8511_s2, [#allocation3]  }
 0x612   :  { %4526 = dma.done.wait [#allocation3], 16  }
 0x613   :  { %4527 = vsyncadd [#allocation3], 4294967280 }
 0x614   :  { %3638 = vsyncpa [#allocation3], 1 }

</bundles_post_ra>
